<compile_context>
chip_gen: v6e
topology: v6e:2x2x1
jax: 0.10.0
libtpu: 0.0.40
codegen_flags: <defaults>
</compile_context>

<pallas_src>
import functools
import math

import jax
import jax.numpy as jnp
from jax.experimental import pallas as pl
from jax.experimental.pallas import tpu as pltpu


def pack_attention_kernel(p_ref, x_ref, mask_ref,
                          wq_ref, bq_ref, wkv_ref, bkv_ref,
                          wo_ref, bo_ref,
                          o_ref, *, num_heads):
    bb, lq, e = p_ref.shape
    lk = x_ref.shape[1]
    dh = e // num_heads
    dtype = p_ref.dtype            # MXU operand dtype (bf16 inputs stay bf16)
    m_q = bb * lq

    # Collapse the fused batch block: projection GEMMs see M = bb*L rows.
    # (Wrapper guarantees Lq/Lk are sublane-aligned so these are free.)
    p2 = p_ref[...].reshape(m_q, e)            # (M, E)
    x2 = x_ref[...].reshape(bb * lk, e)        # (Mk, E)

    # Fused input projections (weights pre-transposed on the host; the
    # 1/sqrt(Dh) query scale is folded into Wq/bq; K|V share one GEMM).
    # Cast to the operand dtype ONCE right after the bias add.
    q = (jnp.dot(p2, wq_ref[...], preferred_element_type=jnp.float32)
         + bq_ref[...]).astype(dtype)          # (M, E)
    kv = (jnp.dot(x2, wkv_ref[...], preferred_element_type=jnp.float32)
          + bkv_ref[...]).astype(dtype)        # (Mk, 2E)

    # Hoisted additive mask: one (bb, Lq, Lk) f32 per grid step.
    mask3 = jnp.broadcast_to(mask_ref[...].astype(jnp.float32)[None],
                             (bb, lq, lk))

    # f32 output accumulator, initialised with the output-projection bias.
    # Each head adds its partial GEMM ctx_h @ Wo_h^T (contracting-dim split of
    # the full (M, E) x (E, E) output projection).
    out_acc = jnp.broadcast_to(bo_ref[...].astype(jnp.float32), (m_q, e))

    for h in range(num_heads):
        lo = h * dh
        qh = q[:, lo:lo + dh].reshape(bb, lq, dh)
        kh = kv[:, lo:lo + dh].reshape(bb, lk, dh)
        vh = kv[:, e + lo:e + lo + dh].reshape(bb, lk, dh)

        s = jnp.einsum("bqd,bkd->bqk", qh, kh,
                       preferred_element_type=jnp.float32) + mask3
        s = s - jnp.max(s, axis=-1, keepdims=True)
        p_exp = jnp.exp(s)
        inv = pl.reciprocal(jnp.sum(p_exp, axis=-1, keepdims=True), approx=True)
        attn = (p_exp * inv).astype(dtype)

        ctx_h = jnp.einsum("bqk,bkd->bqd", attn, vh,
                           preferred_element_type=jnp.float32)   # (bb, Lq, Dh)

        # Fold this head into the output projection: no scratch slab and no
        # Dh-wide partial VMEM stores. wo_ref[h] is the (Dh, E) head slice.
        out_acc = out_acc + jnp.dot(ctx_h.reshape(m_q, dh).astype(dtype),
                                    wo_ref[h],
                                    preferred_element_type=jnp.float32)

    # Single lane-dense output store.
    o_ref[...] = out_acc.reshape(bb, lq, e).astype(o_ref.dtype)


def _choose_block_b(B, Lq, target_rows=512):
    """Largest batch block (divisor of B) with block_b*Lq <= ~target MXU rows,
    while keeping the grid length >= 2 (v7x has 2 TensorCores per chip and the
    'parallel' grid axis is how work is sharded across them)."""
    max_bb = max(1, target_rows // max(Lq, 1))
    max_bb = min(max_bb, B)
    if B >= 2:
        max_bb = min(max_bb, B // 2)
    max_bb = max(max_bb, 1)
    for bb in range(max_bb, 0, -1):
        if B % bb == 0:
            return bb
    return 1


def pack_attention(P, X, attention_mask, params, num_heads, block_b=None,
                   vmem_limit_bytes=48 * 1024 * 1024):
    """P: (B, Lq, E), X: (B, Lk, E), attention_mask: (Lq, Lk) additive float.

    vmem_limit_bytes default (48 MiB) fits every generation (v7x has 64 MiB
    physical); on v6e it can be raised toward ~96 MiB for larger block_b.
    """
    wq, wk, wv, bq, bk, bv, wo, bo = params
    B, Lq, E = P.shape
    _, Lk, _ = X.shape
    assert E % num_heads == 0
    Dh = E // num_heads
    scale = 1.0 / math.sqrt(Dh)

    op_dtype = P.dtype
    itemsize = jnp.dtype(op_dtype).itemsize
    sublane = {4: 8, 2: 16, 1: 32}.get(itemsize, 8)
    # Flattening (bb, L, E) -> (bb*L, E) inside the kernel is only a free
    # relayout when L is a multiple of the sublane tile for this dtype.
    # TODO(synk): for unaligned L keep the 3-D shapes and batch the
    # projection einsums instead of flattening.
    assert Lq % sublane == 0 and Lk % sublane == 0, (Lq, Lk, sublane)

    # One-time host-side weight layout:
    #   * pre-transpose so the kernel computes x @ W (no in-kernel transposes)
    #   * fold the 1/sqrt(Dh) query scale into Wq / bq
    #   * fuse K and V projections into a single (E, 2E) operand
    #   * split Wo^T per head -> (H, Dh, E) (leading-dim indexed in-kernel)
    wq_t = (wq.T * scale).astype(op_dtype)                          # (E, E)
    bq_s = (bq * scale).astype(jnp.float32)                         # (1, E)
    wkv_t = jnp.concatenate([wk.T, wv.T], axis=1).astype(op_dtype)  # (E, 2E)
    bkv_f = jnp.concatenate([bk, bv], axis=1).astype(jnp.float32)   # (1, 2E)
    wo_h = wo.T.reshape(num_heads, Dh, E).astype(op_dtype)          # (H, Dh, E)
    bo_f = bo.astype(jnp.float32)                                   # (1, E)

    if block_b is None:
        block_b = _choose_block_b(B, Lq)
    assert B % block_b == 0
    grid = (B // block_b,)

    # Advisory cost estimate so XLA schedules ops around the custom call.
    flops = int(2 * B * Lq * E * E          # Q projection
                + 2 * B * Lk * E * 2 * E    # fused K|V projection
                + 4 * B * Lq * Lk * E       # scores + context (all heads)
                + 2 * B * Lq * E * E)       # output projection
    transcendentals = int(B * num_heads * Lq * Lk)
    bytes_accessed = int(
        (P.size + X.size + B * Lq * E) * itemsize
        + (wq_t.size + wkv_t.size + wo_h.size) * itemsize
        + (bq_s.size + bkv_f.size + bo_f.size + attention_mask.size) * 4)
    cost = pl.CostEstimate(flops=flops, transcendentals=transcendentals,
                           bytes_accessed=bytes_accessed)

    kernel = functools.partial(pack_attention_kernel, num_heads=num_heads)

    def const_spec(shape, single_buffer):
        nd = len(shape)
        imap = lambda b: (0,) * nd
        if single_buffer:
            # Constant-index operand: one VMEM buffer is enough (block index
            # never changes) -> halves its VMEM footprint vs double buffering.
            return pl.BlockSpec(shape, imap, pipeline_mode=pl.Buffered(1))
        return pl.BlockSpec(shape, imap)

    def build(single_buffer_consts):
        return pl.pallas_call(
            kernel,
            out_shape=jax.ShapeDtypeStruct((B, Lq, E), P.dtype),
            grid=grid,
            in_specs=[
                pl.BlockSpec((block_b, Lq, E), lambda b: (b, 0, 0)),   # P
                pl.BlockSpec((block_b, Lk, E), lambda b: (b, 0, 0)),   # X
                const_spec((Lq, Lk), single_buffer_consts),            # mask
                const_spec((E, E), single_buffer_consts),              # Wq^T*s
                const_spec((1, E), single_buffer_consts),              # bq*s
                const_spec((E, 2 * E), single_buffer_consts),          # Wk|Wv
                const_spec((1, 2 * E), single_buffer_consts),          # bk|bv
                const_spec((num_heads, Dh, E), single_buffer_consts),  # Wo^T/h
                const_spec((1, E), single_buffer_consts),              # bo
            ],
            out_specs=pl.BlockSpec((block_b, Lq, E), lambda b: (b, 0, 0)),
            compiler_params=pltpu.CompilerParams(
                dimension_semantics=("parallel",),
                vmem_limit_bytes=vmem_limit_bytes,
            ),
            cost_estimate=cost,
        )

    args = (P, X, attention_mask, wq_t, bq_s, wkv_t, bkv_f, wo_h, bo_f)
    try:
        return build(True)(*args)
    except Exception:
        # Fallback for jax versions whose TPU pipeliner rejects
        # BlockSpec.pipeline_mode / pl.Buffered(1): use default buffering.
        return build(False)(*args)


def pack_attention_reference(P, X, attention_mask, params, num_heads):
    """Pure-JAX reference matching nn.MultiheadAttention forward (batch_first)."""
    wq, wk, wv, bq, bk, bv, wo, bo = params
    B, Lq, E = P.shape
    _, Lk, _ = X.shape
    Dh = E // num_heads
    q = P @ wq.T + bq[0]
    k = X @ wk.T + bk[0]
    v = X @ wv.T + bv[0]
    q = q.reshape(B, Lq, num_heads, Dh).transpose(0, 2, 1, 3)
    k = k.reshape(B, Lk, num_heads, Dh).transpose(0, 2, 1, 3)
    v = v.reshape(B, Lk, num_heads, Dh).transpose(0, 2, 1, 3)
    s = jnp.einsum("bhqd,bhkd->bhqk", q, k) / math.sqrt(Dh)
    s = s + attention_mask[None, None]
    a = jax.nn.softmax(s, axis=-1)
    ctx = jnp.einsum("bhqk,bhkd->bhqd", a, v)
    ctx = ctx.transpose(0, 2, 1, 3).reshape(B, Lq, E)
    return ctx @ wo.T + bo[0]


def init_params(key, embed_dim):
    """Deterministic synthetic init mirroring MHA parameter shapes.

    in_proj_weight (3E, E) / in_proj_bias (3E,) are materialized directly as
    their three (E, E) / (E,) splits; out_proj is (E, E) + (E,)."""
    ks = jax.random.split(key, 8)
    s = 1.0 / math.sqrt(embed_dim)
    wq = jax.random.normal(ks[0], (embed_dim, embed_dim), jnp.float32) * s
    wk = jax.random.normal(ks[1], (embed_dim, embed_dim), jnp.float32) * s
    wv = jax.random.normal(ks[2], (embed_dim, embed_dim), jnp.float32) * s
    wo = jax.random.normal(ks[3], (embed_dim, embed_dim), jnp.float32) * s
    bq = jax.random.normal(ks[4], (1, embed_dim), jnp.float32) * 0.02
    bk = jax.random.normal(ks[5], (1, embed_dim), jnp.float32) * 0.02
    bv = jax.random.normal(ks[6], (1, embed_dim), jnp.float32) * 0.02
    bo = jax.random.normal(ks[7], (1, embed_dim), jnp.float32) * 0.02
    return (wq, wk, wv, bq, bk, bv, wo, bo)


if __name__ == "__main__":
    # E = 128 keeps the feature/output dimension lane-dense (full 128-lane
    # unmasked stores); B = 4 gives a grid of 2 (block_b = 2).
    B, Lq, Lk, E, H = 4, 8, 16, 128, 4

    key = jax.random.PRNGKey(0)
    k_p, k_x, k_m, k_w = jax.random.split(key, 4)

    P = jax.random.normal(k_p, (B, Lq, E), jnp.float32)
    X = jax.random.normal(k_x, (B, Lk, E), jnp.float32)
    # Additive float attn_mask (PyTorch 2-D float mask convention):
    # ~20% of (query, key) pairs disallowed via large negative bias.
    attention_mask = jnp.where(
        jax.random.uniform(k_m, (Lq, Lk)) < 0.2, -1e9, 0.0
    ).astype(jnp.float32)

    params = init_params(k_w, E)

    out = pack_attention(P, X, attention_mask, params, num_heads=H)
    out = jax.block_until_ready(out)

    ref = pack_attention_reference(P, X, attention_mask, params, num_heads=H)
    assert out.shape == (B, Lq, E), out.shape
    # Tolerance relaxed vs. exact-divide softmax because the kernel uses the
    # approximate EUP reciprocal for the softmax denominator.
    assert jnp.allclose(out, ref, rtol=1e-2, atol=1e-2), (
        float(jnp.max(jnp.abs(out - ref)))
    )
    print("KERNEL_OK")
</pallas_src>

<mosaic_0001>
module attributes {stable_mosaic.version = 11 : i64} {
  func.func @pack_attention_kernel(%arg0: i32, %arg1: memref<2x8x128xf32, #tpu.memory_space<vmem>>, %arg2: memref<2x16x128xf32, #tpu.memory_space<vmem>>, %arg3: memref<8x16xf32, #tpu.memory_space<vmem>>, %arg4: memref<128x128xf32, #tpu.memory_space<vmem>>, %arg5: memref<1x128xf32, #tpu.memory_space<vmem>>, %arg6: memref<128x256xf32, #tpu.memory_space<vmem>>, %arg7: memref<1x256xf32, #tpu.memory_space<vmem>>, %arg8: memref<4x32x128xf32, #tpu.memory_space<vmem>>, %arg9: memref<1x128xf32, #tpu.memory_space<vmem>>, %arg10: memref<2x8x128xf32, #tpu.memory_space<vmem>>) attributes {dimension_semantics = [#tpu.dimension_semantics<parallel>], iteration_bounds = array<i64: 2>, scalar_prefetch = 0 : i64, scratch_operands = 0 : i64, tpu.core_type = #tpu.core_type<tc>, window_params = [{transform_indices = @transform_0, window_bounds = array<i64: 2, 8, 128>}, {transform_indices = @transform_1, window_bounds = array<i64: 2, 16, 128>}, {pipeline_mode = #tpu.pipeline_mode<synchronous>, transform_indices = @transform_2, window_bounds = array<i64: 8, 16>}, {pipeline_mode = #tpu.pipeline_mode<synchronous>, transform_indices = @transform_3, window_bounds = array<i64: 128, 128>}, {pipeline_mode = #tpu.pipeline_mode<synchronous>, transform_indices = @transform_4, window_bounds = array<i64: 1, 128>}, {pipeline_mode = #tpu.pipeline_mode<synchronous>, transform_indices = @transform_5, window_bounds = array<i64: 128, 256>}, {pipeline_mode = #tpu.pipeline_mode<synchronous>, transform_indices = @transform_6, window_bounds = array<i64: 1, 256>}, {pipeline_mode = #tpu.pipeline_mode<synchronous>, transform_indices = @transform_7, window_bounds = array<i64: 4, 32, 128>}, {pipeline_mode = #tpu.pipeline_mode<synchronous>, transform_indices = @transform_8, window_bounds = array<i64: 1, 128>}, {transform_indices = @transform_9, window_bounds = array<i64: 2, 8, 128>}]} {
    %c0 = arith.constant 0 : index
    %c0_0 = arith.constant 0 : index
    %c0_1 = arith.constant 0 : index
    %0 = vector.load %arg1[%c0, %c0_0, %c0_1] : memref<2x8x128xf32, #tpu.memory_space<vmem>>, vector<2x8x128xf32>
    %1 = vector.shape_cast %0 : vector<2x8x128xf32> to vector<16x128xf32>
    %c0_2 = arith.constant 0 : index
    %c0_3 = arith.constant 0 : index
    %c0_4 = arith.constant 0 : index
    %2 = vector.load %arg2[%c0_2, %c0_3, %c0_4] : memref<2x16x128xf32, #tpu.memory_space<vmem>>, vector<2x16x128xf32>
    %3 = vector.shape_cast %2 : vector<2x16x128xf32> to vector<32x128xf32>
    %c0_5 = arith.constant 0 : index
    %c0_6 = arith.constant 0 : index
    %4 = vector.load %arg4[%c0_5, %c0_6] : memref<128x128xf32, #tpu.memory_space<vmem>>, vector<128x128xf32>
    %cst = arith.constant dense<0.000000e+00> : vector<16x128xf32>
    %5 = tpu.matmul %1, %4, %cst {dimension_numbers = #tpu.dot_dimension_numbers<[1], [0], [0], [1], [0, 0, 1, 1], [], []>} : vector<16x128xf32>, vector<128x128xf32>, vector<16x128xf32> -> vector<16x128xf32>
    %c0_7 = arith.constant 0 : index
    %c0_8 = arith.constant 0 : index
    %6 = vector.load %arg5[%c0_7, %c0_8] : memref<1x128xf32, #tpu.memory_space<vmem>>, vector<1x128xf32>
    %7 = vector.broadcast %6 : vector<1x128xf32> to vector<16x128xf32>
    %8 = arith.addf %5, %7 : vector<16x128xf32>
    %c0_9 = arith.constant 0 : index
    %c0_10 = arith.constant 0 : index
    %9 = vector.load %arg6[%c0_9, %c0_10] : memref<128x256xf32, #tpu.memory_space<vmem>>, vector<128x256xf32>
    %cst_11 = arith.constant dense<0.000000e+00> : vector<32x256xf32>
    %10 = tpu.matmul %3, %9, %cst_11 {dimension_numbers = #tpu.dot_dimension_numbers<[1], [0], [0], [1], [0, 0, 1, 1], [], []>} : vector<32x128xf32>, vector<128x256xf32>, vector<32x256xf32> -> vector<32x256xf32>
    %c0_12 = arith.constant 0 : index
    %c0_13 = arith.constant 0 : index
    %11 = vector.load %arg7[%c0_12, %c0_13] : memref<1x256xf32, #tpu.memory_space<vmem>>, vector<1x256xf32>
    %12 = vector.broadcast %11 : vector<1x256xf32> to vector<32x256xf32>
    %13 = arith.addf %10, %12 : vector<32x256xf32>
    %c0_14 = arith.constant 0 : index
    %c0_15 = arith.constant 0 : index
    %14 = vector.load %arg3[%c0_14, %c0_15] : memref<8x16xf32, #tpu.memory_space<vmem>>, vector<8x16xf32>
    %15 = vector.shape_cast %14 : vector<8x16xf32> to vector<1x8x16xf32>
    %16 = vector.shape_cast %15 : vector<1x8x16xf32> to vector<1x8x16xf32>
    %17 = vector.broadcast %16 : vector<1x8x16xf32> to vector<2x8x16xf32>
    %c0_16 = arith.constant 0 : index
    %c0_17 = arith.constant 0 : index
    %18 = vector.load %arg9[%c0_16, %c0_17] : memref<1x128xf32, #tpu.memory_space<vmem>>, vector<1x128xf32>
    %19 = vector.shape_cast %18 : vector<1x128xf32> to vector<1x128xf32>
    %20 = vector.broadcast %19 : vector<1x128xf32> to vector<16x128xf32>
    %21 = vector.extract_strided_slice %8 {offsets = [0, 0], sizes = [16, 32], strides = [1, 1]} : vector<16x128xf32> to vector<16x32xf32>
    %22 = vector.shape_cast %21 : vector<16x32xf32> to vector<2x8x32xf32>
    %23 = vector.extract_strided_slice %13 {offsets = [0, 0], sizes = [32, 32], strides = [1, 1]} : vector<32x256xf32> to vector<32x32xf32>
    %24 = vector.shape_cast %23 : vector<32x32xf32> to vector<2x16x32xf32>
    %25 = vector.extract_strided_slice %13 {offsets = [0, 128], sizes = [32, 32], strides = [1, 1]} : vector<32x256xf32> to vector<32x32xf32>
    %26 = vector.shape_cast %25 : vector<32x32xf32> to vector<2x16x32xf32>
    "tpu.trace_start"() <{level = 10 : i32, message = "bqd,bkd->bqk"}> : () -> ()
    %cst_18 = arith.constant dense<0.000000e+00> : vector<2x8x16xf32>
    %27 = tpu.matmul %22, %24, %cst_18 {dimension_numbers = #tpu.dot_dimension_numbers<[2], [2], [1], [1], [0, 0, 0, 1, 1, 1], [0], [0]>} : vector<2x8x32xf32>, vector<2x16x32xf32>, vector<2x8x16xf32> -> vector<2x8x16xf32>
    "tpu.trace_stop"() : () -> ()
    %28 = arith.addf %27, %17 : vector<2x8x16xf32>
    %cst_19 = arith.constant dense<0xFF800000> : vector<2x8xf32>
    %29 = vector.multi_reduction <maximumf>, %28, %cst_19 [2] : vector<2x8x16xf32> to vector<2x8xf32>
    %30 = vector.shape_cast %29 : vector<2x8xf32> to vector<2x8x1xf32>
    %31 = vector.broadcast %30 : vector<2x8x1xf32> to vector<2x8x16xf32>
    %32 = arith.subf %28, %31 : vector<2x8x16xf32>
    %33 = math.exp %32 : vector<2x8x16xf32>
    %cst_20 = arith.constant dense<0.000000e+00> : vector<2x8xf32>
    %34 = vector.multi_reduction <add>, %33, %cst_20 [2] : vector<2x8x16xf32> to vector<2x8xf32>
    %35 = vector.shape_cast %34 : vector<2x8xf32> to vector<2x8x1xf32>
    %36 = tpu.reciprocal %35 {approx = true} : vector<2x8x1xf32> -> vector<2x8x1xf32>
    %37 = vector.broadcast %36 : vector<2x8x1xf32> to vector<2x8x16xf32>
    %38 = arith.mulf %33, %37 : vector<2x8x16xf32>
    "tpu.trace_start"() <{level = 10 : i32, message = "bqk,bkd->bqd"}> : () -> ()
    %cst_21 = arith.constant dense<0.000000e+00> : vector<2x8x32xf32>
    %39 = tpu.matmul %38, %26, %cst_21 {dimension_numbers = #tpu.dot_dimension_numbers<[2], [1], [1], [2], [0, 0, 0, 1, 1, 2], [0], [0]>} : vector<2x8x16xf32>, vector<2x16x32xf32>, vector<2x8x32xf32> -> vector<2x8x32xf32>
    "tpu.trace_stop"() : () -> ()
    %40 = vector.shape_cast %39 : vector<2x8x32xf32> to vector<16x32xf32>
    %c0_22 = arith.constant 0 : index
    %c0_23 = arith.constant 0 : index
    %c0_24 = arith.constant 0 : index
    %41 = vector.load %arg8[%c0_22, %c0_23, %c0_24] : memref<4x32x128xf32, #tpu.memory_space<vmem>>, vector<1x32x128xf32>
    %42 = vector.shape_cast %41 : vector<1x32x128xf32> to vector<32x128xf32>
    %cst_25 = arith.constant dense<0.000000e+00> : vector<16x128xf32>
    %43 = tpu.matmul %40, %42, %cst_25 {dimension_numbers = #tpu.dot_dimension_numbers<[1], [0], [0], [1], [0, 0, 1, 1], [], []>} : vector<16x32xf32>, vector<32x128xf32>, vector<16x128xf32> -> vector<16x128xf32>
    %44 = arith.addf %20, %43 : vector<16x128xf32>
    %45 = vector.extract_strided_slice %8 {offsets = [0, 32], sizes = [16, 32], strides = [1, 1]} : vector<16x128xf32> to vector<16x32xf32>
    %46 = vector.shape_cast %45 : vector<16x32xf32> to vector<2x8x32xf32>
    %47 = vector.extract_strided_slice %13 {offsets = [0, 32], sizes = [32, 32], strides = [1, 1]} : vector<32x256xf32> to vector<32x32xf32>
    %48 = vector.shape_cast %47 : vector<32x32xf32> to vector<2x16x32xf32>
    %49 = vector.extract_strided_slice %13 {offsets = [0, 160], sizes = [32, 32], strides = [1, 1]} : vector<32x256xf32> to vector<32x32xf32>
    %50 = vector.shape_cast %49 : vector<32x32xf32> to vector<2x16x32xf32>
    "tpu.trace_start"() <{level = 10 : i32, message = "bqd,bkd->bqk"}> : () -> ()
    %cst_26 = arith.constant dense<0.000000e+00> : vector<2x8x16xf32>
    %51 = tpu.matmul %46, %48, %cst_26 {dimension_numbers = #tpu.dot_dimension_numbers<[2], [2], [1], [1], [0, 0, 0, 1, 1, 1], [0], [0]>} : vector<2x8x32xf32>, vector<2x16x32xf32>, vector<2x8x16xf32> -> vector<2x8x16xf32>
    "tpu.trace_stop"() : () -> ()
    %52 = arith.addf %51, %17 : vector<2x8x16xf32>
    %cst_27 = arith.constant dense<0xFF800000> : vector<2x8xf32>
    %53 = vector.multi_reduction <maximumf>, %52, %cst_27 [2] : vector<2x8x16xf32> to vector<2x8xf32>
    %54 = vector.shape_cast %53 : vector<2x8xf32> to vector<2x8x1xf32>
    %55 = vector.broadcast %54 : vector<2x8x1xf32> to vector<2x8x16xf32>
    %56 = arith.subf %52, %55 : vector<2x8x16xf32>
    %57 = math.exp %56 : vector<2x8x16xf32>
    %cst_28 = arith.constant dense<0.000000e+00> : vector<2x8xf32>
    %58 = vector.multi_reduction <add>, %57, %cst_28 [2] : vector<2x8x16xf32> to vector<2x8xf32>
    %59 = vector.shape_cast %58 : vector<2x8xf32> to vector<2x8x1xf32>
    %60 = tpu.reciprocal %59 {approx = true} : vector<2x8x1xf32> -> vector<2x8x1xf32>
    %61 = vector.broadcast %60 : vector<2x8x1xf32> to vector<2x8x16xf32>
    %62 = arith.mulf %57, %61 : vector<2x8x16xf32>
    "tpu.trace_start"() <{level = 10 : i32, message = "bqk,bkd->bqd"}> : () -> ()
    %cst_29 = arith.constant dense<0.000000e+00> : vector<2x8x32xf32>
    %63 = tpu.matmul %62, %50, %cst_29 {dimension_numbers = #tpu.dot_dimension_numbers<[2], [1], [1], [2], [0, 0, 0, 1, 1, 2], [0], [0]>} : vector<2x8x16xf32>, vector<2x16x32xf32>, vector<2x8x32xf32> -> vector<2x8x32xf32>
    "tpu.trace_stop"() : () -> ()
    %64 = vector.shape_cast %63 : vector<2x8x32xf32> to vector<16x32xf32>
    %c1 = arith.constant 1 : index
    %c0_30 = arith.constant 0 : index
    %c0_31 = arith.constant 0 : index
    %65 = vector.load %arg8[%c1, %c0_30, %c0_31] : memref<4x32x128xf32, #tpu.memory_space<vmem>>, vector<1x32x128xf32>
    %66 = vector.shape_cast %65 : vector<1x32x128xf32> to vector<32x128xf32>
    %cst_32 = arith.constant dense<0.000000e+00> : vector<16x128xf32>
    %67 = tpu.matmul %64, %66, %cst_32 {dimension_numbers = #tpu.dot_dimension_numbers<[1], [0], [0], [1], [0, 0, 1, 1], [], []>} : vector<16x32xf32>, vector<32x128xf32>, vector<16x128xf32> -> vector<16x128xf32>
    %68 = arith.addf %44, %67 : vector<16x128xf32>
    %69 = vector.extract_strided_slice %8 {offsets = [0, 64], sizes = [16, 32], strides = [1, 1]} : vector<16x128xf32> to vector<16x32xf32>
    %70 = vector.shape_cast %69 : vector<16x32xf32> to vector<2x8x32xf32>
    %71 = vector.extract_strided_slice %13 {offsets = [0, 64], sizes = [32, 32], strides = [1, 1]} : vector<32x256xf32> to vector<32x32xf32>
    %72 = vector.shape_cast %71 : vector<32x32xf32> to vector<2x16x32xf32>
    %73 = vector.extract_strided_slice %13 {offsets = [0, 192], sizes = [32, 32], strides = [1, 1]} : vector<32x256xf32> to vector<32x32xf32>
    %74 = vector.shape_cast %73 : vector<32x32xf32> to vector<2x16x32xf32>
    "tpu.trace_start"() <{level = 10 : i32, message = "bqd,bkd->bqk"}> : () -> ()
    %cst_33 = arith.constant dense<0.000000e+00> : vector<2x8x16xf32>
    %75 = tpu.matmul %70, %72, %cst_33 {dimension_numbers = #tpu.dot_dimension_numbers<[2], [2], [1], [1], [0, 0, 0, 1, 1, 1], [0], [0]>} : vector<2x8x32xf32>, vector<2x16x32xf32>, vector<2x8x16xf32> -> vector<2x8x16xf32>
    "tpu.trace_stop"() : () -> ()
    %76 = arith.addf %75, %17 : vector<2x8x16xf32>
    %cst_34 = arith.constant dense<0xFF800000> : vector<2x8xf32>
    %77 = vector.multi_reduction <maximumf>, %76, %cst_34 [2] : vector<2x8x16xf32> to vector<2x8xf32>
    %78 = vector.shape_cast %77 : vector<2x8xf32> to vector<2x8x1xf32>
    %79 = vector.broadcast %78 : vector<2x8x1xf32> to vector<2x8x16xf32>
    %80 = arith.subf %76, %79 : vector<2x8x16xf32>
    %81 = math.exp %80 : vector<2x8x16xf32>
    %cst_35 = arith.constant dense<0.000000e+00> : vector<2x8xf32>
    %82 = vector.multi_reduction <add>, %81, %cst_35 [2] : vector<2x8x16xf32> to vector<2x8xf32>
    %83 = vector.shape_cast %82 : vector<2x8xf32> to vector<2x8x1xf32>
    %84 = tpu.reciprocal %83 {approx = true} : vector<2x8x1xf32> -> vector<2x8x1xf32>
    %85 = vector.broadcast %84 : vector<2x8x1xf32> to vector<2x8x16xf32>
    %86 = arith.mulf %81, %85 : vector<2x8x16xf32>
    "tpu.trace_start"() <{level = 10 : i32, message = "bqk,bkd->bqd"}> : () -> ()
    %cst_36 = arith.constant dense<0.000000e+00> : vector<2x8x32xf32>
    %87 = tpu.matmul %86, %74, %cst_36 {dimension_numbers = #tpu.dot_dimension_numbers<[2], [1], [1], [2], [0, 0, 0, 1, 1, 2], [0], [0]>} : vector<2x8x16xf32>, vector<2x16x32xf32>, vector<2x8x32xf32> -> vector<2x8x32xf32>
    "tpu.trace_stop"() : () -> ()
    %88 = vector.shape_cast %87 : vector<2x8x32xf32> to vector<16x32xf32>
    %c2 = arith.constant 2 : index
    %c0_37 = arith.constant 0 : index
    %c0_38 = arith.constant 0 : index
    %89 = vector.load %arg8[%c2, %c0_37, %c0_38] : memref<4x32x128xf32, #tpu.memory_space<vmem>>, vector<1x32x128xf32>
    %90 = vector.shape_cast %89 : vector<1x32x128xf32> to vector<32x128xf32>
    %cst_39 = arith.constant dense<0.000000e+00> : vector<16x128xf32>
    %91 = tpu.matmul %88, %90, %cst_39 {dimension_numbers = #tpu.dot_dimension_numbers<[1], [0], [0], [1], [0, 0, 1, 1], [], []>} : vector<16x32xf32>, vector<32x128xf32>, vector<16x128xf32> -> vector<16x128xf32>
    %92 = arith.addf %68, %91 : vector<16x128xf32>
    %93 = vector.extract_strided_slice %8 {offsets = [0, 96], sizes = [16, 32], strides = [1, 1]} : vector<16x128xf32> to vector<16x32xf32>
    %94 = vector.shape_cast %93 : vector<16x32xf32> to vector<2x8x32xf32>
    %95 = vector.extract_strided_slice %13 {offsets = [0, 96], sizes = [32, 32], strides = [1, 1]} : vector<32x256xf32> to vector<32x32xf32>
    %96 = vector.shape_cast %95 : vector<32x32xf32> to vector<2x16x32xf32>
    %97 = vector.extract_strided_slice %13 {offsets = [0, 224], sizes = [32, 32], strides = [1, 1]} : vector<32x256xf32> to vector<32x32xf32>
    %98 = vector.shape_cast %97 : vector<32x32xf32> to vector<2x16x32xf32>
    "tpu.trace_start"() <{level = 10 : i32, message = "bqd,bkd->bqk"}> : () -> ()
    %cst_40 = arith.constant dense<0.000000e+00> : vector<2x8x16xf32>
    %99 = tpu.matmul %94, %96, %cst_40 {dimension_numbers = #tpu.dot_dimension_numbers<[2], [2], [1], [1], [0, 0, 0, 1, 1, 1], [0], [0]>} : vector<2x8x32xf32>, vector<2x16x32xf32>, vector<2x8x16xf32> -> vector<2x8x16xf32>
    "tpu.trace_stop"() : () -> ()
    %100 = arith.addf %99, %17 : vector<2x8x16xf32>
    %cst_41 = arith.constant dense<0xFF800000> : vector<2x8xf32>
    %101 = vector.multi_reduction <maximumf>, %100, %cst_41 [2] : vector<2x8x16xf32> to vector<2x8xf32>
    %102 = vector.shape_cast %101 : vector<2x8xf32> to vector<2x8x1xf32>
    %103 = vector.broadcast %102 : vector<2x8x1xf32> to vector<2x8x16xf32>
    %104 = arith.subf %100, %103 : vector<2x8x16xf32>
    %105 = math.exp %104 : vector<2x8x16xf32>
    %cst_42 = arith.constant dense<0.000000e+00> : vector<2x8xf32>
    %106 = vector.multi_reduction <add>, %105, %cst_42 [2] : vector<2x8x16xf32> to vector<2x8xf32>
    %107 = vector.shape_cast %106 : vector<2x8xf32> to vector<2x8x1xf32>
    %108 = tpu.reciprocal %107 {approx = true} : vector<2x8x1xf32> -> vector<2x8x1xf32>
    %109 = vector.broadcast %108 : vector<2x8x1xf32> to vector<2x8x16xf32>
    %110 = arith.mulf %105, %109 : vector<2x8x16xf32>
    "tpu.trace_start"() <{level = 10 : i32, message = "bqk,bkd->bqd"}> : () -> ()
    %cst_43 = arith.constant dense<0.000000e+00> : vector<2x8x32xf32>
    %111 = tpu.matmul %110, %98, %cst_43 {dimension_numbers = #tpu.dot_dimension_numbers<[2], [1], [1], [2], [0, 0, 0, 1, 1, 2], [0], [0]>} : vector<2x8x16xf32>, vector<2x16x32xf32>, vector<2x8x32xf32> -> vector<2x8x32xf32>
    "tpu.trace_stop"() : () -> ()
    %112 = vector.shape_cast %111 : vector<2x8x32xf32> to vector<16x32xf32>
    %c3 = arith.constant 3 : index
    %c0_44 = arith.constant 0 : index
    %c0_45 = arith.constant 0 : index
    %113 = vector.load %arg8[%c3, %c0_44, %c0_45] : memref<4x32x128xf32, #tpu.memory_space<vmem>>, vector<1x32x128xf32>
    %114 = vector.shape_cast %113 : vector<1x32x128xf32> to vector<32x128xf32>
    %cst_46 = arith.constant dense<0.000000e+00> : vector<16x128xf32>
    %115 = tpu.matmul %112, %114, %cst_46 {dimension_numbers = #tpu.dot_dimension_numbers<[1], [0], [0], [1], [0, 0, 1, 1], [], []>} : vector<16x32xf32>, vector<32x128xf32>, vector<16x128xf32> -> vector<16x128xf32>
    %116 = arith.addf %92, %115 : vector<16x128xf32>
    %117 = vector.shape_cast %116 : vector<16x128xf32> to vector<2x8x128xf32>
    %c0_47 = arith.constant 0 : index
    %c0_48 = arith.constant 0 : index
    %c0_49 = arith.constant 0 : index
    %118 = vector.load %arg10[%c0_47, %c0_48, %c0_49] : memref<2x8x128xf32, #tpu.memory_space<vmem>>, vector<2x8x128xf32>
    tpu.vector_store %arg10[%c0_47, %c0_48, %c0_49], %117 {strides = array<i32>} : memref<2x8x128xf32, #tpu.memory_space<vmem>>, vector<2x8x128xf32>,
    return
  }
  func.func @transform_0(%arg0: i32) -> (i32, i32, i32) {
    %c0_i32 = arith.constant 0 : i32
    %c0_i32_0 = arith.constant 0 : i32
    %c0_i32_1 = arith.constant 0 : i32
    return %arg0, %c0_i32, %c0_i32_0 : i32, i32, i32
  }
  func.func @transform_1(%arg0: i32) -> (i32, i32, i32) {
    %c0_i32 = arith.constant 0 : i32
    %c0_i32_0 = arith.constant 0 : i32
    %c0_i32_1 = arith.constant 0 : i32
    return %arg0, %c0_i32, %c0_i32_0 : i32, i32, i32
  }
  func.func @transform_2(%arg0: i32) -> (i32, i32) {
    %c0_i32 = arith.constant 0 : i32
    %c0_i32_0 = arith.constant 0 : i32
    %c0_i32_1 = arith.constant 0 : i32
    return %c0_i32, %c0_i32_0 : i32, i32
  }
  func.func @transform_3(%arg0: i32) -> (i32, i32) {
    %c0_i32 = arith.constant 0 : i32
    %c0_i32_0 = arith.constant 0 : i32
    %c0_i32_1 = arith.constant 0 : i32
    return %c0_i32, %c0_i32_0 : i32, i32
  }
  func.func @transform_4(%arg0: i32) -> (i32, i32) {
    %c0_i32 = arith.constant 0 : i32
    %c0_i32_0 = arith.constant 0 : i32
    %c0_i32_1 = arith.constant 0 : i32
    return %c0_i32, %c0_i32_0 : i32, i32
  }
  func.func @transform_5(%arg0: i32) -> (i32, i32) {
    %c0_i32 = arith.constant 0 : i32
    %c0_i32_0 = arith.constant 0 : i32
    %c0_i32_1 = arith.constant 0 : i32
    return %c0_i32, %c0_i32_0 : i32, i32
  }
  func.func @transform_6(%arg0: i32) -> (i32, i32) {
    %c0_i32 = arith.constant 0 : i32
    %c0_i32_0 = arith.constant 0 : i32
    %c0_i32_1 = arith.constant 0 : i32
    return %c0_i32, %c0_i32_0 : i32, i32
  }
  func.func @transform_7(%arg0: i32) -> (i32, i32, i32) {
    %c0_i32 = arith.constant 0 : i32
    %c0_i32_0 = arith.constant 0 : i32
    %c0_i32_1 = arith.constant 0 : i32
    %c0_i32_2 = arith.constant 0 : i32
    return %c0_i32, %c0_i32_0, %c0_i32_1 : i32, i32, i32
  }
  func.func @transform_8(%arg0: i32) -> (i32, i32) {
    %c0_i32 = arith.constant 0 : i32
    %c0_i32_0 = arith.constant 0 : i32
    %c0_i32_1 = arith.constant 0 : i32
    return %c0_i32, %c0_i32_0 : i32, i32
  }
  func.func @transform_9(%arg0: i32) -> (i32, i32, i32) {
    %c0_i32 = arith.constant 0 : i32
    %c0_i32_0 = arith.constant 0 : i32
    %c0_i32_1 = arith.constant 0 : i32
    return %arg0, %c0_i32, %c0_i32_0 : i32, i32, i32
  }
}

module attributes {stable_mosaic.version = 11 : i64} {
  func.func @pack_attention_kernel(%arg0: i32, %arg1: memref<2x8x128xf32, #tpu.memory_space<vmem>>, %arg2: memref<2x16x128xf32, #tpu.memory_space<vmem>>, %arg3: memref<8x16xf32, #tpu.memory_space<vmem>>, %arg4: memref<128x128xf32, #tpu.memory_space<vmem>>, %arg5: memref<1x128xf32, #tpu.memory_space<vmem>>, %arg6: memref<128x256xf32, #tpu.memory_space<vmem>>, %arg7: memref<1x256xf32, #tpu.memory_space<vmem>>, %arg8: memref<4x32x128xf32, #tpu.memory_space<vmem>>, %arg9: memref<1x128xf32, #tpu.memory_space<vmem>>, %arg10: memref<2x8x128xf32, #tpu.memory_space<vmem>>) attributes {dimension_semantics = [#tpu.dimension_semantics<parallel>], iteration_bounds = array<i64: 2>, scalar_prefetch = 0 : i64, scratch_operands = 0 : i64, tpu.core_type = #tpu.core_type<tc>, window_params = [{transform_indices = @transform_0, window_bounds = array<i64: 2, 8, 128>}, {transform_indices = @transform_1, window_bounds = array<i64: 2, 16, 128>}, {pipeline_mode = #tpu.pipeline_mode<synchronous>, transform_indices = @transform_2, window_bounds = array<i64: 8, 16>}, {pipeline_mode = #tpu.pipeline_mode<synchronous>, transform_indices = @transform_3, window_bounds = array<i64: 128, 128>}, {pipeline_mode = #tpu.pipeline_mode<synchronous>, transform_indices = @transform_4, window_bounds = array<i64: 1, 128>}, {pipeline_mode = #tpu.pipeline_mode<synchronous>, transform_indices = @transform_5, window_bounds = array<i64: 128, 256>}, {pipeline_mode = #tpu.pipeline_mode<synchronous>, transform_indices = @transform_6, window_bounds = array<i64: 1, 256>}, {pipeline_mode = #tpu.pipeline_mode<synchronous>, transform_indices = @transform_7, window_bounds = array<i64: 4, 32, 128>}, {pipeline_mode = #tpu.pipeline_mode<synchronous>, transform_indices = @transform_8, window_bounds = array<i64: 1, 128>}, {transform_indices = @transform_9, window_bounds = array<i64: 2, 8, 128>}]} {
    %c0 = arith.constant 0 : index
    %c0_0 = arith.constant 0 : index
    %c0_1 = arith.constant 0 : index
    %0 = vector.load %arg1[%c0, %c0_0, %c0_1] : memref<2x8x128xf32, #tpu.memory_space<vmem>>, vector<2x8x128xf32>
    %1 = vector.shape_cast %0 : vector<2x8x128xf32> to vector<16x128xf32>
    %c0_2 = arith.constant 0 : index
    %c0_3 = arith.constant 0 : index
    %c0_4 = arith.constant 0 : index
    %2 = vector.load %arg2[%c0_2, %c0_3, %c0_4] : memref<2x16x128xf32, #tpu.memory_space<vmem>>, vector<2x16x128xf32>
    %3 = vector.shape_cast %2 : vector<2x16x128xf32> to vector<32x128xf32>
    %c0_5 = arith.constant 0 : index
    %c0_6 = arith.constant 0 : index
    %4 = vector.load %arg4[%c0_5, %c0_6] : memref<128x128xf32, #tpu.memory_space<vmem>>, vector<128x128xf32>
    %cst = arith.constant dense<0.000000e+00> : vector<16x128xf32>
    %5 = tpu.matmul %1, %4, %cst {dimension_numbers = #tpu.dot_dimension_numbers<[1], [0], [0], [1], [0, 0, 1, 1], [], []>} : vector<16x128xf32>, vector<128x128xf32>, vector<16x128xf32> -> vector<16x128xf32>
    %c0_7 = arith.constant 0 : index
    %c0_8 = arith.constant 0 : index
    %6 = vector.load %arg5[%c0_7, %c0_8] : memref<1x128xf32, #tpu.memory_space<vmem>>, vector<1x128xf32>
    %7 = vector.broadcast %6 : vector<1x128xf32> to vector<16x128xf32>
    %8 = arith.addf %5, %7 : vector<16x128xf32>
    %c0_9 = arith.constant 0 : index
    %c0_10 = arith.constant 0 : index
    %9 = vector.load %arg6[%c0_9, %c0_10] : memref<128x256xf32, #tpu.memory_space<vmem>>, vector<128x256xf32>
    %cst_11 = arith.constant dense<0.000000e+00> : vector<32x256xf32>
    %10 = tpu.matmul %3, %9, %cst_11 {dimension_numbers = #tpu.dot_dimension_numbers<[1], [0], [0], [1], [0, 0, 1, 1], [], []>} : vector<32x128xf32>, vector<128x256xf32>, vector<32x256xf32> -> vector<32x256xf32>
    %c0_12 = arith.constant 0 : index
    %c0_13 = arith.constant 0 : index
    %11 = vector.load %arg7[%c0_12, %c0_13] : memref<1x256xf32, #tpu.memory_space<vmem>>, vector<1x256xf32>
    %12 = vector.broadcast %11 : vector<1x256xf32> to vector<32x256xf32>
    %13 = arith.addf %10, %12 : vector<32x256xf32>
    %c0_14 = arith.constant 0 : index
    %c0_15 = arith.constant 0 : index
    %14 = vector.load %arg3[%c0_14, %c0_15] : memref<8x16xf32, #tpu.memory_space<vmem>>, vector<8x16xf32>
    %15 = vector.shape_cast %14 : vector<8x16xf32> to vector<1x8x16xf32>
    %16 = vector.shape_cast %15 : vector<1x8x16xf32> to vector<1x8x16xf32>
    %17 = vector.broadcast %16 : vector<1x8x16xf32> to vector<2x8x16xf32>
    %c0_16 = arith.constant 0 : index
    %c0_17 = arith.constant 0 : index
    %18 = vector.load %arg9[%c0_16, %c0_17] : memref<1x128xf32, #tpu.memory_space<vmem>>, vector<1x128xf32>
    %19 = vector.shape_cast %18 : vector<1x128xf32> to vector<1x128xf32>
    %20 = vector.broadcast %19 : vector<1x128xf32> to vector<16x128xf32>
    %21 = vector.extract_strided_slice %8 {offsets = [0, 0], sizes = [16, 32], strides = [1, 1]} : vector<16x128xf32> to vector<16x32xf32>
    %22 = vector.shape_cast %21 : vector<16x32xf32> to vector<2x8x32xf32>
    %23 = vector.extract_strided_slice %13 {offsets = [0, 0], sizes = [32, 32], strides = [1, 1]} : vector<32x256xf32> to vector<32x32xf32>
    %24 = vector.shape_cast %23 : vector<32x32xf32> to vector<2x16x32xf32>
    %25 = vector.extract_strided_slice %13 {offsets = [0, 128], sizes = [32, 32], strides = [1, 1]} : vector<32x256xf32> to vector<32x32xf32>
    %26 = vector.shape_cast %25 : vector<32x32xf32> to vector<2x16x32xf32>
    "tpu.trace_start"() <{level = 10 : i32, message = "bqd,bkd->bqk"}> : () -> ()
    %cst_18 = arith.constant dense<0.000000e+00> : vector<2x8x16xf32>
    %27 = tpu.matmul %22, %24, %cst_18 {dimension_numbers = #tpu.dot_dimension_numbers<[2], [2], [1], [1], [0, 0, 0, 1, 1, 1], [0], [0]>} : vector<2x8x32xf32>, vector<2x16x32xf32>, vector<2x8x16xf32> -> vector<2x8x16xf32>
    "tpu.trace_stop"() : () -> ()
    %28 = arith.addf %27, %17 : vector<2x8x16xf32>
    %cst_19 = arith.constant dense<0xFF800000> : vector<2x8xf32>
    %29 = vector.multi_reduction <maximumf>, %28, %cst_19 [2] : vector<2x8x16xf32> to vector<2x8xf32>
    %30 = vector.shape_cast %29 : vector<2x8xf32> to vector<2x8x1xf32>
    %31 = vector.broadcast %30 : vector<2x8x1xf32> to vector<2x8x16xf32>
    %32 = arith.subf %28, %31 : vector<2x8x16xf32>
    %33 = math.exp %32 : vector<2x8x16xf32>
    %cst_20 = arith.constant dense<0.000000e+00> : vector<2x8xf32>
    %34 = vector.multi_reduction <add>, %33, %cst_20 [2] : vector<2x8x16xf32> to vector<2x8xf32>
    %35 = vector.shape_cast %34 : vector<2x8xf32> to vector<2x8x1xf32>
    %36 = tpu.reciprocal %35 {approx = true} : vector<2x8x1xf32> -> vector<2x8x1xf32>
    %37 = vector.broadcast %36 : vector<2x8x1xf32> to vector<2x8x16xf32>
    %38 = arith.mulf %33, %37 : vector<2x8x16xf32>
    "tpu.trace_start"() <{level = 10 : i32, message = "bqk,bkd->bqd"}> : () -> ()
    %cst_21 = arith.constant dense<0.000000e+00> : vector<2x8x32xf32>
    %39 = tpu.matmul %38, %26, %cst_21 {dimension_numbers = #tpu.dot_dimension_numbers<[2], [1], [1], [2], [0, 0, 0, 1, 1, 2], [0], [0]>} : vector<2x8x16xf32>, vector<2x16x32xf32>, vector<2x8x32xf32> -> vector<2x8x32xf32>
    "tpu.trace_stop"() : () -> ()
    %40 = vector.shape_cast %39 : vector<2x8x32xf32> to vector<16x32xf32>
    %c0_22 = arith.constant 0 : index
    %c0_23 = arith.constant 0 : index
    %c0_24 = arith.constant 0 : index
    %41 = vector.load %arg8[%c0_22, %c0_23, %c0_24] : memref<4x32x128xf32, #tpu.memory_space<vmem>>, vector<1x32x128xf32>
    %42 = vector.shape_cast %41 : vector<1x32x128xf32> to vector<32x128xf32>
    %cst_25 = arith.constant dense<0.000000e+00> : vector<16x128xf32>
    %43 = tpu.matmul %40, %42, %cst_25 {dimension_numbers = #tpu.dot_dimension_numbers<[1], [0], [0], [1], [0, 0, 1, 1], [], []>} : vector<16x32xf32>, vector<32x128xf32>, vector<16x128xf32> -> vector<16x128xf32>
    %44 = arith.addf %20, %43 : vector<16x128xf32>
    %45 = vector.extract_strided_slice %8 {offsets = [0, 32], sizes = [16, 32], strides = [1, 1]} : vector<16x128xf32> to vector<16x32xf32>
    %46 = vector.shape_cast %45 : vector<16x32xf32> to vector<2x8x32xf32>
    %47 = vector.extract_strided_slice %13 {offsets = [0, 32], sizes = [32, 32], strides = [1, 1]} : vector<32x256xf32> to vector<32x32xf32>
    %48 = vector.shape_cast %47 : vector<32x32xf32> to vector<2x16x32xf32>
    %49 = vector.extract_strided_slice %13 {offsets = [0, 160], sizes = [32, 32], strides = [1, 1]} : vector<32x256xf32> to vector<32x32xf32>
    %50 = vector.shape_cast %49 : vector<32x32xf32> to vector<2x16x32xf32>
    "tpu.trace_start"() <{level = 10 : i32, message = "bqd,bkd->bqk"}> : () -> ()
    %cst_26 = arith.constant dense<0.000000e+00> : vector<2x8x16xf32>
    %51 = tpu.matmul %46, %48, %cst_26 {dimension_numbers = #tpu.dot_dimension_numbers<[2], [2], [1], [1], [0, 0, 0, 1, 1, 1], [0], [0]>} : vector<2x8x32xf32>, vector<2x16x32xf32>, vector<2x8x16xf32> -> vector<2x8x16xf32>
    "tpu.trace_stop"() : () -> ()
    %52 = arith.addf %51, %17 : vector<2x8x16xf32>
    %cst_27 = arith.constant dense<0xFF800000> : vector<2x8xf32>
    %53 = vector.multi_reduction <maximumf>, %52, %cst_27 [2] : vector<2x8x16xf32> to vector<2x8xf32>
    %54 = vector.shape_cast %53 : vector<2x8xf32> to vector<2x8x1xf32>
    %55 = vector.broadcast %54 : vector<2x8x1xf32> to vector<2x8x16xf32>
    %56 = arith.subf %52, %55 : vector<2x8x16xf32>
    %57 = math.exp %56 : vector<2x8x16xf32>
    %cst_28 = arith.constant dense<0.000000e+00> : vector<2x8xf32>
    %58 = vector.multi_reduction <add>, %57, %cst_28 [2] : vector<2x8x16xf32> to vector<2x8xf32>
    %59 = vector.shape_cast %58 : vector<2x8xf32> to vector<2x8x1xf32>
    %60 = tpu.reciprocal %59 {approx = true} : vector<2x8x1xf32> -> vector<2x8x1xf32>
    %61 = vector.broadcast %60 : vector<2x8x1xf32> to vector<2x8x16xf32>
    %62 = arith.mulf %57, %61 : vector<2x8x16xf32>
    "tpu.trace_start"() <{level = 10 : i32, message = "bqk,bkd->bqd"}> : () -> ()
    %cst_29 = arith.constant dense<0.000000e+00> : vector<2x8x32xf32>
    %63 = tpu.matmul %62, %50, %cst_29 {dimension_numbers = #tpu.dot_dimension_numbers<[2], [1], [1], [2], [0, 0, 0, 1, 1, 2], [0], [0]>} : vector<2x8x16xf32>, vector<2x16x32xf32>, vector<2x8x32xf32> -> vector<2x8x32xf32>
    "tpu.trace_stop"() : () -> ()
    %64 = vector.shape_cast %63 : vector<2x8x32xf32> to vector<16x32xf32>
    %c1 = arith.constant 1 : index
    %c0_30 = arith.constant 0 : index
    %c0_31 = arith.constant 0 : index
    %65 = vector.load %arg8[%c1, %c0_30, %c0_31] : memref<4x32x128xf32, #tpu.memory_space<vmem>>, vector<1x32x128xf32>
    %66 = vector.shape_cast %65 : vector<1x32x128xf32> to vector<32x128xf32>
    %cst_32 = arith.constant dense<0.000000e+00> : vector<16x128xf32>
    %67 = tpu.matmul %64, %66, %cst_32 {dimension_numbers = #tpu.dot_dimension_numbers<[1], [0], [0], [1], [0, 0, 1, 1], [], []>} : vector<16x32xf32>, vector<32x128xf32>, vector<16x128xf32> -> vector<16x128xf32>
    %68 = arith.addf %44, %67 : vector<16x128xf32>
    %69 = vector.extract_strided_slice %8 {offsets = [0, 64], sizes = [16, 32], strides = [1, 1]} : vector<16x128xf32> to vector<16x32xf32>
    %70 = vector.shape_cast %69 : vector<16x32xf32> to vector<2x8x32xf32>
    %71 = vector.extract_strided_slice %13 {offsets = [0, 64], sizes = [32, 32], strides = [1, 1]} : vector<32x256xf32> to vector<32x32xf32>
    %72 = vector.shape_cast %71 : vector<32x32xf32> to vector<2x16x32xf32>
    %73 = vector.extract_strided_slice %13 {offsets = [0, 192], sizes = [32, 32], strides = [1, 1]} : vector<32x256xf32> to vector<32x32xf32>
    %74 = vector.shape_cast %73 : vector<32x32xf32> to vector<2x16x32xf32>
    "tpu.trace_start"() <{level = 10 : i32, message = "bqd,bkd->bqk"}> : () -> ()
    %cst_33 = arith.constant dense<0.000000e+00> : vector<2x8x16xf32>
    %75 = tpu.matmul %70, %72, %cst_33 {dimension_numbers = #tpu.dot_dimension_numbers<[2], [2], [1], [1], [0, 0, 0, 1, 1, 1], [0], [0]>} : vector<2x8x32xf32>, vector<2x16x32xf32>, vector<2x8x16xf32> -> vector<2x8x16xf32>
    "tpu.trace_stop"() : () -> ()
    %76 = arith.addf %75, %17 : vector<2x8x16xf32>
    %cst_34 = arith.constant dense<0xFF800000> : vector<2x8xf32>
    %77 = vector.multi_reduction <maximumf>, %76, %cst_34 [2] : vector<2x8x16xf32> to vector<2x8xf32>
    %78 = vector.shape_cast %77 : vector<2x8xf32> to vector<2x8x1xf32>
    %79 = vector.broadcast %78 : vector<2x8x1xf32> to vector<2x8x16xf32>
    %80 = arith.subf %76, %79 : vector<2x8x16xf32>
    %81 = math.exp %80 : vector<2x8x16xf32>
    %cst_35 = arith.constant dense<0.000000e+00> : vector<2x8xf32>
    %82 = vector.multi_reduction <add>, %81, %cst_35 [2] : vector<2x8x16xf32> to vector<2x8xf32>
    %83 = vector.shape_cast %82 : vector<2x8xf32> to vector<2x8x1xf32>
    %84 = tpu.reciprocal %83 {approx = true} : vector<2x8x1xf32> -> vector<2x8x1xf32>
    %85 = vector.broadcast %84 : vector<2x8x1xf32> to vector<2x8x16xf32>
    %86 = arith.mulf %81, %85 : vector<2x8x16xf32>
    "tpu.trace_start"() <{level = 10 : i32, message = "bqk,bkd->bqd"}> : () -> ()
    %cst_36 = arith.constant dense<0.000000e+00> : vector<2x8x32xf32>
    %87 = tpu.matmul %86, %74, %cst_36 {dimension_numbers = #tpu.dot_dimension_numbers<[2], [1], [1], [2], [0, 0, 0, 1, 1, 2], [0], [0]>} : vector<2x8x16xf32>, vector<2x16x32xf32>, vector<2x8x32xf32> -> vector<2x8x32xf32>
    "tpu.trace_stop"() : () -> ()
    %88 = vector.shape_cast %87 : vector<2x8x32xf32> to vector<16x32xf32>
    %c2 = arith.constant 2 : index
    %c0_37 = arith.constant 0 : index
    %c0_38 = arith.constant 0 : index
    %89 = vector.load %arg8[%c2, %c0_37, %c0_38] : memref<4x32x128xf32, #tpu.memory_space<vmem>>, vector<1x32x128xf32>
    %90 = vector.shape_cast %89 : vector<1x32x128xf32> to vector<32x128xf32>
    %cst_39 = arith.constant dense<0.000000e+00> : vector<16x128xf32>
    %91 = tpu.matmul %88, %90, %cst_39 {dimension_numbers = #tpu.dot_dimension_numbers<[1], [0], [0], [1], [0, 0, 1, 1], [], []>} : vector<16x32xf32>, vector<32x128xf32>, vector<16x128xf32> -> vector<16x128xf32>
    %92 = arith.addf %68, %91 : vector<16x128xf32>
    %93 = vector.extract_strided_slice %8 {offsets = [0, 96], sizes = [16, 32], strides = [1, 1]} : vector<16x128xf32> to vector<16x32xf32>
    %94 = vector.shape_cast %93 : vector<16x32xf32> to vector<2x8x32xf32>
    %95 = vector.extract_strided_slice %13 {offsets = [0, 96], sizes = [32, 32], strides = [1, 1]} : vector<32x256xf32> to vector<32x32xf32>
    %96 = vector.shape_cast %95 : vector<32x32xf32> to vector<2x16x32xf32>
    %97 = vector.extract_strided_slice %13 {offsets = [0, 224], sizes = [32, 32], strides = [1, 1]} : vector<32x256xf32> to vector<32x32xf32>
    %98 = vector.shape_cast %97 : vector<32x32xf32> to vector<2x16x32xf32>
    "tpu.trace_start"() <{level = 10 : i32, message = "bqd,bkd->bqk"}> : () -> ()
    %cst_40 = arith.constant dense<0.000000e+00> : vector<2x8x16xf32>
    %99 = tpu.matmul %94, %96, %cst_40 {dimension_numbers = #tpu.dot_dimension_numbers<[2], [2], [1], [1], [0, 0, 0, 1, 1, 1], [0], [0]>} : vector<2x8x32xf32>, vector<2x16x32xf32>, vector<2x8x16xf32> -> vector<2x8x16xf32>
    "tpu.trace_stop"() : () -> ()
    %100 = arith.addf %99, %17 : vector<2x8x16xf32>
    %cst_41 = arith.constant dense<0xFF800000> : vector<2x8xf32>
    %101 = vector.multi_reduction <maximumf>, %100, %cst_41 [2] : vector<2x8x16xf32> to vector<2x8xf32>
    %102 = vector.shape_cast %101 : vector<2x8xf32> to vector<2x8x1xf32>
    %103 = vector.broadcast %102 : vector<2x8x1xf32> to vector<2x8x16xf32>
    %104 = arith.subf %100, %103 : vector<2x8x16xf32>
    %105 = math.exp %104 : vector<2x8x16xf32>
    %cst_42 = arith.constant dense<0.000000e+00> : vector<2x8xf32>
    %106 = vector.multi_reduction <add>, %105, %cst_42 [2] : vector<2x8x16xf32> to vector<2x8xf32>
    %107 = vector.shape_cast %106 : vector<2x8xf32> to vector<2x8x1xf32>
    %108 = tpu.reciprocal %107 {approx = true} : vector<2x8x1xf32> -> vector<2x8x1xf32>
    %109 = vector.broadcast %108 : vector<2x8x1xf32> to vector<2x8x16xf32>
    %110 = arith.mulf %105, %109 : vector<2x8x16xf32>
    "tpu.trace_start"() <{level = 10 : i32, message = "bqk,bkd->bqd"}> : () -> ()
    %cst_43 = arith.constant dense<0.000000e+00> : vector<2x8x32xf32>
    %111 = tpu.matmul %110, %98, %cst_43 {dimension_numbers = #tpu.dot_dimension_numbers<[2], [1], [1], [2], [0, 0, 0, 1, 1, 2], [0], [0]>} : vector<2x8x16xf32>, vector<2x16x32xf32>, vector<2x8x32xf32> -> vector<2x8x32xf32>
    "tpu.trace_stop"() : () -> ()
    %112 = vector.shape_cast %111 : vector<2x8x32xf32> to vector<16x32xf32>
    %c3 = arith.constant 3 : index
    %c0_44 = arith.constant 0 : index
    %c0_45 = arith.constant 0 : index
    %113 = vector.load %arg8[%c3, %c0_44, %c0_45] : memref<4x32x128xf32, #tpu.memory_space<vmem>>, vector<1x32x128xf32>
    %114 = vector.shape_cast %113 : vector<1x32x128xf32> to vector<32x128xf32>
    %cst_46 = arith.constant dense<0.000000e+00> : vector<16x128xf32>
    %115 = tpu.matmul %112, %114, %cst_46 {dimension_numbers = #tpu.dot_dimension_numbers<[1], [0], [0], [1], [0, 0, 1, 1], [], []>} : vector<16x32xf32>, vector<32x128xf32>, vector<16x128xf32> -> vector<16x128xf32>
    %116 = arith.addf %92, %115 : vector<16x128xf32>
    %117 = vector.shape_cast %116 : vector<16x128xf32> to vector<2x8x128xf32>
    %c0_47 = arith.constant 0 : index
    %c0_48 = arith.constant 0 : index
    %c0_49 = arith.constant 0 : index
    %118 = vector.load %arg10[%c0_47, %c0_48, %c0_49] : memref<2x8x128xf32, #tpu.memory_space<vmem>>, vector<2x8x128xf32>
    tpu.vector_store %arg10[%c0_47, %c0_48, %c0_49], %117 {strides = array<i32>} : memref<2x8x128xf32, #tpu.memory_space<vmem>>, vector<2x8x128xf32>,
    return
  }
  func.func @transform_0(%arg0: i32) -> (i32, i32, i32) {
    %c0_i32 = arith.constant 0 : i32
    %c0_i32_0 = arith.constant 0 : i32
    %c0_i32_1 = arith.constant 0 : i32
    return %arg0, %c0_i32, %c0_i32_0 : i32, i32, i32
  }
  func.func @transform_1(%arg0: i32) -> (i32, i32, i32) {
    %c0_i32 = arith.constant 0 : i32
    %c0_i32_0 = arith.constant 0 : i32
    %c0_i32_1 = arith.constant 0 : i32
    return %arg0, %c0_i32, %c0_i32_0 : i32, i32, i32
  }
  func.func @transform_2(%arg0: i32) -> (i32, i32) {
    %c0_i32 = arith.constant 0 : i32
    %c0_i32_0 = arith.constant 0 : i32
    %c0_i32_1 = arith.constant 0 : i32
    return %c0_i32, %c0_i32_0 : i32, i32
  }
  func.func @transform_3(%arg0: i32) -> (i32, i32) {
    %c0_i32 = arith.constant 0 : i32
    %c0_i32_0 = arith.constant 0 : i32
    %c0_i32_1 = arith.constant 0 : i32
    return %c0_i32, %c0_i32_0 : i32, i32
  }
  func.func @transform_4(%arg0: i32) -> (i32, i32) {
    %c0_i32 = arith.constant 0 : i32
    %c0_i32_0 = arith.constant 0 : i32
    %c0_i32_1 = arith.constant 0 : i32
    return %c0_i32, %c0_i32_0 : i32, i32
  }
  func.func @transform_5(%arg0: i32) -> (i32, i32) {
    %c0_i32 = arith.constant 0 : i32
    %c0_i32_0 = arith.constant 0 : i32
    %c0_i32_1 = arith.constant 0 : i32
    return %c0_i32, %c0_i32_0 : i32, i32
  }
  func.func @transform_6(%arg0: i32) -> (i32, i32) {
    %c0_i32 = arith.constant 0 : i32
    %c0_i32_0 = arith.constant 0 : i32
    %c0_i32_1 = arith.constant 0 : i32
    return %c0_i32, %c0_i32_0 : i32, i32
  }
  func.func @transform_7(%arg0: i32) -> (i32, i32, i32) {
    %c0_i32 = arith.constant 0 : i32
    %c0_i32_0 = arith.constant 0 : i32
    %c0_i32_1 = arith.constant 0 : i32
    %c0_i32_2 = arith.constant 0 : i32
    return %c0_i32, %c0_i32_0, %c0_i32_1 : i32, i32, i32
  }
  func.func @transform_8(%arg0: i32) -> (i32, i32) {
    %c0_i32 = arith.constant 0 : i32
    %c0_i32_0 = arith.constant 0 : i32
    %c0_i32_1 = arith.constant 0 : i32
    return %c0_i32, %c0_i32_0 : i32, i32
  }
  func.func @transform_9(%arg0: i32) -> (i32, i32, i32) {
    %c0_i32 = arith.constant 0 : i32
    %c0_i32_0 = arith.constant 0 : i32
    %c0_i32_1 = arith.constant 0 : i32
    return %arg0, %c0_i32, %c0_i32_0 : i32, i32, i32
  }
}

</mosaic_0001>

<bundles_post_ra>
// kernel: tpu_custom_call.1
= control target key start
LH: loop header
LB: loop body
LE: loop exit
PB: predicated region body
PF: predicated region fallthrough
CT: control target
= control target key end

     0   :  { %s3900_s0 = inlined_call_operand.hbm [shape: f32[4,8,128], index: 0, kind: input, shape index: {}]   ;;  %s3901_s1 = inlined_call_operand.hbm [shape: f32[4,16,128], index: 1, kind: input, shape index: {}]   ;;  %s3902_s2 = inlined_call_operand.hbm [shape: f32[8,16], index: 2, kind: input, shape index: {}]   ;;  %s3903_s3 = inlined_call_operand.hbm [shape: f32[128,128], index: 3, kind: input, shape index: {}]   ;;  %s3904_s4 = inlined_call_operand.vmem [shape: f32[1,128], index: 4, kind: input, shape index: {}]   ;;  %s3905_s5 = inlined_call_operand.hbm [shape: f32[128,256], index: 5, kind: input, shape index: {}]   ;;  %s3906_s6 = inlined_call_operand.vmem [shape: f32[1,256], index: 6, kind: input, shape index: {}]   ;;  %s3907_s7 = inlined_call_operand.hbm [shape: f32[4,32,128], index: 7, kind: input, shape index: {}]   ;;  %s3908_s8 = inlined_call_operand.vmem [shape: f32[1,128], index: 8, kind: input, shape index: {}]   ;;  %s3909_s9 = inlined_call_operand.hbm [shape: f32[4,8,128], index: 9, kind: output, shape index: {}]  }
   0x1   :  { %3918 = sst [smem:[#allocation22_spill]] %s3900_s0 }
   0x2   :  { %3919 = sst [smem:[#allocation23_spill]] %s3902_s2 }
   0x3   :  { %3920 = sst [smem:[#allocation24_spill]] %s3903_s3 }
   0x4   :  { %3921 = sst [smem:[#allocation25_spill]] %s3905_s5 }
   0x5   :  { %3922 = sst [smem:[#allocation26_spill]] %s3907_s7 }
   0x6   :  { %14 = vsyncpa [#allocation3], 0 }
   0x7   :  { %16 = vsyncpa [#allocation3 + $0x1], 0 }
   0x8   :  { %17 = vsyncpa [#allocation6], 0 }
   0x9   :  { %19 = vsyncpa [#allocation6 + $0x1], 0 }
   0xa   :  { %20 = vsyncpa [#allocation9], 0 }
   0xb   :  { %21 = vsyncpa [#allocation12], 0 }
   0xc   :  { %22 = vsyncpa [#allocation4], 0 }
   0xd   :  { %24 = vsyncpa [#allocation4 + $0x1], 0  ;;  %s3360_s30 = smov 0   ;;  %s3362_s10 = smov 0  }
   0xe   :  { %s3364_s11 = smov 0   ;;  %s3366_s12 = smov 0  }
   0xf LB: > { %3923 = sst [smem:[#allocation20_spill]] %s3286_s11  ;;  %s3381_s13 = sadd.s32 4294967295, %s3290_s12   ;;  %s3290_s12 = sphi %s3366_s12, %s3955_s12   ;;  %s3286_s11 = sphi %s3364_s11, %s3952_s11   ;;  %s3282_s10 = sphi %s3362_s10, %s3954_s10   ;;  %s3278_s30 = sphi %s3360_s30, %s3953_s30  }
  0x10   : > { %s2561_s14 = sadd.s32 4294967294, %s3290_s12   ;;  %p50_p0 = scmp.ne.s32.totalorder %s3282_s10, %s3278_s30 }
  0x11   : > { %p3910_p1 = scmp.eq.s32.totalorder %s3381_s13, 0  ;;  %p253_p3 = scmp.eq.s32.totalorder %s2561_s14, 1 }
  0x12   : > { %p2562_p5 = scmp.ge.s32.totalorder %s3290_s12, 1  ;;  %p260_p7 = scmp.lt.s32.totalorder %s3290_s12, 3 }
  0x13   : > { %p3390_p4 = por %p3910_p1, %p50_p0  ;;  %p3395_p6 = por %p253_p3, %p50_p0 }
  0x14   : > { %p3400_p8 = pnand %p2562_p5, %p260_p7  ;;  %s3292_s18 = smov [#allocation7]  }
  0x15   : > { %s3924_s15 = scalar_select %p3390_p4, 1, 0 }
  0x16   : > { %s3925_s16 = scalar_select %p3395_p6, 1, 0 }
  0x17   : > { %s3926_s17 = scalar_select %p3400_p8, 1, 0 }
  0x18   : > { %s273_s19 = sshll.u32 %s3292_s18, 4  ;;  %p2937_p10 = pneg %p3400_p8  ;;  %s274_s19 = int_to_ptr.vmem [resolvable:$true] %s273_s19 }
  0x19   : > { %s3293_s20 = smov [#allocation8]   ;;  %s3294_s23 = smov [#allocation10]  }
  0x1a   : > { %s283_s21 = sshll.u32 %s3293_s20, 4  ;;  %p3409_p11 = pnand %p2937_p10, %p3910_p1  ;;  %s284_s21 = int_to_ptr.vmem [resolvable:$true] %s283_s21 }
  0x1b   : > { %s299_s24 = sshll.u32 %s3294_s23, 4  ;;  %s3061_s25 = scalar_lea.vmem %s274_s19, 128  ;;  %s300_s24 = int_to_ptr.vmem [resolvable:$true] %s299_s24 }
  0x1c   : > { %p3052_p12 = pneg %p3409_p11  ;;  %p3062_p13 = scmp.ne.s32.totalorder %s274_s19, %s3061_s25 }
  0x1d   : > { %p3069_p5 = scmp.lt.s32.totalorder %s274_s19, %s274_s19  ;;  %p3070_p7 = scmp.lt.s32.totalorder %s3061_s25, %s3061_s25 }
  0x1e   : > { %p3064_p0 = pnand %p3062_p13, %p3052_p12 }
  0x1f   : > { %p3071_p9 = por %p3070_p7, %p3069_p5 }
  0x20   : > { %p3065_p3 = pneg %p3064_p0 }
  0x22   : > { %p3072_p10 = pnand %p3071_p9, %p3065_p3 }
  0x24   : > { %3075 = shalt.err (!%p3072_p10)
}
  0x25   : > { %s3928_s2 = sld [smem:[#allocation23_spill]]  ;;  %s3087_s28 = scalar_lea.vmem %s284_s21, 2048 }
  0x26   : > { %p3088_p1 = scmp.ne.s32.totalorder %s284_s21, %s3087_s28  ;;  %p3095_p13 = scmp.lt.s32.totalorder %s284_s21, %s284_s21 }
  0x27   : > { %p3096_p0 = scmp.lt.s32.totalorder %s3087_s28, %s3087_s28 }
  0x28   : > { %p3090_p2 = pnand %p3088_p1, %p3052_p12 }
  0x29   : > { %p3097_p4 = por %p3096_p0, %p3095_p13 }
  0x2a   : > { %p3091_p6 = pneg %p3090_p2 }
  0x2b   : > { %2940 = dma.hbm_to_vmem [thread:$0]  (!%p3409_p11), %s3928_s2, 128, %s274_s19, [#allocation6]  }
  0x2c   : > { %p3098_p8 = pnand %p3097_p4, %p3091_p6 }
  0x2e   : > { %3101 = shalt.err (!%p3098_p8)
}
  0x2f   : > { %s3913_s29 = smov 128   ;;  %s3915_s14 = smov 8  }
  0x30   : > { %s3929_s3 = sld [smem:[#allocation24_spill]]  ;;  %s3113_s20 = scalar_lea.vmem %s300_s24, 4096 }
  0x31   : > { %p3114_p1 = scmp.ne.s32.totalorder %s300_s24, %s3113_s20  ;;  %p3121_p6 = scmp.lt.s32.totalorder %s300_s24, %s300_s24 }
  0x32   : > { %p3122_p8 = scmp.lt.s32.totalorder %s3113_s20, %s3113_s20 }
  0x33   : > { %p3116_p2 = pnand %p3114_p1, %p3052_p12 }
  0x34   : > { %p3123_p9 = por %p3122_p8, %p3121_p6 }
  0x35   : > { %p3117_p4 = pneg %p3116_p2 }
  0x36   : > { %2943 = dma.hbm_to_vmem [thread:$0]  (!%p3409_p11), %s3929_s3, 2048, %s284_s21, [#allocation9], %s3913_s29, %s3913_s29, %s3915_s14  }
  0x37   : > { %p3124_p3 = pnand %p3123_p9, %p3117_p4 }
  0x39   : > { %3127 = shalt.err (!%p3124_p3)
}
  0x3a   : > { %s3297_s23 = smov 256   ;;  %s3298_s25 = smov 16  }
  0x3b   : > { %s3930_s5 = sld [smem:[#allocation25_spill]]  ;;  %s3299_s21 = smov [#allocation11]  }
  0x3c   : > { %s315_s28 = sshll.u32 %s3299_s21, 4  ;;  %s316_s28 = int_to_ptr.vmem [resolvable:$true] %s315_s28 }
  0x3d   : > { %s3139_s18 = scalar_lea.vmem %s316_s28, 2048  ;;  %p3147_p13 = scmp.lt.s32.totalorder %s316_s28, %s316_s28 }
  0x3e   : > { %p3140_p5 = scmp.ne.s32.totalorder %s316_s28, %s3139_s18  ;;  %p3148_p0 = scmp.lt.s32.totalorder %s3139_s18, %s3139_s18 }
  0x40   : > { %p3142_p7 = pnand %p3140_p5, %p3052_p12  ;;  %p3149_p1 = por %p3148_p0, %p3147_p13 }
  0x41   : > { %2946 = dma.hbm_to_vmem [thread:$0]  (!%p3409_p11), %s3930_s5, 4096, %s300_s24, [#allocation9], %s3297_s23, %s3297_s23, %s3298_s25  }
  0x42   : > { %p3143_p10 = pneg %p3142_p7 }
  0x44   : > { %p3150_p2 = pnand %p3149_p1, %p3143_p10 }
  0x46   : > { %3153 = shalt.err (!%p3150_p2)
}
  0x47   : > { %s3931_s7 = sld [smem:[#allocation26_spill]]  ;;  %s3454_s20 = sadd.s32 1, %s3290_s12  }
  0x48   : > { %s37_s22 = sadd.s32 1, %s3286_s11  ;;  %s34_s23 = ssub.s32 %s3290_s12, %s3454_s20 }
  0x49   : > { %p44_p12 = scmp.ne.s32.totalorder %s3286_s11, %s3282_s10  ;;  %p35_p4 = scmp.eq.s32.totalorder %s34_s23, 0 }
  0x4a   : > { %p45_p6 = scmp.eq.s32.totalorder %s3290_s12, 0  ;;  %p3932_p8 = scmp.eq.s32.totalorder %s3381_s13, 1 }
  0x4b   : > { %p2965_p3 = scmp.lt.s32.totalorder %s3290_s12, 2  ;;  %s3473_s27 = sand.u32 1, %s3286_s11  }
  0x4c   : > { %p3464_p9 = por %p3932_p8, %p44_p12  ;;  %p46_p5 = por %p45_p6, %p44_p12 }
  0x4d   : > { %2949 = dma.hbm_to_vmem [thread:$0]  (!%p3409_p11), %s3931_s7, 2048, %s316_s28, [#allocation12], %s3913_s29, %s3913_s29, %s3915_s14  }
  0x4e   : > { %s3470_s26 = scalar_select %p35_p4, %s3286_s11, %s37_s22  }
  0x4f   : > { %s2568_s21 = sshll.u32 %s3473_s27, 4  ;;  %s2630_s28 = sshll.u32 %s3290_s12, 8 }
  0x50   : > { %3934 = sst [smem:[#allocation21_spill]] %s3470_s26  ;;  %s336_s23 = scalar_lea.vmem [#allocation2], %s2568_s21 }
  0x51   : > { %s3935_s0 = sld [smem:[#allocation22_spill]]  ;;  %s343_s29 = sshll.u32 %s336_s23, 4  ;;  %s3482_s29 = int_to_ptr.vmem [resolvable:$true] %s343_s29 }
  0x52   : > { %p3484_p11 = pnand %p2965_p3, %p46_p5  ;;  %s333_s3 = scalar_lea.sflag [#allocation3], %s3473_s27 }
  0x54   : > { %p3156_p10 = pneg %p3484_p11 }
  0x57   : > { %s3480_s19 = scalar_lea.hbm %s3935_s0, %s2630_s28  ;;  %s3159_s18 = scalar_lea.hbm %s3935_s0, 512 }
  0x58   : > { %s3154_s5 = scalar_lea.hbm %s3480_s19, 256  ;;  %p3160_p1 = scmp.lt.s32.totalorder %s3480_s19, %s3935_s0 }
  0x59   : > { %p3155_p7 = scmp.ne.s32.totalorder %s3480_s19, %s3154_s5  ;;  %p3161_p2 = scmp.lt.s32.totalorder %s3159_s18, %s3154_s5 }
  0x5b   : > { %p3157_p13 = pnand %p3156_p10, %p3155_p7  ;;  %p3162_p12 = por %p3161_p2, %p3160_p1 }
  0x5d   : > { %p3158_p0 = pneg %p3157_p13 }
  0x5f   : > { %p3163_p4 = pnand %p3162_p12, %p3158_p0 }
  0x61   : > { %3166 = shalt.err (!%p3163_p4)
}
  0x62   : > { %s3167_s14 = scalar_lea.vmem %s3482_s29, 256  ;;  %s3300_s21 = smov [#allocation2]  }
  0x63   : > { %p3168_p6 = scmp.ne.s32.totalorder %s3482_s29, %s3167_s14  ;;  %s3172_s28 = sshll.u32 %s3300_s21, 4  ;;  %s3173_s28 = int_to_ptr.vmem [resolvable:$false] %s3172_s28 }
  0x64   : > { %s3174_s2 = scalar_lea.vmem %s3173_s28, 512  ;;  %p3175_p5 = scmp.lt.s32.totalorder %s3482_s29, %s3173_s28 }
  0x65   : > { %p3170_p8 = pnand %p3168_p6, %p3156_p10  ;;  %p3176_p7 = scmp.lt.s32.totalorder %s3174_s2, %s3167_s14 }
  0x67   : > { %p3171_p3 = pneg %p3170_p8  ;;  %p3177_p13 = por %p3176_p7, %p3175_p5 }
  0x69   : > { %p3178_p1 = pnand %p3177_p13, %p3171_p3 }
  0x6b   : > { %3181 = shalt.err (!%p3178_p1)
}
  0x6c   : > { %s3937_s5 = smov 8   ;;  %s3938_s18 = smov 128  }
  0x6d   : > { %2953 = dma.hbm_to_vmem [thread:$0]  (!%p3484_p11), %s3480_s19, 256, %s3482_s29, %s333_s3, %s3938_s18, %s3938_s18, %s3937_s5  }
  0x6e   : > { %s2632_s24 = sshll.u32 %s3290_s12, 9  ;;  %s3939_s21 = sshll.u32 %s3473_s27, 5 }
  0x6f   : > { %s3524_s14 = scalar_lea.hbm %s3901_s1, %s2632_s24  ;;  %s357_s28 = scalar_lea.vmem [#allocation5], %s3939_s21 }
  0x70   : > { %s365_s0 = sshll.u32 %s357_s28, 4  ;;  %s3940_s7 = sand.u32 1, %s3290_s12   ;;  %s3528_s0 = int_to_ptr.vmem [resolvable:$true] %s365_s0 }
  0x71   : > { %s354_s26 = scalar_lea.sflag [#allocation6], %s3940_s7  ;;  %s3182_s11 = scalar_lea.hbm %s3524_s14, 512 }
  0x72   : > { %p3183_p0 = scmp.ne.s32.totalorder %s3524_s14, %s3182_s11  ;;  %s3187_s19 = scalar_lea.hbm %s3901_s1, 1024 }
  0x73   : > { %p3188_p4 = scmp.lt.s32.totalorder %s3524_s14, %s3901_s1  ;;  %p3189_p6 = scmp.lt.s32.totalorder %s3187_s19, %s3182_s11 }
  0x74   : > { %p3185_p2 = pnand %p3183_p0, %p3156_p10 }
  0x75   : > { %p3190_p8 = por %p3189_p6, %p3188_p4 }
  0x76   : > { %p3186_p12 = pneg %p3185_p2 }
  0x78   : > { %p3191_p3 = pnand %p3190_p8, %p3186_p12 }
  0x7a   : > { %3194 = shalt.err (!%p3191_p3)
}
  0x7b   : > { %s3195_s7 = scalar_lea.vmem %s3528_s0, 512  ;;  %s3301_s23 = smov [#allocation5]  }
  0x7c   : > { %p3196_p5 = scmp.ne.s32.totalorder %s3528_s0, %s3195_s7  ;;  %s3200_s2 = sshll.u32 %s3301_s23, 4  ;;  %s3201_s2 = int_to_ptr.vmem [resolvable:$false] %s3200_s2 }
  0x7d   : > { %s3202_s21 = scalar_lea.vmem %s3201_s2, 1024  ;;  %p3203_p1 = scmp.lt.s32.totalorder %s3528_s0, %s3201_s2 }
  0x7e   : > { %p3198_p7 = pnand %p3196_p5, %p3156_p10  ;;  %p3204_p0 = scmp.lt.s32.totalorder %s3202_s21, %s3195_s7 }
  0x80   : > { %p3199_p13 = pneg %p3198_p7  ;;  %p3205_p2 = por %p3204_p0, %p3203_p1 }
  0x82   : > { %p3206_p4 = pnand %p3205_p2, %p3199_p13 }
  0x84   : > { %3209 = shalt.err (!%p3206_p4)
}
  0x85   : > { %2956 = dma.hbm_to_vmem [thread:$0]  (!%p3484_p11), %s3524_s14, 512, %s3528_s0, %s354_s26, %s3938_s18, %s3938_s18, %s3937_s5  }
  0x86   : > { %p3941_p10 = scmp.ne.s32.totalorder %s3926_s17, 0 }
  0x87   : > { %s3560_s11 = sand.u32 (!%p3941_p10), 1, %s3282_s10   ;;  %p3942_p12 = scmp.ne.s32.totalorder (!%p3941_p10), %s3924_s15, 0 }
  0x88   : > { %377 = sbr.rel (%p3941_p10) target bundleno = 3437 (0xd6d), region = 56  ;;  %s2576_s28 = sshll.u32 (!%p3941_p10), %s3560_s11, 4 }
  0x89   : > { %s380_s3 = scalar_lea.sflag (!%p3941_p10), [#allocation3], %s3560_s11  ;;  %s3566_s22 = scalar_lea.vmem (!%p3941_p10), [#allocation2], %s2576_s28 }
  0x8d   : > { %3253 = dma.done.wait (%p3942_p12), %s380_s3, 256  }
  0x8e   : > { %3255 = vsyncadd (%p3942_p12), %s380_s3, 4294967040  ;;  %s388_s0 = sand.u32 1, %s3381_s13   ;;  %s2577_s17 = sshll.u32 %s3560_s11, 5 }
  0x8f   : > { %s389_s26 = scalar_lea.sflag [#allocation6], %s388_s0  ;;  %s3574_s5 = scalar_lea.vmem [#allocation5], %s2577_s17 }
  0x90   : > { %3257 = dma.done.wait (%p3942_p12), %s389_s26, 512  }
  0x91   : > { %3259 = vsyncadd (%p3942_p12), %s389_s26, 4294966784  ;;  %p3943_p11 = scmp.eq.s32.totalorder %s3381_s13, 0 }
  0x93   : > { %3261 = dma.done.wait (%p3943_p11), [#allocation6], 128   ;;  %p3944_p6 = pmov %p3943_p11 }
  0x95   : > { %3263 = vsyncadd (%p3944_p6), [#allocation6], 4294967168  ;;  %p3945_p8 = pmov %p3944_p6 }
  0x96   : > { %p3946_p3 = pmov %p3944_p6 }
  0x97   : > { %3265 = dma.done.wait (%p3945_p8), [#allocation9], 6144  }
  0x98   : > { %3267 = vsyncadd (%p3946_p3), [#allocation9], 4294961152  ;;  %p3947_p5 = pmov %p3946_p3 }
  0x99   : > { %p3948_p7 = pmov %p3946_p3 }
  0x9a   : > { %3269 = dma.done.wait (%p3947_p5), [#allocation12], 2048  }
  0x9b   : > { %3271 = vsyncadd (%p3948_p7), [#allocation12], 4294965248  ;;  %v3302_v0 = vmov 0.0   ;;  %v586_v1 = vld [vmem:[#allocation10 + $0xf8] sm:$0xff]  ;;  %v585_v2 = vld [vmem:[#allocation10 + $0xf0] sm:$0xff]  ;;  %vm3303_vm0 = vmmov 0   ;;  %v589_v55 = vlaneseq }
  0x9c   : > { %663 = vmatprep.mubr.f32.mxu1 %v3302_v0  ;;  %v584_v3 = vld [vmem:[#allocation10 + $0xe8] sm:$0xff]  ;;  %599 = vmatprep.subr.mxu1 %v586_v1  ;;  %v583_v4 = vld [vmem:[#allocation10 + $0xe0] sm:$0xff]  ;;  %v582_v5 = vld [vmem:[#allocation10 + $0xd8] sm:$0xff]  ;;  %vm696_vm1 = vcmask 261120   ;;  %vm855_vm2 = vcmask 130048   ;;  %s3304_s19 = smov 96  }
  0x9d   : > { %600 = vmatpush1.msra.mxu1 %v585_v2  ;;  %v472_v6 = vld [vmem:[#allocation8 + $0x78] sm:$0xff]  ;;  %v581_v7 = vld [vmem:[#allocation10 + $0xd0] sm:$0xff]  ;;  %v580_v9 = vld [vmem:[#allocation10 + $0xc8] sm:$0xff]  ;;  %v590_v56 = vshrl.u32 %v589_v55, 7  ;;  %s3305_s27 = smov 64   ;;  %s3306_s23 = smov 32  }
  0x9e   : > { %601 = vmatprep.subr.mxu1 %v584_v3  ;;  %2724 = vmatprep.subr.mxu0 %v472_v6  ;;  %v471_v8 = vld [vmem:[#allocation8 + $0x70] sm:$0xff]  ;;  %v470_v10 = vld [vmem:[#allocation8 + $0x68] sm:$0xff]  ;;  %v579_v11 = vld [vmem:[#allocation10 + $0xc0] sm:$0xff]  ;;  %s447_s2 = scalar_lea.vmem [#allocation13], %s2576_s28  ;;  %s2633_s3 = sshll.u32 %s3381_s13, 8 }
  0x9f   : > { %602 = vmatpush1.msra.mxu1 %v583_v4  ;;  %2725 = vmatpush3.msra.mxu0 %v472_v6  ;;  %v578_v12 = vld [vmem:[#allocation10 + $0xb8] sm:$0xff]  ;;  %v469_v13 = vld [vmem:[#allocation8 + $0x60] sm:$0xff]  ;;  %v577_v14 = vld [vmem:[#allocation10 + $0xb0] sm:$0xff]  ;;  %v591_v57 = vsub.s32 0, %v590_v56  ;;  %v595_v60 = vsub.s32 1, %v590_v56  ;;  %s2427_s21 = sshll.u32 %s447_s2, 4  ;;  %s3856_s17 = scalar_lea.hbm %s3909_s9, %s2633_s3  ;;  %s3851_s21 = int_to_ptr.vmem [resolvable:$true] %s2427_s21 }
  0xa0   : > { %603 = vmatprep.subr.mxu1 %v582_v5  ;;  %2726 = vmatprep.subr.mxu0 %v471_v8  ;;  %v576_v15 = vld [vmem:[#allocation10 + $0xa8] sm:$0xff]  ;;  %v468_v16 = vld [vmem:[#allocation8 + $0x58] sm:$0xff]  ;;  %v575_v17 = vld [vmem:[#allocation10 + $0xa0] sm:$0xff]  ;;  %s2414_s28 = scalar_lea.sflag [#allocation4], %s3560_s11  ;;  %s3210_s13 = scalar_lea.vmem %s3851_s21, 256 }
  0xa1   : > { %604 = vmatpush1.msra.mxu1 %v581_v7  ;;  %2727 = vmatpush3.msra.mxu0 %v471_v8  ;;  %v574_v18 = vld [vmem:[#allocation10 + $0x98] sm:$0xff]  ;;  %v467_v19 = vld [vmem:[#allocation8 + $0x50] sm:$0xff]  ;;  %v572_v21 = vld [vmem:[#allocation10 + $0x88] sm:$0xff]  ;;  %p3211_p13 = scmp.ne.s32.totalorder %s3851_s21, %s3210_s13  ;;  %s3307_s26 = smov [#allocation13]  }
  0xa2   : > { %605 = vmatprep.subr.mxu1 %v580_v9  ;;  %2728 = vmatprep.subr.mxu0 %v470_v10  ;;  %v573_v20 = vld [vmem:[#allocation10 + $0x90] sm:$0xff]  ;;  %v466_v22 = vld [vmem:[#allocation8 + $0x48] sm:$0xff]  ;;  %v571_v23 = vld [vmem:[#allocation10 + $0x80] sm:$0xff] }
  0xa3   : > { %606 = vmatpush1.msra.mxu1 %v579_v11  ;;  %2729 = vmatpush3.msra.mxu0 %v470_v10  ;;  %v570_v24 = vld [vmem:[#allocation10 + $0x78] sm:$0xff]  ;;  %v465_v25 = vld [vmem:[#allocation8 + $0x40] sm:$0xff]  ;;  %v569_v26 = vld [vmem:[#allocation10 + $0x70] sm:$0xff]  ;;  %p3212_p1 = pnand %p3211_p13, %p3464_p9 }
  0xa4   : > { %607 = vmatprep.subr.mxu1 %v578_v12  ;;  %2730 = vmatprep.subr.mxu0 %v469_v13  ;;  %v568_v27 = vld [vmem:[#allocation10 + $0x68] sm:$0xff]  ;;  %v464_v28 = vld [vmem:[#allocation8 + $0x38] sm:$0xff]  ;;  %v567_v29 = vld [vmem:[#allocation10 + $0x60] sm:$0xff] }
  0xa5   : > { %608 = vmatpush1.msra.mxu1 %v577_v14  ;;  %2731 = vmatpush3.msra.mxu0 %v469_v13  ;;  %v566_v30 = vld [vmem:[#allocation10 + $0x58] sm:$0xff]  ;;  %v463_v31 = vld [vmem:[#allocation8 + $0x30] sm:$0xff]  ;;  %v564_v33 = vld [vmem:[#allocation10 + $0x48] sm:$0xff]  ;;  %p3213_p0 = pneg %p3212_p1 }
  0xa6   : > { %609 = vmatprep.subr.mxu1 %v576_v15  ;;  %2732 = vmatprep.subr.mxu0 %v468_v16  ;;  %v565_v32 = vld [vmem:[#allocation10 + $0x50] sm:$0xff]  ;;  %v462_v34 = vld [vmem:[#allocation8 + $0x28] sm:$0xff]  ;;  %v563_v35 = vld [vmem:[#allocation10 + $0x40] sm:$0xff] }
  0xa7   : > { %610 = vmatpush1.msra.mxu1 %v575_v17  ;;  %2733 = vmatpush3.msra.mxu0 %v468_v16  ;;  %v562_v36 = vld [vmem:[#allocation10 + $0x38] sm:$0xff]  ;;  %v461_v37 = vld [vmem:[#allocation8 + $0x20] sm:$0xff]  ;;  %v561_v38 = vld [vmem:[#allocation10 + $0x30] sm:$0xff] }
  0xa8   : > { %611 = vmatprep.subr.mxu1 %v574_v18  ;;  %2734 = vmatprep.subr.mxu0 %v467_v19  ;;  %v560_v39 = vld [vmem:[#allocation10 + $0x28] sm:$0xff]  ;;  %v460_v40 = vld [vmem:[#allocation8 + $0x18] sm:$0xff]  ;;  %v559_v41 = vld [vmem:[#allocation10 + $0x20] sm:$0xff] }
  0xa9   : > { %612 = vmatpush1.msra.mxu1 %v573_v20  ;;  %2735 = vmatpush3.msra.mxu0 %v467_v19  ;;  %v558_v42 = vld [vmem:[#allocation10 + $0x18] sm:$0xff]  ;;  %v459_v43 = vld [vmem:[#allocation8 + $0x10] sm:$0xff]  ;;  %v556_v45 = vld [vmem:[#allocation10 + $0x8] sm:$0xff] }
  0xaa   : > { %613 = vmatprep.subr.mxu1 %v572_v21  ;;  %2736 = vmatprep.subr.mxu0 %v466_v22  ;;  %v557_v44 = vld [vmem:[#allocation10 + $0x10] sm:$0xff]  ;;  %v458_v46 = vld [vmem:[#allocation8 + $0x8] sm:$0xff]  ;;  %v555_v47 = vld [vmem:[#allocation10] sm:$0xff] }
  0xab   : > { %614 = vmatpush1.msra.mxu1 %v571_v23  ;;  %2737 = vmatpush3.msra.mxu0 %v466_v22  ;;  %v453_v48 = vld [vmem:[%s3574_s5] sm:$0xff]  ;;  %v457_v49 = vld [vmem:[#allocation8] sm:$0xff]  ;;  %v455_v53 = vld [vmem:[%s3574_s5 + $0x10] sm:$0xff] }
  0xac   : > { %615 = vmatprep.subr.mxu1 %v570_v24  ;;  %2738 = vmatprep.subr.mxu0 %v465_v25  ;;  %v451_v50 = vld [vmem:[%s3566_s22] sm:$0xff]  ;;  %v452_v51 = vld [vmem:[%s3566_s22 + $0x8] sm:$0xff] }
  0xad   : > { %616 = vmatpush1.msra.mxu1 %v569_v26  ;;  %2739 = vmatpush3.msra.mxu0 %v465_v25  ;;  %v454_v52 = vld [vmem:[%s3574_s5 + $0x8] sm:$0xff]  ;;  %v456_v54 = vld [vmem:[%s3574_s5 + $0x18] sm:$0xff]  ;;  %v587_v58 = vld [vmem:[%s3906_s6] sm:$0x3]  ;;  %s3214_s5 = sshll.u32 %s3307_s26, 4  ;;  %s3215_s5 = int_to_ptr.vmem [resolvable:$false] %s3214_s5 }
  0xae   : > { %617 = vmatprep.subr.mxu1 %v568_v27  ;;  %2740 = vmatprep.subr.mxu0 %v464_v28  ;;  %v592_v62 = vrot.slane %v587_v58, %v591_v57  ;;  %v596_v2 = vrot.slane %v587_v58, %v595_v60  ;;  %v2583_v6 = vld [vmem:[%s3904_s4] ss:$0 sm:$0xff]  ;;  %s3216_s15 = scalar_lea.vmem %s3215_s5, 512  ;;  %p3217_p2 = scmp.lt.s32.totalorder %s3851_s21, %s3215_s5 }
  0xaf   : > { %618 = vmatpush1.msra.mxu1 %v567_v29  ;;  %2741 = vmatpush3.msra.mxu0 %v464_v28  ;;  %v3661_v20 = vld [vmem:[#allocation7] sm:$0xff]  ;;  %p3218_p4 = scmp.lt.s32.totalorder %s3216_s15, %s3210_s13 }
  0xb0   : > { %619 = vmatprep.subr.mxu1 %v566_v30  ;;  %2742 = vmatprep.subr.mxu0 %v463_v31 }
  0xb1   : > { %620 = vmatpush1.msra.mxu1 %v565_v32  ;;  %2743 = vmatpush3.msra.mxu0 %v463_v31  ;;  %p3219_p10 = por %p3218_p4, %p3217_p2 }
  0xb2   : > { %621 = vmatprep.subr.mxu1 %v564_v33  ;;  %2744 = vmatprep.subr.mxu0 %v462_v34 }
  0xb3   : > { %622 = vmatpush1.msra.mxu1 %v563_v35  ;;  %2745 = vmatpush3.msra.mxu0 %v462_v34  ;;  %p3220_p12 = pnand %p3219_p10, %p3213_p0 }
  0xb4   : > { %623 = vmatprep.subr.mxu1 %v562_v36  ;;  %2746 = vmatprep.subr.mxu0 %v461_v37 }
  0xb5   : > { %624 = vmatpush1.msra.mxu1 %v561_v38  ;;  %2747 = vmatpush3.msra.mxu0 %v461_v37 }
  0xb6   : > { %625 = vmatprep.subr.mxu1 %v560_v39  ;;  %2748 = vmatprep.subr.mxu0 %v460_v40 }
  0xb7   : > { %626 = vmatpush1.msra.mxu1 %v559_v41  ;;  %2749 = vmatpush3.msra.mxu0 %v460_v40 }
  0xb8   : > { %627 = vmatprep.subr.mxu1 %v558_v42  ;;  %2750 = vmatprep.subr.mxu0 %v459_v43 }
  0xb9   : > { %628 = vmatpush1.msra.mxu1 %v557_v44  ;;  %2751 = vmatpush3.msra.mxu0 %v459_v43 }
  0xba   : > { %629 = vmatprep.subr.mxu1 %v556_v45  ;;  %2752 = vmatprep.subr.mxu0 %v458_v46 }
  0xbb   : > { %630 = vmatpush1.msra.mxu1 %v555_v47  ;;  %2753 = vmatpush3.msra.mxu0 %v458_v46 }
  0xbc   : > { %664 = vmatmul.mubr.f32.vlgmr.msra.gmra.mxu1 %v453_v48  ;;  %2754 = vmatprep.subr.mxu0 %v457_v49 }
  0xbd   : > { %669 = vmatprep.mubr.f32.mxu1 %v3302_v0  ;;  %2755 = vmatpush3.msra.mxu0 %v457_v49  ;;  %v1027_v49 = vld [vmem:[#allocation11 + $0x18] sm:$0xff] }
  0xbe   : > { %2756 = vmatprep.mubr.f32.mxu0 %v451_v50  ;;  %2759 = vmatprep.subr.mxu0 %v3302_v0  ;;  %v1026_v50 = vld [vmem:[#allocation11 + $0x10] sm:$0xff] }
  0xbf   : > { %2757 = vmatmul.mubr.f32.vlgmr.msra.gmra.mxu0 %v452_v51  ;;  %2773 = vmatprep.subr.mxu1 %v3302_v0  ;;  %v1025_v51 = vld [vmem:[#allocation11 + $0x8] sm:$0xff] }
  0xc0   : > { %670 = vmatmul.mubr.f32.gmra.mxu1 %v454_v52  ;;  %2763 = vmatprep.mubr.msk.f32.mxu0 %vm3303_vm0, %v3302_v0  ;;  %v1024_v52 = vld [vmem:[#allocation11] sm:$0xff] }
  0xc1   : > { %675 = vmatprep.mubr.f32.mxu1 %v3302_v0 }
  0xc4   : > { %676 = vmatmul.mubr.f32.gmra.mxu1 %v455_v53 }
  0xc5   : > { %681 = vmatprep.mubr.f32.mxu1 %v3302_v0 }
  0xc8   : > { %682 = vmatmul.mubr.f32.gmra.mxu1 %v456_v54 }
  0xc9   : > { %2777 = vmatprep.mubr.msk.f32.mxu1 %vm3303_vm0, %v3302_v0 }
 0x17c   : > { %v665_v59 = vpop.f32.mrf.mxu1 }
 0x17d   : > { %v3621_v9 = vadd.f32 %v665_v59, %v592_v62 }
 0x17e   : > { %v667_v61 = vpop.f32.mrf.mxu1 }
 0x17f   : > { %v2758_v63 = vpop.f32.mrf.mxu0  ;;  %v3623_v10 = vadd.f32 %v667_v61, %v596_v2 }
 0x180   : > { %v671_v1 = vpop.f32.mrf.mxu1  ;;  %v3646_v17 = vadd.f32 %v2758_v63, %v2583_v6 }
 0x181   : > { %v3611_v3 = vadd.f32 %v671_v1, %v592_v62  ;;  %v546_v7 = vpop.f32.mrf.mxu0 }
 0x182   : > { %v673_v4 = vpop.f32.mrf.mxu1  ;;  %v3626_v11 = vadd.f32 %v2583_v6, %v546_v7 }
 0x183   : > { %v3613_v5 = vadd.f32 %v673_v4, %v596_v2  ;;  %2760 = vmatpush3.xpose.msk.msra.mxu0 %vm696_vm1, %v3611_v3 }
 0x184   : > { %v677_v8 = vpop.f32.mrf.mxu1  ;;  %2761 = vmatprep.subr.mxu0 %v3302_v0 }
 0x185   : > { %2774 = vmatpush3.msra.mxu1 %v3613_v5  ;;  %v3642_v15 = vadd.f32 %v677_v8, %v592_v62 }
 0x186   : > { %v679_v12 = vpop.f32.mrf.mxu1  ;;  %2775 = vmatprep.subr.mxu1 %v3302_v0 }
 0x187   : > { %2762 = vmatpush3.xpose.msk.msra.mxu0 %vm696_vm1, %v3621_v9  ;;  %2776 = vmatpush3.msra.mxu1 %v3623_v10  ;;  %v3653_v19 = vadd.f32 %v679_v12, %v596_v2 }
 0x188   : > { %v683_v13 = vpop.f32.mrf.mxu1  ;;  %2766 = vmatprep.subr.mxu0 %v3302_v0  ;;  %2787 = vmatprep.subr.mxu1 %v1027_v49 }
 0x189   : > { %v3633_v14 = vadd.f32 %v683_v13, %v592_v62 }
 0x18a   : > { %2764 = vmatmul.mubr.msk.f32.vlgmr.msra.gmra.mxu0 %vm696_vm1, %v3626_v11  ;;  %v685_v16 = vpop.f32.mrf.mxu1 }
 0x18b   : > { %2767 = vmatpush3.xpose.msk.msra.mxu0 %vm696_vm1, %v3633_v14  ;;  %2770 = vmatprep.mubr.msk.f32.mxu0 %vm3303_vm0, %v3302_v0  ;;  %v3649_v18 = vadd.f32 %v685_v16, %v596_v2 }
 0x18c   : > { %2768 = vmatprep.subr.mxu0 %v3302_v0 }
 0x18f   : > { %2769 = vmatpush3.xpose.msk.msra.mxu0 %vm696_vm1, %v3642_v15 }
 0x190   : > { %2780 = vmatprep.subr.mxu0 %v3302_v0 }
 0x192   : > { %2771 = vmatmul.mubr.msk.f32.vlgmr.msra.gmra.mxu0 %vm696_vm1, %v3646_v17 }
 0x193   : > { %2781 = vmatpush3.msra.mxu0 %v3649_v18  ;;  %2784 = vmatprep.mubr.msk.f32.mxu0 %vm3303_vm0, %v3302_v0 }
 0x194   : > { %2782 = vmatprep.subr.mxu0 %v3302_v0 }
 0x195   : > { %2783 = vmatpush3.msra.mxu0 %v3653_v19 }
 0x196   : > { %2798 = vmatprep.subr.mxu0 %v3302_v0 }
 0x24a   : > { %v772_v21 = vpop.f32.mrf.mxu0 }
 0x24b   : > { %v773_v22 = vadd.f32 %v772_v21, %v3661_v20 }
 0x24c   : > { %v2765_v23 = vpop.f32.mrf.mxu0 }
 0x24d   : > { %v856_v24 = vsel %vm855_vm2, %v773_v22, -inf }
 0x24e   : > { %857 = vmax.xlane.f32.xlu0 %v856_v24 }
 0x252   : > { %v851_v25 = vpop.f32.mrf.mxu0 }
 0x253   : > { %v852_v26 = vadd.f32 %v851_v25, %v3661_v20 }
 0x254   : > { %v2772_v27 = vpop.f32.mrf.mxu0 }
 0x255   : > { %v859_v28 = vsel %vm855_vm2, %v852_v26, -inf }
 0x256   : > { %860 = vmax.xlane.f32.xlu0 %v859_v28 }
 0x26c   : > { %1115 = vrot.lane.b32.xlu0 %v3611_v3, %s3304_s19 }
 0x270   : > { %1195 = vrot.lane.b32.xlu0 %v3642_v15, %s3304_s19 }
 0x2d7   : > { %v858_v29 = vpop.xlane.xlu0 %857 }
 0x2d8   : > { %v862_v30 = vsub.f32 %v773_v22, %v858_v29 }
 0x2da   : > { %v864_v31 = vmul.f32 1.442695, %v862_v30 }
 0x2dc   : > { %3018 = vpow2.f32 %v864_v31 }
 0x2df   : > { %v861_v32 = vpop.xlane.xlu0 %860 }
 0x2e0   : > { %v863_v33 = vsub.f32 %v852_v26, %v861_v32 }
 0x2e2   : > { %v866_v34 = vmul.f32 1.442695, %v863_v33 }
 0x2e3   : > { %v1116_v46 = vpop.permute.xlu0 %1115 }
 0x2e4   : > { %3020 = vpow2.f32 %v866_v34 }
 0x2e7   : > { %v1196_v57 = vpop.permute.xlu0 %1195 }
 0x2e9   : > { %v3019_v35 = vpop.eup %3018 }
 0x2ea   : > { %v868_v36 = vsel %vm855_vm2, %v3019_v35, 0.0 }
 0x2eb   : > { %869 = vadd.xlane.f32.xlu1 %v868_v36 }
 0x2f1   : > { %v3021_v37 = vpop.eup %3020 }
 0x2f2   : > { %v871_v38 = vsel %vm855_vm2, %v3021_v37, 0.0 }
 0x2f3   : > { %872 = vadd.xlane.f32.xlu1 %v871_v38 }
 0x304   : > { %1113 = vrot.lane.b32.xlu1 %v3621_v9, %s3304_s19 }
 0x308   : > { %1197 = vrot.lane.b32.xlu1 %v3633_v14, %s3304_s19 }
 0x30c   : > { %1111 = vrot.lane.b32.xlu1 %v3626_v11, %s3304_s19 }
 0x310   : > { %1193 = vrot.lane.b32.xlu1 %v3646_v17, %s3304_s19 }
 0x374   : > { %v870_v39 = vpop.xlane.xlu1 %869 }
 0x375   : > { %3022 = vrcp.f32 %v870_v39 }
 0x37c   : > { %v873_v40 = vpop.xlane.xlu1 %872 }
 0x37d   : > { %3024 = vrcp.f32 %v873_v40  ;;  %v1463_v40 = vld [vmem:[#allocation11 + $0x38] sm:$0xff] }
 0x380   : > { %v1114_v43 = vpop.permute.xlu1 %1113 }
 0x382   : > { %v3023_v41 = vpop.eup %3022 }
 0x383   : > { %v876_v42 = vmul.f32 %v3023_v41, %v3019_v35  ;;  %v1462_v41 = vld [vmem:[#allocation11 + $0x30] sm:$0xff] }
 0x384   : > { %v1198_v47 = vpop.permute.xlu1 %1197 }
 0x385   : > { %2778 = vmatmul.mubr.msk.f32.vlgmr.msra.gmra.mxu1 %vm855_vm2, %v876_v42  ;;  %v1461_v42 = vld [vmem:[#allocation11 + $0x28] sm:$0xff] }
 0x386   : > { %2788 = vmatpush3.msra.mxu1 %v1027_v49 }
 0x387   : > { %2789 = vmatprep.subr.mxu1 %v1026_v50 }
 0x388   : > { %v1112_v48 = vpop.permute.xlu1 %1111  ;;  %2790 = vmatpush3.msra.mxu1 %v1026_v50 }
 0x389   : > { %2791 = vmatprep.subr.mxu1 %v1025_v51 }
 0x38a   : > { %v3025_v44 = vpop.eup %3024  ;;  %2792 = vmatpush3.msra.mxu1 %v1025_v51 }
 0x38b   : > { %v877_v45 = vmul.f32 %v3025_v44, %v3021_v37  ;;  %2793 = vmatprep.subr.mxu1 %v1024_v52 }
 0x38c   : > { %2794 = vmatpush3.msra.mxu1 %v1024_v52  ;;  %v1194_v58 = vpop.permute.xlu1 %1193 }
 0x38d   : > { %2785 = vmatmul.mubr.msk.f32.vlgmr.msra.gmra.mxu0 %vm855_vm2, %v877_v45  ;;  %2805 = vmatprep.subr.mxu1 %v3302_v0 }
 0x38e   : > { %2799 = vmatpush3.xpose.msk.msra.mxu0 %vm696_vm1, %v1116_v46  ;;  %2802 = vmatprep.mubr.msk.f32.mxu0 %vm3303_vm0, %v3302_v0 }
 0x38f   : > { %2800 = vmatprep.subr.mxu0 %v3302_v0 }
 0x392   : > { %2801 = vmatpush3.xpose.msk.msra.mxu0 %vm696_vm1, %v1114_v43  ;;  %v1460_v43 = vld [vmem:[#allocation11 + $0x20] sm:$0xff] }
 0x393   : > { %2812 = vmatprep.subr.mxu0 %v3302_v0 }
 0x395   : > { %2803 = vmatmul.mubr.msk.f32.vlgmr.msra.gmra.mxu0 %vm696_vm1, %v1112_v48 }
 0x396   : > { %2816 = vmatprep.mubr.msk.f32.mxu0 %vm3303_vm0, %v3302_v0 }
 0x445   : > { %v947_v53 = vpop.f32.mrf.mxu1 }
 0x446   : > { %2795 = vmatprep.mubr.msk.f32.mxu1 %vm696_vm1, %v947_v53 }
 0x447   : > { %v2779_v54 = vpop.f32.mrf.mxu1 }
 0x44d   : > { %v1020_v55 = vpop.f32.mrf.mxu0 }
 0x44e   : > { %2796 = vmatmul.mubr.msk.f32.vlgmr.msra.gmra.mxu1 %vm696_vm1, %v1020_v55 }
 0x44f   : > { %2806 = vmatpush3.xpose.msk.msra.mxu1 %vm696_vm1, %v1198_v47  ;;  %v2786_v56 = vpop.f32.mrf.mxu0  ;;  %2809 = vmatprep.mubr.msk.f32.mxu1 %vm3303_vm0, %v3302_v0 }
 0x450   : > { %2807 = vmatprep.subr.mxu1 %v3302_v0 }
 0x453   : > { %2808 = vmatpush3.xpose.msk.msra.mxu1 %vm696_vm1, %v1196_v57 }
 0x454   : > { %2826 = vmatprep.subr.mxu1 %v1463_v40 }
 0x455   : > { %v1189_v59 = vpop.f32.mrf.mxu0 }
 0x456   : > { %v1190_v60 = vadd.f32 %v1189_v59, %v3661_v20  ;;  %2810 = vmatmul.mubr.msk.f32.vlgmr.msra.gmra.mxu1 %vm696_vm1, %v1194_v58 }
 0x457   : > { %v2804_v61 = vpop.f32.mrf.mxu0  ;;  %2827 = vmatpush3.msra.mxu1 %v1463_v40 }
 0x458   : > { %v1275_v62 = vsel %vm855_vm2, %v1190_v60, -inf  ;;  %2828 = vmatprep.subr.mxu1 %v1462_v41 }
 0x459   : > { %1276 = vmax.xlane.f32.xlu0 %v1275_v62  ;;  %2829 = vmatpush3.msra.mxu1 %v1462_v41 }
 0x45a   : > { %2830 = vmatprep.subr.mxu1 %v1461_v42 }
 0x45b   : > { %2831 = vmatpush3.msra.mxu1 %v1461_v42 }
 0x45c   : > { %2832 = vmatprep.subr.mxu1 %v1460_v43 }
 0x45d   : > { %2833 = vmatpush3.msra.mxu1 %v1460_v43 }
 0x45e   : > { %2844 = vmatprep.subr.mxu1 %v3302_v0 }
 0x4e2   : > { %v1277_v63 = vpop.xlane.xlu0 %1276 }
 0x4e3   : > { %v1281_v1 = vsub.f32 %v1190_v60, %v1277_v63  ;;  %v2584_v60 = vld [vmem:[%s3908_s8] ss:$0 sm:$0xff] }
 0x4e5   : > { %v1283_v2 = vmul.f32 1.442695, %v1281_v1 }
 0x4e7   : > { %3026 = vpow2.f32 %v1283_v2 }
 0x4f4   : > { %v3027_v4 = vpop.eup %3026 }
 0x4f5   : > { %v1287_v6 = vsel %vm855_vm2, %v3027_v4, 0.0 }
 0x4f6   : > { %1288 = vadd.xlane.f32.xlu0 %v1287_v6 }
 0x50e   : > { %v3704_v7 = vpop.f32.mrf.mxu1 }
 0x50f   : > { %v1110_v61 = vadd.f32 %v3704_v7, %v2584_v60 }
 0x510   : > { %v3706_v8 = vpop.f32.mrf.mxu1 }
 0x511   : > { %v1109_v63 = vadd.f32 %v2584_v60, %v3706_v8 }
 0x516   : > { %v1271_v12 = vpop.f32.mrf.mxu1 }
 0x517   : > { %v1272_v13 = vadd.f32 %v1271_v12, %v3661_v20 }
 0x518   : > { %v2811_v16 = vpop.f32.mrf.mxu1 }
 0x519   : > { %v1278_v21 = vsel %vm855_vm2, %v1272_v13, -inf }
 0x51a   : > { %1279 = vmax.xlane.f32.xlu1 %v1278_v21 }
 0x52b   : > { %1299 = vrot.lane.b32.xlu1 %v3623_v10, %s3304_s19 }
 0x52f   : > { %1382 = vrot.lane.b32.xlu1 %v3649_v18, %s3304_s19 }
 0x533   : > { %1380 = vrot.lane.b32.xlu1 %v3653_v19, %s3304_s19 }
 0x537   : > { %1549 = vrot.lane.b32.xlu1 %v3621_v9, %s3305_s27 }
 0x53b   : > { %1547 = vrot.lane.b32.xlu1 %v3626_v11, %s3305_s27 }
 0x53f   : > { %1629 = vrot.lane.b32.xlu1 %v3646_v17, %s3305_s27 }
 0x57f   : > { %v1289_v27 = vpop.xlane.xlu0 %1288 }
 0x5a3   : > { %v1280_v22 = vpop.xlane.xlu1 %1279 }
 0x5a4   : > { %v1282_v23 = vsub.f32 %v1272_v13, %v1280_v22 }
 0x5a6   : > { %v1285_v24 = vmul.f32 1.442695, %v1282_v23 }
 0x5a7   : > { %v1300_v28 = vpop.permute.xlu1 %1299 }
 0x5a8   : > { %3028 = vpow2.f32 %v1285_v24 }
 0x5a9   : > { %3030 = vrcp.f32 %v1289_v27 }
 0x5ab   : > { %v1383_v31 = vpop.permute.xlu1 %1382 }
 0x5af   : > { %v1381_v34 = vpop.permute.xlu1 %1380 }
 0x5b3   : > { %v1550_v38 = vpop.permute.xlu1 %1549 }
 0x5b5   : > { %v3029_v25 = vpop.eup %3028 }
 0x5b6   : > { %v1290_v26 = vsel %vm855_vm2, %v3029_v25, 0.0  ;;  %v3031_v30 = vpop.eup %3030 }
 0x5b7   : > { %1291 = vadd.xlane.f32.xlu0 %v1290_v26  ;;  %v1295_v33 = vmul.f32 %v3031_v30, %v3027_v4  ;;  %v1548_v39 = vpop.permute.xlu1 %1547 }
 0x5bb   : > { %v1630_v50 = vpop.permute.xlu1 %1629 }
 0x5cd   : > { %1301 = vrot.lane.b32.xlu0 %v3613_v5, %s3304_s19 }
 0x5d1   : > { %1551 = vrot.lane.b32.xlu0 %v3611_v3, %s3305_s27 }
 0x5d5   : > { %1633 = vrot.lane.b32.xlu0 %v3633_v14, %s3305_s27 }
 0x5d9   : > { %1631 = vrot.lane.b32.xlu0 %v3642_v15, %s3305_s27 }
 0x640   : > { %v1292_v29 = vpop.xlane.xlu0 %1291 }
 0x641   : > { %3032 = vrcp.f32 %v1292_v29 }
 0x644   : > { %v1302_v32 = vpop.permute.xlu0 %1301 }
 0x645   : > { %2813 = vmatpush3.msra.mxu0 %v1302_v32  ;;  %v1894_v32 = vld [vmem:[#allocation11 + $0x50] sm:$0xff] }
 0x646   : > { %2814 = vmatprep.subr.mxu0 %v3302_v0 }
 0x647   : > { %2815 = vmatpush3.msra.mxu0 %v1300_v28 }
 0x648   : > { %2817 = vmatmul.mubr.msk.f32.vlgmr.msra.gmra.mxu0 %vm855_vm2, %v1295_v33  ;;  %2819 = vmatprep.subr.mxu0 %v3302_v0  ;;  %v1552_v37 = vpop.permute.xlu0 %1551  ;;  %v1893_v33 = vld [vmem:[#allocation11 + $0x48] sm:$0xff] }
 0x649   : > { %2820 = vmatpush3.msra.mxu0 %v1383_v31  ;;  %2823 = vmatprep.mubr.msk.f32.mxu0 %vm3303_vm0, %v3302_v0  ;;  %v1895_v31 = vld [vmem:[#allocation11 + $0x58] sm:$0xff] }
 0x64a   : > { %2821 = vmatprep.subr.mxu0 %v3302_v0 }
 0x64b   : > { %2822 = vmatpush3.msra.mxu0 %v1381_v34  ;;  %v1892_v34 = vld [vmem:[#allocation11 + $0x40] sm:$0xff] }
 0x64c   : > { %2837 = vmatprep.subr.mxu0 %v3302_v0  ;;  %v1634_v46 = vpop.permute.xlu0 %1633 }
 0x64e   : > { %v3033_v35 = vpop.eup %3032 }
 0x64f   : > { %v1296_v36 = vmul.f32 %v3033_v35, %v3029_v25 }
 0x650   : > { %v1632_v49 = vpop.permute.xlu0 %1631 }
 0x651   : > { %2824 = vmatmul.mubr.msk.f32.vlgmr.msra.gmra.mxu0 %vm855_vm2, %v1296_v36 }
 0x652   : > { %2838 = vmatpush3.xpose.msk.msra.mxu0 %vm696_vm1, %v1552_v37  ;;  %2841 = vmatprep.mubr.msk.f32.mxu0 %vm3303_vm0, %v3302_v0 }
 0x653   : > { %2839 = vmatprep.subr.mxu0 %v3302_v0 }
 0x656   : > { %2840 = vmatpush3.xpose.msk.msra.mxu0 %vm696_vm1, %v1550_v38 }
 0x657   : > { %2851 = vmatprep.subr.mxu0 %v3302_v0 }
 0x659   : > { %2842 = vmatmul.mubr.msk.f32.vlgmr.msra.gmra.mxu0 %vm696_vm1, %v1548_v39 }
 0x65a   : > { %2855 = vmatprep.mubr.msk.f32.mxu0 %vm3303_vm0, %v3302_v0 }
 0x708   : > { %v1374_v44 = vpop.f32.mrf.mxu0 }
 0x709   : > { %2834 = vmatprep.mubr.msk.f32.mxu1 %vm696_vm1, %v1374_v44 }
 0x70a   : > { %v2818_v45 = vpop.f32.mrf.mxu0 }
 0x711   : > { %v1455_v47 = vpop.f32.mrf.mxu0 }
 0x712   : > { %2835 = vmatmul.mubr.msk.f32.vlgmr.msra.gmra.mxu1 %vm696_vm1, %v1455_v47 }
 0x713   : > { %2845 = vmatpush3.xpose.msk.msra.mxu1 %vm696_vm1, %v1634_v46  ;;  %v2825_v48 = vpop.f32.mrf.mxu0  ;;  %2848 = vmatprep.mubr.msk.f32.mxu1 %vm3303_vm0, %v3302_v0 }
 0x714   : > { %2846 = vmatprep.subr.mxu1 %v3302_v0 }
 0x717   : > { %2847 = vmatpush3.xpose.msk.msra.mxu1 %vm696_vm1, %v1632_v49 }
 0x718   : > { %2865 = vmatprep.subr.mxu1 %v1895_v31 }
 0x719   : > { %v1625_v51 = vpop.f32.mrf.mxu0 }
 0x71a   : > { %v1626_v52 = vadd.f32 %v1625_v51, %v3661_v20  ;;  %2849 = vmatmul.mubr.msk.f32.vlgmr.msra.gmra.mxu1 %vm696_vm1, %v1630_v50 }
 0x71b   : > { %v2843_v53 = vpop.f32.mrf.mxu0  ;;  %2866 = vmatpush3.msra.mxu1 %v1895_v31 }
 0x71c   : > { %v1711_v54 = vsel %vm855_vm2, %v1626_v52, -inf  ;;  %2867 = vmatprep.subr.mxu1 %v1894_v32 }
 0x71d   : > { %1712 = vmax.xlane.f32.xlu0 %v1711_v54  ;;  %2868 = vmatpush3.msra.mxu1 %v1894_v32 }
 0x71e   : > { %2869 = vmatprep.subr.mxu1 %v1893_v33 }
 0x71f   : > { %2870 = vmatpush3.msra.mxu1 %v1893_v33 }
 0x720   : > { %2871 = vmatprep.subr.mxu1 %v1892_v34 }
 0x721   : > { %2872 = vmatpush3.msra.mxu1 %v1892_v34 }
 0x722   : > { %2883 = vmatprep.subr.mxu1 %v3302_v0 }
 0x7a6   : > { %v1713_v55 = vpop.xlane.xlu0 %1712 }
 0x7a7   : > { %v1717_v56 = vsub.f32 %v1626_v52, %v1713_v55 }
 0x7a9   : > { %v1719_v57 = vmul.f32 1.442695, %v1717_v56 }
 0x7ab   : > { %3034 = vpow2.f32 %v1719_v57 }
 0x7b8   : > { %v3035_v58 = vpop.eup %3034 }
 0x7b9   : > { %v1723_v59 = vsel %vm855_vm2, %v3035_v58, 0.0 }
 0x7ba   : > { %1724 = vadd.xlane.f32.xlu0 %v1723_v59 }
 0x7d2   : > { %v2836_v62 = vpop.f32.mrf.mxu1 }
 0x7d3   : > { %v3765_v1 = vadd.f32 %v2836_v62, %v1110_v61 }
 0x7d4   : > { %v1536_v2 = vpop.f32.mrf.mxu1 }
 0x7d5   : > { %v3767_v4 = vadd.f32 %v1536_v2, %v1109_v63 }
 0x7da   : > { %v1707_v6 = vpop.f32.mrf.mxu1 }
 0x7db   : > { %v1708_v12 = vadd.f32 %v1707_v6, %v3661_v20 }
 0x7dc   : > { %v2850_v13 = vpop.f32.mrf.mxu1 }
 0x7dd   : > { %v1714_v16 = vsel %vm855_vm2, %v1708_v12, -inf  ;;  %v2327_v13 = vld [vmem:[#allocation11 + $0x78] sm:$0xff] }
 0x7de   : > { %1715 = vmax.xlane.f32.xlu1 %v1714_v16  ;;  %v2326_v16 = vld [vmem:[#allocation11 + $0x70] sm:$0xff] }
 0x7ef   : > { %1733 = vrot.lane.b32.xlu1 %v3623_v10, %s3305_s27 }
 0x7f3   : > { %1814 = vrot.lane.b32.xlu1 %v3649_v18, %s3305_s27 }
 0x7f7   : > { %1812 = vrot.lane.b32.xlu1 %v3653_v19, %s3305_s27 }
 0x7fb   : > { %1981 = vrot.lane.b32.xlu1 %v3621_v9, %s3306_s23 }
 0x7ff   : > { %1979 = vrot.lane.b32.xlu1 %v3626_v11, %s3306_s23 }
 0x803   : > { %2061 = vrot.lane.b32.xlu1 %v3646_v17, %s3306_s23 }
 0x843   : > { %v1725_v9 = vpop.xlane.xlu0 %1724 }
 0x867   : > { %v1716_v7 = vpop.xlane.xlu1 %1715 }
 0x868   : > { %v1718_v8 = vsub.f32 %v1708_v12, %v1716_v7  ;;  %v2325_v7 = vld [vmem:[#allocation11 + $0x68] sm:$0xff] }
 0x86a   : > { %v1721_v21 = vmul.f32 1.442695, %v1718_v8  ;;  %v2324_v8 = vld [vmem:[#allocation11 + $0x60] sm:$0xff] }
 0x86b   : > { %v1734_v11 = vpop.permute.xlu1 %1733 }
 0x86c   : > { %3036 = vpow2.f32 %v1721_v21 }
 0x86d   : > { %3038 = vrcp.f32 %v1725_v9 }
 0x86f   : > { %v1815_v25 = vpop.permute.xlu1 %1814 }
 0x879   : > { %v3037_v22 = vpop.eup %3036 }
 0x87a   : > { %v1726_v23 = vsel %vm855_vm2, %v3037_v22, 0.0  ;;  %v3039_v24 = vpop.eup %3038 }
 0x87b   : > { %1727 = vadd.xlane.f32.xlu0 %v1726_v23  ;;  %v1731_v27 = vmul.f32 %v3039_v24, %v3035_v58 }
 0x891   : > { %1735 = vrot.lane.b32.xlu0 %v3613_v5, %s3305_s27 }
 0x895   : > { %1983 = vrot.lane.b32.xlu0 %v3611_v3, %s3306_s23  ;;  %v1813_v3 = vpop.permute.xlu1 %1812 }
 0x899   : > { %2065 = vrot.lane.b32.xlu0 %v3633_v14, %s3306_s23  ;;  %v1982_v29 = vpop.permute.xlu1 %1981 }
 0x89d   : > { %2063 = vrot.lane.b32.xlu0 %v3642_v15, %s3306_s23  ;;  %v1980_v30 = vpop.permute.xlu1 %1979 }
 0x8a1   : > { %v2062_v41 = vpop.permute.xlu1 %2061 }
 0x904   : > { %v1728_v17 = vpop.xlane.xlu0 %1727 }
 0x905   : > { %3040 = vrcp.f32 %v1728_v17 }
 0x908   : > { %v1736_v26 = vpop.permute.xlu0 %1735 }
 0x909   : > { %2852 = vmatpush3.msra.mxu0 %v1736_v26 }
 0x90a   : > { %2853 = vmatprep.subr.mxu0 %v3302_v0 }
 0x90b   : > { %2854 = vmatpush3.msra.mxu0 %v1734_v11 }
 0x90c   : > { %2856 = vmatmul.mubr.msk.f32.vlgmr.msra.gmra.mxu0 %vm855_vm2, %v1731_v27  ;;  %2858 = vmatprep.subr.mxu0 %v3302_v0  ;;  %v1984_v28 = vpop.permute.xlu0 %1983 }
 0x90d   : > { %2859 = vmatpush3.msra.mxu0 %v1815_v25  ;;  %2862 = vmatprep.mubr.msk.f32.mxu0 %vm3303_vm0, %v3302_v0 }
 0x90e   : > { %2860 = vmatprep.subr.mxu0 %v3302_v0 }
 0x90f   : > { %2861 = vmatpush3.msra.mxu0 %v1813_v3 }
 0x910   : > { %2876 = vmatprep.subr.mxu0 %v3302_v0  ;;  %v2066_v37 = vpop.permute.xlu0 %2065 }
 0x912   : > { %v3041_v14 = vpop.eup %3040 }
 0x913   : > { %v1732_v15 = vmul.f32 %v3041_v14, %v3037_v22 }
 0x914   : > { %v2064_v40 = vpop.permute.xlu0 %2063 }
 0x915   : > { %2863 = vmatmul.mubr.msk.f32.vlgmr.msra.gmra.mxu0 %vm855_vm2, %v1732_v15 }
 0x916   : > { %2877 = vmatpush3.xpose.msk.msra.mxu0 %vm696_vm1, %v1984_v28  ;;  %2880 = vmatprep.mubr.msk.f32.mxu0 %vm3303_vm0, %v3302_v0 }
 0x917   : > { %2878 = vmatprep.subr.mxu0 %v3302_v0 }
 0x91a   : > { %2879 = vmatpush3.xpose.msk.msra.mxu0 %vm696_vm1, %v1982_v29 }
 0x91b   : > { %2890 = vmatprep.subr.mxu0 %v3302_v0 }
 0x91d   : > { %2881 = vmatmul.mubr.msk.f32.vlgmr.msra.gmra.mxu0 %vm696_vm1, %v1980_v30 }
 0x91e   : > { %2894 = vmatprep.mubr.msk.f32.mxu0 %vm3303_vm0, %v3302_v0 }
 0x9cc   : > { %v1808_v35 = vpop.f32.mrf.mxu0 }
 0x9cd   : > { %2873 = vmatprep.mubr.msk.f32.mxu1 %vm696_vm1, %v1808_v35 }
 0x9ce   : > { %v2857_v36 = vpop.f32.mrf.mxu0 }
 0x9d5   : > { %v1887_v38 = vpop.f32.mrf.mxu0 }
 0x9d6   : > { %2874 = vmatmul.mubr.msk.f32.vlgmr.msra.gmra.mxu1 %vm696_vm1, %v1887_v38 }
 0x9d7   : > { %2884 = vmatpush3.xpose.msk.msra.mxu1 %vm696_vm1, %v2066_v37  ;;  %v2864_v39 = vpop.f32.mrf.mxu0  ;;  %2887 = vmatprep.mubr.msk.f32.mxu1 %vm3303_vm0, %v3302_v0 }
 0x9d8   : > { %2885 = vmatprep.subr.mxu1 %v3302_v0 }
 0x9db   : > { %2886 = vmatpush3.xpose.msk.msra.mxu1 %vm696_vm1, %v2064_v40 }
 0x9dc   : > { %2904 = vmatprep.subr.mxu1 %v2327_v13 }
 0x9dd   : > { %v2057_v42 = vpop.f32.mrf.mxu0 }
 0x9de   : > { %v2058_v43 = vadd.f32 %v2057_v42, %v3661_v20  ;;  %2888 = vmatmul.mubr.msk.f32.vlgmr.msra.gmra.mxu1 %vm696_vm1, %v2062_v41 }
 0x9df   : > { %v2882_v44 = vpop.f32.mrf.mxu0  ;;  %2905 = vmatpush3.msra.mxu1 %v2327_v13 }
 0x9e0   : > { %v2143_v45 = vsel %vm855_vm2, %v2058_v43, -inf  ;;  %2906 = vmatprep.subr.mxu1 %v2326_v16 }
 0x9e1   : > { %2144 = vmax.xlane.f32.xlu0 %v2143_v45  ;;  %2907 = vmatpush3.msra.mxu1 %v2326_v16 }
 0x9e2   : > { %2908 = vmatprep.subr.mxu1 %v2325_v7 }
 0x9e3   : > { %2909 = vmatpush3.msra.mxu1 %v2325_v7 }
 0x9e4   : > { %2910 = vmatprep.subr.mxu1 %v2324_v8 }
 0x9e5   : > { %2911 = vmatpush3.msra.mxu1 %v2324_v8 }
 0xa6a   : > { %v2145_v46 = vpop.xlane.xlu0 %2144 }
 0xa6b   : > { %v2149_v47 = vsub.f32 %v2058_v43, %v2145_v46 }
 0xa6d   : > { %v2151_v48 = vmul.f32 1.442695, %v2149_v47 }
 0xa6f   : > { %3042 = vpow2.f32 %v2151_v48 }
 0xa7c   : > { %v3043_v49 = vpop.eup %3042 }
 0xa7d   : > { %v2155_v50 = vsel %vm855_vm2, %v3043_v49, 0.0 }
 0xa7e   : > { %2156 = vadd.xlane.f32.xlu0 %v2155_v50 }
 0xa96   : > { %v2875_v51 = vpop.f32.mrf.mxu1 }
 0xa97   : > { %v3822_v52 = vadd.f32 %v2875_v51, %v3765_v1 }
 0xa98   : > { %v1968_v53 = vpop.f32.mrf.mxu1 }
 0xa99   : > { %v3825_v54 = vadd.f32 %v1968_v53, %v3767_v4 }
 0xa9e   : > { %v2139_v55 = vpop.f32.mrf.mxu1 }
 0xa9f   : > { %v2140_v56 = vadd.f32 %v2139_v55, %v3661_v20 }
 0xaa0   : > { %v2889_v57 = vpop.f32.mrf.mxu1 }
 0xaa1   : > { %v2146_v58 = vsel %vm855_vm2, %v2140_v56, -inf }
 0xaa2   : > { %2147 = vmax.xlane.f32.xlu1 %v2146_v58 }
 0xab3   : > { %2165 = vrot.lane.b32.xlu1 %v3623_v10, %s3306_s23 }
 0xab7   : > { %2246 = vrot.lane.b32.xlu1 %v3649_v18, %s3306_s23 }
 0xabb   : > { %2244 = vrot.lane.b32.xlu1 %v3653_v19, %s3306_s23 }
 0xb07   : > { %v2157_v63 = vpop.xlane.xlu0 %2156 }
 0xb2b   : > { %v2148_v59 = vpop.xlane.xlu1 %2147 }
 0xb2c   : > { %v2150_v60 = vsub.f32 %v2140_v56, %v2148_v59 }
 0xb2e   : > { %v2153_v61 = vmul.f32 1.442695, %v2150_v60 }
 0xb2f   : > { %v2166_v10 = vpop.permute.xlu1 %2165 }
 0xb30   : > { %3044 = vpow2.f32 %v2153_v61 }
 0xb31   : > { %3046 = vrcp.f32 %v2157_v63 }
 0xb33   : > { %v2247_v2 = vpop.permute.xlu1 %2246 }
 0xb3d   : > { %v3045_v62 = vpop.eup %3044 }
 0xb3e   : > { %v2158_v20 = vsel %vm855_vm2, %v3045_v62, 0.0  ;;  %v3047_v18 = vpop.eup %3046 }
 0xb3f   : > { %2159 = vadd.xlane.f32.xlu0 %v2158_v20  ;;  %v2163_v19 = vmul.f32 %v3047_v18, %v3043_v49 }
 0xb55   : > { %2167 = vrot.lane.b32.xlu0 %v3613_v5, %s3306_s23  ;;  %v2245_v5 = vpop.permute.xlu1 %2244 }
 0xbc8   : > { %v2160_v1 = vpop.xlane.xlu0 %2159 }
 0xbc9   : > { %3048 = vrcp.f32 %v2160_v1 }
 0xbcc   : > { %v2168_v4 = vpop.permute.xlu0 %2167 }
 0xbcd   : > { %2891 = vmatpush3.msra.mxu0 %v2168_v4 }
 0xbce   : > { %2892 = vmatprep.subr.mxu0 %v3302_v0 }
 0xbcf   : > { %2893 = vmatpush3.msra.mxu0 %v2166_v10 }
 0xbd0   : > { %2895 = vmatmul.mubr.msk.f32.vlgmr.msra.gmra.mxu0 %vm855_vm2, %v2163_v19  ;;  %2897 = vmatprep.subr.mxu0 %v3302_v0 }
 0xbd1   : > { %2898 = vmatpush3.msra.mxu0 %v2247_v2  ;;  %2901 = vmatprep.mubr.msk.f32.mxu0 %vm3303_vm0, %v3302_v0 }
 0xbd2   : > { %2899 = vmatprep.subr.mxu0 %v3302_v0 }
 0xbd3   : > { %2900 = vmatpush3.msra.mxu0 %v2245_v5 }
 0xbd6   : > { %v3049_v6 = vpop.eup %3048 }
 0xbd7   : > { %v2164_v12 = vmul.f32 %v3049_v6, %v3045_v62 }
 0xbd9   : > { %2902 = vmatmul.mubr.msk.f32.vlgmr.msra.gmra.mxu0 %vm855_vm2, %v2164_v12 }
 0xc90   : > { %v2240_v0 = vpop.f32.mrf.mxu0 }
 0xc91   : > { %2912 = vmatprep.mubr.msk.f32.mxu1 %vm696_vm1, %v2240_v0 }
 0xc92   : > { %v2896_v21 = vpop.f32.mrf.mxu0 }
 0xc99   : > { %v2319_v22 = vpop.f32.mrf.mxu0 }
 0xc9a   : > { %2913 = vmatmul.mubr.msk.f32.vlgmr.msra.gmra.mxu1 %vm696_vm1, %v2319_v22 }
 0xc9b   : > { %v2903_v23 = vpop.f32.mrf.mxu0 }
 0xd5a   : > { %v2914_v9 = vpop.f32.mrf.mxu1 }
 0xd5b   : > { %v2410_v11 = vadd.f32 %v2914_v9, %v3822_v52 }
 0xd5c   : > { %v2400_v17 = vpop.f32.mrf.mxu1 }
 0xd5d   : > { %2412 = vst [vmem:[%s447_s2 + $0x8] sm:$0xff] %v2410_v11  ;;  %v2409_v24 = vadd.f32 %v2400_v17, %v3825_v54 }
 0xd5f   : > { %2411 = vst [vmem:[%s447_s2] sm:$0xff] %v2409_v24 }
 0xd60   : > { %3223 = shalt.err (!%p3220_p12)
}
 0xd61   : > { %s3224_s18 = scalar_lea.hbm %s3856_s17, 256  ;;  %s3228_s19 = scalar_lea.hbm %s3909_s9, 512 }
 0xd62   : > { %p3225_p11 = scmp.ne.s32.totalorder %s3856_s17, %s3224_s18  ;;  %p3229_p3 = scmp.lt.s32.totalorder %s3856_s17, %s3909_s9 }
 0xd63   : > { %p3230_p5 = scmp.lt.s32.totalorder %s3228_s19, %s3224_s18 }
 0xd64   : > { %p3226_p6 = pnand %p3225_p11, %p3464_p9 }
 0xd65   : > { %p3231_p7 = por %p3230_p5, %p3229_p3 }
 0xd66   : > { %p3227_p8 = pneg %p3226_p6 }
 0xd68   : > { %p3232_p13 = pnand %p3231_p7, %p3227_p8 }
 0xd6a   : > { %3235 = shalt.err (!%p3232_p13)
}
 0xd6b   : > { %s3308_s7 = smov 128   ;;  %s3309_s23 = smov 8  }
 0xd6c   : > { %2935 = dma.vmem_to_hbm [thread:$0]  (%p3464_p9), %s3851_s21, 256, %s3856_s17, %s2414_s28, %s3308_s7, %s3308_s7, %s3309_s23  }
 0xd6d PF: > { %s2442_s2 = sand.u32 1, %s3278_s30   ;;  %p3949_p1 = scmp.ne.s32.totalorder %s3925_s16, 0 }
 0xd6e   : > { %p3950_p0 = scmp.ge.s32.totalorder %s3290_s12, 2  ;;  %s2443_s3 = scalar_lea.sflag [#allocation4], %s2442_s2 }
 0xd70   : > { %p2958_p2 = pnand %p3950_p0, %p3949_p1 }
 0xd72   : > { %p2959_p4 = pneg %p2958_p2 }
 0xd74   : > { %3273 = dma.done.wait (%p2959_p4), %s2443_s3, 256  }
 0xd75   : > { %3275 = vsyncadd (%p2959_p4), %s2443_s3, 4294967040  ;;  %s3951_s22 = sld [smem:[#allocation20_spill]]  ;;  %p27_p10 = scmp.ge.s32.totalorder %s3454_s20, 4  }
 0xd76   : > { %s3952_s11 = sld [smem:[#allocation21_spill]]  ;;  %s3953_s30 = smov %s3282_s10 }
 0xd77   : > { %s3955_s12 = smov %s3454_s20  ;;  %29 = sbr.rel (!%p27_p10) target bundleno = 15 (0xf), region = 133 }
 0xd7b   : > { %s3954_s10 = smov %s3951_s22 }
 0xd7c   :  { %2448 = vsyncpa [#allocation3], 1 }
 0xd7d   :  { %2450 = vsyncpa [#allocation3 + $0x1], 1 }
 0xd7e   :  { %2451 = vsyncpa [#allocation6], 1 }
 0xd7f   :  { %2453 = vsyncpa [#allocation6 + $0x1], 1 }
 0xd80   :  { %2454 = vsyncpa [#allocation9], 1 }
 0xd81   :  { %2455 = vsyncpa [#allocation12], 1 }
 0xd82   :  { %2456 = vsyncpa [#allocation4], 1 }
 0xd83   :  { %2458 = vsyncpa [#allocation4 + $0x1], 1 }

// kernel: tpu_custom_call.1
= control target key start
LH: loop header
LB: loop body
LE: loop exit
PB: predicated region body
PF: predicated region fallthrough
CT: control target
= control target key end

     0   :  { %s3900_s0 = inlined_call_operand.hbm [shape: f32[4,8,128], index: 0, kind: input, shape index: {}]   ;;  %s3901_s1 = inlined_call_operand.hbm [shape: f32[4,16,128], index: 1, kind: input, shape index: {}]   ;;  %s3902_s2 = inlined_call_operand.hbm [shape: f32[8,16], index: 2, kind: input, shape index: {}]   ;;  %s3903_s3 = inlined_call_operand.hbm [shape: f32[128,128], index: 3, kind: input, shape index: {}]   ;;  %s3904_s4 = inlined_call_operand.vmem [shape: f32[1,128], index: 4, kind: input, shape index: {}]   ;;  %s3905_s5 = inlined_call_operand.hbm [shape: f32[128,256], index: 5, kind: input, shape index: {}]   ;;  %s3906_s6 = inlined_call_operand.vmem [shape: f32[1,256], index: 6, kind: input, shape index: {}]   ;;  %s3907_s7 = inlined_call_operand.hbm [shape: f32[4,32,128], index: 7, kind: input, shape index: {}]   ;;  %s3908_s8 = inlined_call_operand.vmem [shape: f32[1,128], index: 8, kind: input, shape index: {}]   ;;  %s3909_s9 = inlined_call_operand.hbm [shape: f32[4,8,128], index: 9, kind: output, shape index: {}]  }
   0x1   :  { %3918 = sst [smem:[#allocation22_spill]] %s3900_s0 }
   0x2   :  { %3919 = sst [smem:[#allocation23_spill]] %s3902_s2 }
   0x3   :  { %3920 = sst [smem:[#allocation24_spill]] %s3903_s3 }
   0x4   :  { %3921 = sst [smem:[#allocation25_spill]] %s3905_s5 }
   0x5   :  { %3922 = sst [smem:[#allocation26_spill]] %s3907_s7 }
   0x6   :  { %14 = vsyncpa [#allocation3], 0 }
   0x7   :  { %16 = vsyncpa [#allocation3 + $0x1], 0 }
   0x8   :  { %17 = vsyncpa [#allocation6], 0 }
   0x9   :  { %19 = vsyncpa [#allocation6 + $0x1], 0 }
   0xa   :  { %20 = vsyncpa [#allocation9], 0 }
   0xb   :  { %21 = vsyncpa [#allocation12], 0 }
   0xc   :  { %22 = vsyncpa [#allocation4], 0 }
   0xd   :  { %24 = vsyncpa [#allocation4 + $0x1], 0  ;;  %s3360_s30 = smov 0   ;;  %s3362_s10 = smov 0  }
   0xe   :  { %s3364_s11 = smov 0   ;;  %s3366_s12 = smov 0  }
   0xf LB: > { %3923 = sst [smem:[#allocation20_spill]] %s3286_s11  ;;  %s3381_s13 = sadd.s32 4294967295, %s3290_s12   ;;  %s3290_s12 = sphi %s3366_s12, %s3955_s12   ;;  %s3286_s11 = sphi %s3364_s11, %s3952_s11   ;;  %s3282_s10 = sphi %s3362_s10, %s3954_s10   ;;  %s3278_s30 = sphi %s3360_s30, %s3953_s30  }
  0x10   : > { %s2561_s14 = sadd.s32 4294967294, %s3290_s12   ;;  %p50_p0 = scmp.ne.s32.totalorder %s3282_s10, %s3278_s30 }
  0x11   : > { %p3910_p1 = scmp.eq.s32.totalorder %s3381_s13, 0  ;;  %p253_p3 = scmp.eq.s32.totalorder %s2561_s14, 1 }
  0x12   : > { %p2562_p5 = scmp.ge.s32.totalorder %s3290_s12, 1  ;;  %p260_p7 = scmp.lt.s32.totalorder %s3290_s12, 3 }
  0x13   : > { %p3390_p4 = por %p3910_p1, %p50_p0  ;;  %p3395_p6 = por %p253_p3, %p50_p0 }
  0x14   : > { %p3400_p8 = pnand %p2562_p5, %p260_p7  ;;  %s3292_s18 = smov [#allocation7]  }
  0x15   : > { %s3924_s15 = scalar_select %p3390_p4, 1, 0 }
  0x16   : > { %s3925_s16 = scalar_select %p3395_p6, 1, 0 }
  0x17   : > { %s3926_s17 = scalar_select %p3400_p8, 1, 0 }
  0x18   : > { %s273_s19 = sshll.u32 %s3292_s18, 4  ;;  %p2937_p10 = pneg %p3400_p8  ;;  %s274_s19 = int_to_ptr.vmem [resolvable:$true] %s273_s19 }
  0x19   : > { %s3293_s20 = smov [#allocation8]   ;;  %s3294_s23 = smov [#allocation10]  }
  0x1a   : > { %s283_s21 = sshll.u32 %s3293_s20, 4  ;;  %p3409_p11 = pnand %p2937_p10, %p3910_p1  ;;  %s284_s21 = int_to_ptr.vmem [resolvable:$true] %s283_s21 }
  0x1b   : > { %s299_s24 = sshll.u32 %s3294_s23, 4  ;;  %s3061_s25 = scalar_lea.vmem %s274_s19, 128  ;;  %s300_s24 = int_to_ptr.vmem [resolvable:$true] %s299_s24 }
  0x1c   : > { %p3052_p12 = pneg %p3409_p11  ;;  %p3062_p13 = scmp.ne.s32.totalorder %s274_s19, %s3061_s25 }
  0x1d   : > { %p3069_p5 = scmp.lt.s32.totalorder %s274_s19, %s274_s19  ;;  %p3070_p7 = scmp.lt.s32.totalorder %s3061_s25, %s3061_s25 }
  0x1e   : > { %p3064_p0 = pnand %p3062_p13, %p3052_p12 }
  0x1f   : > { %p3071_p9 = por %p3070_p7, %p3069_p5 }
  0x20   : > { %p3065_p3 = pneg %p3064_p0 }
  0x22   : > { %p3072_p10 = pnand %p3071_p9, %p3065_p3 }
  0x24   : > { %3075 = shalt.err (!%p3072_p10)
}
  0x25   : > { %s3928_s2 = sld [smem:[#allocation23_spill]]  ;;  %s3087_s28 = scalar_lea.vmem %s284_s21, 2048 }
  0x26   : > { %p3088_p1 = scmp.ne.s32.totalorder %s284_s21, %s3087_s28  ;;  %p3095_p13 = scmp.lt.s32.totalorder %s284_s21, %s284_s21 }
  0x27   : > { %p3096_p0 = scmp.lt.s32.totalorder %s3087_s28, %s3087_s28 }
  0x28   : > { %p3090_p2 = pnand %p3088_p1, %p3052_p12 }
  0x29   : > { %p3097_p4 = por %p3096_p0, %p3095_p13 }
  0x2a   : > { %p3091_p6 = pneg %p3090_p2 }
  0x2b   : > { %2940 = dma.hbm_to_vmem [thread:$0]  (!%p3409_p11), %s3928_s2, 128, %s274_s19, [#allocation6]  }
  0x2c   : > { %p3098_p8 = pnand %p3097_p4, %p3091_p6 }
  0x2e   : > { %3101 = shalt.err (!%p3098_p8)
}
  0x2f   : > { %s3913_s29 = smov 128   ;;  %s3915_s14 = smov 8  }
  0x30   : > { %s3929_s3 = sld [smem:[#allocation24_spill]]  ;;  %s3113_s20 = scalar_lea.vmem %s300_s24, 4096 }
  0x31   : > { %p3114_p1 = scmp.ne.s32.totalorder %s300_s24, %s3113_s20  ;;  %p3121_p6 = scmp.lt.s32.totalorder %s300_s24, %s300_s24 }
  0x32   : > { %p3122_p8 = scmp.lt.s32.totalorder %s3113_s20, %s3113_s20 }
  0x33   : > { %p3116_p2 = pnand %p3114_p1, %p3052_p12 }
  0x34   : > { %p3123_p9 = por %p3122_p8, %p3121_p6 }
  0x35   : > { %p3117_p4 = pneg %p3116_p2 }
  0x36   : > { %2943 = dma.hbm_to_vmem [thread:$0]  (!%p3409_p11), %s3929_s3, 2048, %s284_s21, [#allocation9], %s3913_s29, %s3913_s29, %s3915_s14  }
  0x37   : > { %p3124_p3 = pnand %p3123_p9, %p3117_p4 }
  0x39   : > { %3127 = shalt.err (!%p3124_p3)
}
  0x3a   : > { %s3297_s23 = smov 256   ;;  %s3298_s25 = smov 16  }
  0x3b   : > { %s3930_s5 = sld [smem:[#allocation25_spill]]  ;;  %s3299_s21 = smov [#allocation11]  }
  0x3c   : > { %s315_s28 = sshll.u32 %s3299_s21, 4  ;;  %s316_s28 = int_to_ptr.vmem [resolvable:$true] %s315_s28 }
  0x3d   : > { %s3139_s18 = scalar_lea.vmem %s316_s28, 2048  ;;  %p3147_p13 = scmp.lt.s32.totalorder %s316_s28, %s316_s28 }
  0x3e   : > { %p3140_p5 = scmp.ne.s32.totalorder %s316_s28, %s3139_s18  ;;  %p3148_p0 = scmp.lt.s32.totalorder %s3139_s18, %s3139_s18 }
  0x40   : > { %p3142_p7 = pnand %p3140_p5, %p3052_p12  ;;  %p3149_p1 = por %p3148_p0, %p3147_p13 }
  0x41   : > { %2946 = dma.hbm_to_vmem [thread:$0]  (!%p3409_p11), %s3930_s5, 4096, %s300_s24, [#allocation9], %s3297_s23, %s3297_s23, %s3298_s25  }
  0x42   : > { %p3143_p10 = pneg %p3142_p7 }
  0x44   : > { %p3150_p2 = pnand %p3149_p1, %p3143_p10 }
  0x46   : > { %3153 = shalt.err (!%p3150_p2)
}
  0x47   : > { %s3931_s7 = sld [smem:[#allocation26_spill]]  ;;  %s3454_s20 = sadd.s32 1, %s3290_s12  }
  0x48   : > { %s37_s22 = sadd.s32 1, %s3286_s11  ;;  %s34_s23 = ssub.s32 %s3290_s12, %s3454_s20 }
  0x49   : > { %p44_p12 = scmp.ne.s32.totalorder %s3286_s11, %s3282_s10  ;;  %p35_p4 = scmp.eq.s32.totalorder %s34_s23, 0 }
  0x4a   : > { %p45_p6 = scmp.eq.s32.totalorder %s3290_s12, 0  ;;  %p3932_p8 = scmp.eq.s32.totalorder %s3381_s13, 1 }
  0x4b   : > { %p2965_p3 = scmp.lt.s32.totalorder %s3290_s12, 2  ;;  %s3473_s27 = sand.u32 1, %s3286_s11  }
  0x4c   : > { %p3464_p9 = por %p3932_p8, %p44_p12  ;;  %p46_p5 = por %p45_p6, %p44_p12 }
  0x4d   : > { %2949 = dma.hbm_to_vmem [thread:$0]  (!%p3409_p11), %s3931_s7, 2048, %s316_s28, [#allocation12], %s3913_s29, %s3913_s29, %s3915_s14  }
  0x4e   : > { %s3470_s26 = scalar_select %p35_p4, %s3286_s11, %s37_s22  }
  0x4f   : > { %s2568_s21 = sshll.u32 %s3473_s27, 4  ;;  %s2630_s28 = sshll.u32 %s3290_s12, 8 }
  0x50   : > { %3934 = sst [smem:[#allocation21_spill]] %s3470_s26  ;;  %s336_s23 = scalar_lea.vmem [#allocation2], %s2568_s21 }
  0x51   : > { %s3935_s0 = sld [smem:[#allocation22_spill]]  ;;  %s343_s29 = sshll.u32 %s336_s23, 4  ;;  %s3482_s29 = int_to_ptr.vmem [resolvable:$true] %s343_s29 }
  0x52   : > { %p3484_p11 = pnand %p2965_p3, %p46_p5  ;;  %s333_s3 = scalar_lea.sflag [#allocation3], %s3473_s27 }
  0x54   : > { %p3156_p10 = pneg %p3484_p11 }
  0x57   : > { %s3480_s19 = scalar_lea.hbm %s3935_s0, %s2630_s28  ;;  %s3159_s18 = scalar_lea.hbm %s3935_s0, 512 }
  0x58   : > { %s3154_s5 = scalar_lea.hbm %s3480_s19, 256  ;;  %p3160_p1 = scmp.lt.s32.totalorder %s3480_s19, %s3935_s0 }
  0x59   : > { %p3155_p7 = scmp.ne.s32.totalorder %s3480_s19, %s3154_s5  ;;  %p3161_p2 = scmp.lt.s32.totalorder %s3159_s18, %s3154_s5 }
  0x5b   : > { %p3157_p13 = pnand %p3156_p10, %p3155_p7  ;;  %p3162_p12 = por %p3161_p2, %p3160_p1 }
  0x5d   : > { %p3158_p0 = pneg %p3157_p13 }
  0x5f   : > { %p3163_p4 = pnand %p3162_p12, %p3158_p0 }
  0x61   : > { %3166 = shalt.err (!%p3163_p4)
}
  0x62   : > { %s3167_s14 = scalar_lea.vmem %s3482_s29, 256  ;;  %s3300_s21 = smov [#allocation2]  }
  0x63   : > { %p3168_p6 = scmp.ne.s32.totalorder %s3482_s29, %s3167_s14  ;;  %s3172_s28 = sshll.u32 %s3300_s21, 4  ;;  %s3173_s28 = int_to_ptr.vmem [resolvable:$false] %s3172_s28 }
  0x64   : > { %s3174_s2 = scalar_lea.vmem %s3173_s28, 512  ;;  %p3175_p5 = scmp.lt.s32.totalorder %s3482_s29, %s3173_s28 }
  0x65   : > { %p3170_p8 = pnand %p3168_p6, %p3156_p10  ;;  %p3176_p7 = scmp.lt.s32.totalorder %s3174_s2, %s3167_s14 }
  0x67   : > { %p3171_p3 = pneg %p3170_p8  ;;  %p3177_p13 = por %p3176_p7, %p3175_p5 }
  0x69   : > { %p3178_p1 = pnand %p3177_p13, %p3171_p3 }
  0x6b   : > { %3181 = shalt.err (!%p3178_p1)
}
  0x6c   : > { %s3937_s5 = smov 8   ;;  %s3938_s18 = smov 128  }
  0x6d   : > { %2953 = dma.hbm_to_vmem [thread:$0]  (!%p3484_p11), %s3480_s19, 256, %s3482_s29, %s333_s3, %s3938_s18, %s3938_s18, %s3937_s5  }
  0x6e   : > { %s2632_s24 = sshll.u32 %s3290_s12, 9  ;;  %s3939_s21 = sshll.u32 %s3473_s27, 5 }
  0x6f   : > { %s3524_s14 = scalar_lea.hbm %s3901_s1, %s2632_s24  ;;  %s357_s28 = scalar_lea.vmem [#allocation5], %s3939_s21 }
  0x70   : > { %s365_s0 = sshll.u32 %s357_s28, 4  ;;  %s3940_s7 = sand.u32 1, %s3290_s12   ;;  %s3528_s0 = int_to_ptr.vmem [resolvable:$true] %s365_s0 }
  0x71   : > { %s354_s26 = scalar_lea.sflag [#allocation6], %s3940_s7  ;;  %s3182_s11 = scalar_lea.hbm %s3524_s14, 512 }
  0x72   : > { %p3183_p0 = scmp.ne.s32.totalorder %s3524_s14, %s3182_s11  ;;  %s3187_s19 = scalar_lea.hbm %s3901_s1, 1024 }
  0x73   : > { %p3188_p4 = scmp.lt.s32.totalorder %s3524_s14, %s3901_s1  ;;  %p3189_p6 = scmp.lt.s32.totalorder %s3187_s19, %s3182_s11 }
  0x74   : > { %p3185_p2 = pnand %p3183_p0, %p3156_p10 }
  0x75   : > { %p3190_p8 = por %p3189_p6, %p3188_p4 }
  0x76   : > { %p3186_p12 = pneg %p3185_p2 }
  0x78   : > { %p3191_p3 = pnand %p3190_p8, %p3186_p12 }
  0x7a   : > { %3194 = shalt.err (!%p3191_p3)
}
  0x7b   : > { %s3195_s7 = scalar_lea.vmem %s3528_s0, 512  ;;  %s3301_s23 = smov [#allocation5]  }
  0x7c   : > { %p3196_p5 = scmp.ne.s32.totalorder %s3528_s0, %s3195_s7  ;;  %s3200_s2 = sshll.u32 %s3301_s23, 4  ;;  %s3201_s2 = int_to_ptr.vmem [resolvable:$false] %s3200_s2 }
  0x7d   : > { %s3202_s21 = scalar_lea.vmem %s3201_s2, 1024  ;;  %p3203_p1 = scmp.lt.s32.totalorder %s3528_s0, %s3201_s2 }
  0x7e   : > { %p3198_p7 = pnand %p3196_p5, %p3156_p10  ;;  %p3204_p0 = scmp.lt.s32.totalorder %s3202_s21, %s3195_s7 }
  0x80   : > { %p3199_p13 = pneg %p3198_p7  ;;  %p3205_p2 = por %p3204_p0, %p3203_p1 }
  0x82   : > { %p3206_p4 = pnand %p3205_p2, %p3199_p13 }
  0x84   : > { %3209 = shalt.err (!%p3206_p4)
}
  0x85   : > { %2956 = dma.hbm_to_vmem [thread:$0]  (!%p3484_p11), %s3524_s14, 512, %s3528_s0, %s354_s26, %s3938_s18, %s3938_s18, %s3937_s5  }
  0x86   : > { %p3941_p10 = scmp.ne.s32.totalorder %s3926_s17, 0 }
  0x87   : > { %s3560_s11 = sand.u32 (!%p3941_p10), 1, %s3282_s10   ;;  %p3942_p12 = scmp.ne.s32.totalorder (!%p3941_p10), %s3924_s15, 0 }
  0x88   : > { %377 = sbr.rel (%p3941_p10) target bundleno = 3437 (0xd6d), region = 56  ;;  %s2576_s28 = sshll.u32 (!%p3941_p10), %s3560_s11, 4 }
  0x89   : > { %s380_s3 = scalar_lea.sflag (!%p3941_p10), [#allocation3], %s3560_s11  ;;  %s3566_s22 = scalar_lea.vmem (!%p3941_p10), [#allocation2], %s2576_s28 }
  0x8d   : > { %3253 = dma.done.wait (%p3942_p12), %s380_s3, 256  }
  0x8e   : > { %3255 = vsyncadd (%p3942_p12), %s380_s3, 4294967040  ;;  %s388_s0 = sand.u32 1, %s3381_s13   ;;  %s2577_s17 = sshll.u32 %s3560_s11, 5 }
  0x8f   : > { %s389_s26 = scalar_lea.sflag [#allocation6], %s388_s0  ;;  %s3574_s5 = scalar_lea.vmem [#allocation5], %s2577_s17 }
  0x90   : > { %3257 = dma.done.wait (%p3942_p12), %s389_s26, 512  }
  0x91   : > { %3259 = vsyncadd (%p3942_p12), %s389_s26, 4294966784  ;;  %p3943_p11 = scmp.eq.s32.totalorder %s3381_s13, 0 }
  0x93   : > { %3261 = dma.done.wait (%p3943_p11), [#allocation6], 128   ;;  %p3944_p6 = pmov %p3943_p11 }
  0x95   : > { %3263 = vsyncadd (%p3944_p6), [#allocation6], 4294967168  ;;  %p3945_p8 = pmov %p3944_p6 }
  0x96   : > { %p3946_p3 = pmov %p3944_p6 }
  0x97   : > { %3265 = dma.done.wait (%p3945_p8), [#allocation9], 6144  }
  0x98   : > { %3267 = vsyncadd (%p3946_p3), [#allocation9], 4294961152  ;;  %p3947_p5 = pmov %p3946_p3 }
  0x99   : > { %p3948_p7 = pmov %p3946_p3 }
  0x9a   : > { %3269 = dma.done.wait (%p3947_p5), [#allocation12], 2048  }
  0x9b   : > { %3271 = vsyncadd (%p3948_p7), [#allocation12], 4294965248  ;;  %v3302_v0 = vmov 0.0   ;;  %v586_v1 = vld [vmem:[#allocation10 + $0xf8] sm:$0xff]  ;;  %v585_v2 = vld [vmem:[#allocation10 + $0xf0] sm:$0xff]  ;;  %vm3303_vm0 = vmmov 0   ;;  %v589_v55 = vlaneseq }
  0x9c   : > { %663 = vmatprep.mubr.f32.mxu1 %v3302_v0  ;;  %v584_v3 = vld [vmem:[#allocation10 + $0xe8] sm:$0xff]  ;;  %599 = vmatprep.subr.mxu1 %v586_v1  ;;  %v583_v4 = vld [vmem:[#allocation10 + $0xe0] sm:$0xff]  ;;  %v582_v5 = vld [vmem:[#allocation10 + $0xd8] sm:$0xff]  ;;  %vm696_vm1 = vcmask 261120   ;;  %vm855_vm2 = vcmask 130048   ;;  %s3304_s19 = smov 96  }
  0x9d   : > { %600 = vmatpush1.msra.mxu1 %v585_v2  ;;  %v472_v6 = vld [vmem:[#allocation8 + $0x78] sm:$0xff]  ;;  %v581_v7 = vld [vmem:[#allocation10 + $0xd0] sm:$0xff]  ;;  %v580_v9 = vld [vmem:[#allocation10 + $0xc8] sm:$0xff]  ;;  %v590_v56 = vshrl.u32 %v589_v55, 7  ;;  %s3305_s27 = smov 64   ;;  %s3306_s23 = smov 32  }
  0x9e   : > { %601 = vmatprep.subr.mxu1 %v584_v3  ;;  %2724 = vmatprep.subr.mxu0 %v472_v6  ;;  %v471_v8 = vld [vmem:[#allocation8 + $0x70] sm:$0xff]  ;;  %v470_v10 = vld [vmem:[#allocation8 + $0x68] sm:$0xff]  ;;  %v579_v11 = vld [vmem:[#allocation10 + $0xc0] sm:$0xff]  ;;  %s447_s2 = scalar_lea.vmem [#allocation13], %s2576_s28  ;;  %s2633_s3 = sshll.u32 %s3381_s13, 8 }
  0x9f   : > { %602 = vmatpush1.msra.mxu1 %v583_v4  ;;  %2725 = vmatpush3.msra.mxu0 %v472_v6  ;;  %v578_v12 = vld [vmem:[#allocation10 + $0xb8] sm:$0xff]  ;;  %v469_v13 = vld [vmem:[#allocation8 + $0x60] sm:$0xff]  ;;  %v577_v14 = vld [vmem:[#allocation10 + $0xb0] sm:$0xff]  ;;  %v591_v57 = vsub.s32 0, %v590_v56  ;;  %v595_v60 = vsub.s32 1, %v590_v56  ;;  %s2427_s21 = sshll.u32 %s447_s2, 4  ;;  %s3856_s17 = scalar_lea.hbm %s3909_s9, %s2633_s3  ;;  %s3851_s21 = int_to_ptr.vmem [resolvable:$true] %s2427_s21 }
  0xa0   : > { %603 = vmatprep.subr.mxu1 %v582_v5  ;;  %2726 = vmatprep.subr.mxu0 %v471_v8  ;;  %v576_v15 = vld [vmem:[#allocation10 + $0xa8] sm:$0xff]  ;;  %v468_v16 = vld [vmem:[#allocation8 + $0x58] sm:$0xff]  ;;  %v575_v17 = vld [vmem:[#allocation10 + $0xa0] sm:$0xff]  ;;  %s2414_s28 = scalar_lea.sflag [#allocation4], %s3560_s11  ;;  %s3210_s13 = scalar_lea.vmem %s3851_s21, 256 }
  0xa1   : > { %604 = vmatpush1.msra.mxu1 %v581_v7  ;;  %2727 = vmatpush3.msra.mxu0 %v471_v8  ;;  %v574_v18 = vld [vmem:[#allocation10 + $0x98] sm:$0xff]  ;;  %v467_v19 = vld [vmem:[#allocation8 + $0x50] sm:$0xff]  ;;  %v572_v21 = vld [vmem:[#allocation10 + $0x88] sm:$0xff]  ;;  %p3211_p13 = scmp.ne.s32.totalorder %s3851_s21, %s3210_s13  ;;  %s3307_s26 = smov [#allocation13]  }
  0xa2   : > { %605 = vmatprep.subr.mxu1 %v580_v9  ;;  %2728 = vmatprep.subr.mxu0 %v470_v10  ;;  %v573_v20 = vld [vmem:[#allocation10 + $0x90] sm:$0xff]  ;;  %v466_v22 = vld [vmem:[#allocation8 + $0x48] sm:$0xff]  ;;  %v571_v23 = vld [vmem:[#allocation10 + $0x80] sm:$0xff] }
  0xa3   : > { %606 = vmatpush1.msra.mxu1 %v579_v11  ;;  %2729 = vmatpush3.msra.mxu0 %v470_v10  ;;  %v570_v24 = vld [vmem:[#allocation10 + $0x78] sm:$0xff]  ;;  %v465_v25 = vld [vmem:[#allocation8 + $0x40] sm:$0xff]  ;;  %v569_v26 = vld [vmem:[#allocation10 + $0x70] sm:$0xff]  ;;  %p3212_p1 = pnand %p3211_p13, %p3464_p9 }
  0xa4   : > { %607 = vmatprep.subr.mxu1 %v578_v12  ;;  %2730 = vmatprep.subr.mxu0 %v469_v13  ;;  %v568_v27 = vld [vmem:[#allocation10 + $0x68] sm:$0xff]  ;;  %v464_v28 = vld [vmem:[#allocation8 + $0x38] sm:$0xff]  ;;  %v567_v29 = vld [vmem:[#allocation10 + $0x60] sm:$0xff] }
  0xa5   : > { %608 = vmatpush1.msra.mxu1 %v577_v14  ;;  %2731 = vmatpush3.msra.mxu0 %v469_v13  ;;  %v566_v30 = vld [vmem:[#allocation10 + $0x58] sm:$0xff]  ;;  %v463_v31 = vld [vmem:[#allocation8 + $0x30] sm:$0xff]  ;;  %v564_v33 = vld [vmem:[#allocation10 + $0x48] sm:$0xff]  ;;  %p3213_p0 = pneg %p3212_p1 }
  0xa6   : > { %609 = vmatprep.subr.mxu1 %v576_v15  ;;  %2732 = vmatprep.subr.mxu0 %v468_v16  ;;  %v565_v32 = vld [vmem:[#allocation10 + $0x50] sm:$0xff]  ;;  %v462_v34 = vld [vmem:[#allocation8 + $0x28] sm:$0xff]  ;;  %v563_v35 = vld [vmem:[#allocation10 + $0x40] sm:$0xff] }
  0xa7   : > { %610 = vmatpush1.msra.mxu1 %v575_v17  ;;  %2733 = vmatpush3.msra.mxu0 %v468_v16  ;;  %v562_v36 = vld [vmem:[#allocation10 + $0x38] sm:$0xff]  ;;  %v461_v37 = vld [vmem:[#allocation8 + $0x20] sm:$0xff]  ;;  %v561_v38 = vld [vmem:[#allocation10 + $0x30] sm:$0xff] }
  0xa8   : > { %611 = vmatprep.subr.mxu1 %v574_v18  ;;  %2734 = vmatprep.subr.mxu0 %v467_v19  ;;  %v560_v39 = vld [vmem:[#allocation10 + $0x28] sm:$0xff]  ;;  %v460_v40 = vld [vmem:[#allocation8 + $0x18] sm:$0xff]  ;;  %v559_v41 = vld [vmem:[#allocation10 + $0x20] sm:$0xff] }
  0xa9   : > { %612 = vmatpush1.msra.mxu1 %v573_v20  ;;  %2735 = vmatpush3.msra.mxu0 %v467_v19  ;;  %v558_v42 = vld [vmem:[#allocation10 + $0x18] sm:$0xff]  ;;  %v459_v43 = vld [vmem:[#allocation8 + $0x10] sm:$0xff]  ;;  %v556_v45 = vld [vmem:[#allocation10 + $0x8] sm:$0xff] }
  0xaa   : > { %613 = vmatprep.subr.mxu1 %v572_v21  ;;  %2736 = vmatprep.subr.mxu0 %v466_v22  ;;  %v557_v44 = vld [vmem:[#allocation10 + $0x10] sm:$0xff]  ;;  %v458_v46 = vld [vmem:[#allocation8 + $0x8] sm:$0xff]  ;;  %v555_v47 = vld [vmem:[#allocation10] sm:$0xff] }
  0xab   : > { %614 = vmatpush1.msra.mxu1 %v571_v23  ;;  %2737 = vmatpush3.msra.mxu0 %v466_v22  ;;  %v453_v48 = vld [vmem:[%s3574_s5] sm:$0xff]  ;;  %v457_v49 = vld [vmem:[#allocation8] sm:$0xff]  ;;  %v455_v53 = vld [vmem:[%s3574_s5 + $0x10] sm:$0xff] }
  0xac   : > { %615 = vmatprep.subr.mxu1 %v570_v24  ;;  %2738 = vmatprep.subr.mxu0 %v465_v25  ;;  %v451_v50 = vld [vmem:[%s3566_s22] sm:$0xff]  ;;  %v452_v51 = vld [vmem:[%s3566_s22 + $0x8] sm:$0xff] }
  0xad   : > { %616 = vmatpush1.msra.mxu1 %v569_v26  ;;  %2739 = vmatpush3.msra.mxu0 %v465_v25  ;;  %v454_v52 = vld [vmem:[%s3574_s5 + $0x8] sm:$0xff]  ;;  %v456_v54 = vld [vmem:[%s3574_s5 + $0x18] sm:$0xff]  ;;  %v587_v58 = vld [vmem:[%s3906_s6] sm:$0x3]  ;;  %s3214_s5 = sshll.u32 %s3307_s26, 4  ;;  %s3215_s5 = int_to_ptr.vmem [resolvable:$false] %s3214_s5 }
  0xae   : > { %617 = vmatprep.subr.mxu1 %v568_v27  ;;  %2740 = vmatprep.subr.mxu0 %v464_v28  ;;  %v592_v62 = vrot.slane %v587_v58, %v591_v57  ;;  %v596_v2 = vrot.slane %v587_v58, %v595_v60  ;;  %v2583_v6 = vld [vmem:[%s3904_s4] ss:$0 sm:$0xff]  ;;  %s3216_s15 = scalar_lea.vmem %s3215_s5, 512  ;;  %p3217_p2 = scmp.lt.s32.totalorder %s3851_s21, %s3215_s5 }
  0xaf   : > { %618 = vmatpush1.msra.mxu1 %v567_v29  ;;  %2741 = vmatpush3.msra.mxu0 %v464_v28  ;;  %v3661_v20 = vld [vmem:[#allocation7] sm:$0xff]  ;;  %p3218_p4 = scmp.lt.s32.totalorder %s3216_s15, %s3210_s13 }
  0xb0   : > { %619 = vmatprep.subr.mxu1 %v566_v30  ;;  %2742 = vmatprep.subr.mxu0 %v463_v31 }
  0xb1   : > { %620 = vmatpush1.msra.mxu1 %v565_v32  ;;  %2743 = vmatpush3.msra.mxu0 %v463_v31  ;;  %p3219_p10 = por %p3218_p4, %p3217_p2 }
  0xb2   : > { %621 = vmatprep.subr.mxu1 %v564_v33  ;;  %2744 = vmatprep.subr.mxu0 %v462_v34 }
  0xb3   : > { %622 = vmatpush1.msra.mxu1 %v563_v35  ;;  %2745 = vmatpush3.msra.mxu0 %v462_v34  ;;  %p3220_p12 = pnand %p3219_p10, %p3213_p0 }
  0xb4   : > { %623 = vmatprep.subr.mxu1 %v562_v36  ;;  %2746 = vmatprep.subr.mxu0 %v461_v37 }
  0xb5   : > { %624 = vmatpush1.msra.mxu1 %v561_v38  ;;  %2747 = vmatpush3.msra.mxu0 %v461_v37 }
  0xb6   : > { %625 = vmatprep.subr.mxu1 %v560_v39  ;;  %2748 = vmatprep.subr.mxu0 %v460_v40 }
  0xb7   : > { %626 = vmatpush1.msra.mxu1 %v559_v41  ;;  %2749 = vmatpush3.msra.mxu0 %v460_v40 }
  0xb8   : > { %627 = vmatprep.subr.mxu1 %v558_v42  ;;  %2750 = vmatprep.subr.mxu0 %v459_v43 }
  0xb9   : > { %628 = vmatpush1.msra.mxu1 %v557_v44  ;;  %2751 = vmatpush3.msra.mxu0 %v459_v43 }
  0xba   : > { %629 = vmatprep.subr.mxu1 %v556_v45  ;;  %2752 = vmatprep.subr.mxu0 %v458_v46 }
  0xbb   : > { %630 = vmatpush1.msra.mxu1 %v555_v47  ;;  %2753 = vmatpush3.msra.mxu0 %v458_v46 }
  0xbc   : > { %664 = vmatmul.mubr.f32.vlgmr.msra.gmra.mxu1 %v453_v48  ;;  %2754 = vmatprep.subr.mxu0 %v457_v49 }
  0xbd   : > { %669 = vmatprep.mubr.f32.mxu1 %v3302_v0  ;;  %2755 = vmatpush3.msra.mxu0 %v457_v49  ;;  %v1027_v49 = vld [vmem:[#allocation11 + $0x18] sm:$0xff] }
  0xbe   : > { %2756 = vmatprep.mubr.f32.mxu0 %v451_v50  ;;  %2759 = vmatprep.subr.mxu0 %v3302_v0  ;;  %v1026_v50 = vld [vmem:[#allocation11 + $0x10] sm:$0xff] }
  0xbf   : > { %2757 = vmatmul.mubr.f32.vlgmr.msra.gmra.mxu0 %v452_v51  ;;  %2773 = vmatprep.subr.mxu1 %v3302_v0  ;;  %v1025_v51 = vld [vmem:[#allocation11 + $0x8] sm:$0xff] }
  0xc0   : > { %670 = vmatmul.mubr.f32.gmra.mxu1 %v454_v52  ;;  %2763 = vmatprep.mubr.msk.f32.mxu0 %vm3303_vm0, %v3302_v0  ;;  %v1024_v52 = vld [vmem:[#allocation11] sm:$0xff] }
  0xc1   : > { %675 = vmatprep.mubr.f32.mxu1 %v3302_v0 }
  0xc4   : > { %676 = vmatmul.mubr.f32.gmra.mxu1 %v455_v53 }
  0xc5   : > { %681 = vmatprep.mubr.f32.mxu1 %v3302_v0 }
  0xc8   : > { %682 = vmatmul.mubr.f32.gmra.mxu1 %v456_v54 }
  0xc9   : > { %2777 = vmatprep.mubr.msk.f32.mxu1 %vm3303_vm0, %v3302_v0 }
 0x17c   : > { %v665_v59 = vpop.f32.mrf.mxu1 }
 0x17d   : > { %v3621_v9 = vadd.f32 %v665_v59, %v592_v62 }
 0x17e   : > { %v667_v61 = vpop.f32.mrf.mxu1 }
 0x17f   : > { %v2758_v63 = vpop.f32.mrf.mxu0  ;;  %v3623_v10 = vadd.f32 %v667_v61, %v596_v2 }
 0x180   : > { %v671_v1 = vpop.f32.mrf.mxu1  ;;  %v3646_v17 = vadd.f32 %v2758_v63, %v2583_v6 }
 0x181   : > { %v3611_v3 = vadd.f32 %v671_v1, %v592_v62  ;;  %v546_v7 = vpop.f32.mrf.mxu0 }
 0x182   : > { %v673_v4 = vpop.f32.mrf.mxu1  ;;  %v3626_v11 = vadd.f32 %v2583_v6, %v546_v7 }
 0x183   : > { %v3613_v5 = vadd.f32 %v673_v4, %v596_v2  ;;  %2760 = vmatpush3.xpose.msk.msra.mxu0 %vm696_vm1, %v3611_v3 }
 0x184   : > { %v677_v8 = vpop.f32.mrf.mxu1  ;;  %2761 = vmatprep.subr.mxu0 %v3302_v0 }
 0x185   : > { %2774 = vmatpush3.msra.mxu1 %v3613_v5  ;;  %v3642_v15 = vadd.f32 %v677_v8, %v592_v62 }
 0x186   : > { %v679_v12 = vpop.f32.mrf.mxu1  ;;  %2775 = vmatprep.subr.mxu1 %v3302_v0 }
 0x187   : > { %2762 = vmatpush3.xpose.msk.msra.mxu0 %vm696_vm1, %v3621_v9  ;;  %2776 = vmatpush3.msra.mxu1 %v3623_v10  ;;  %v3653_v19 = vadd.f32 %v679_v12, %v596_v2 }
 0x188   : > { %v683_v13 = vpop.f32.mrf.mxu1  ;;  %2766 = vmatprep.subr.mxu0 %v3302_v0  ;;  %2787 = vmatprep.subr.mxu1 %v1027_v49 }
 0x189   : > { %v3633_v14 = vadd.f32 %v683_v13, %v592_v62 }
 0x18a   : > { %2764 = vmatmul.mubr.msk.f32.vlgmr.msra.gmra.mxu0 %vm696_vm1, %v3626_v11  ;;  %v685_v16 = vpop.f32.mrf.mxu1 }
 0x18b   : > { %2767 = vmatpush3.xpose.msk.msra.mxu0 %vm696_vm1, %v3633_v14  ;;  %2770 = vmatprep.mubr.msk.f32.mxu0 %vm3303_vm0, %v3302_v0  ;;  %v3649_v18 = vadd.f32 %v685_v16, %v596_v2 }
 0x18c   : > { %2768 = vmatprep.subr.mxu0 %v3302_v0 }
 0x18f   : > { %2769 = vmatpush3.xpose.msk.msra.mxu0 %vm696_vm1, %v3642_v15 }
 0x190   : > { %2780 = vmatprep.subr.mxu0 %v3302_v0 }
 0x192   : > { %2771 = vmatmul.mubr.msk.f32.vlgmr.msra.gmra.mxu0 %vm696_vm1, %v3646_v17 }
 0x193   : > { %2781 = vmatpush3.msra.mxu0 %v3649_v18  ;;  %2784 = vmatprep.mubr.msk.f32.mxu0 %vm3303_vm0, %v3302_v0 }
 0x194   : > { %2782 = vmatprep.subr.mxu0 %v3302_v0 }
 0x195   : > { %2783 = vmatpush3.msra.mxu0 %v3653_v19 }
 0x196   : > { %2798 = vmatprep.subr.mxu0 %v3302_v0 }
 0x24a   : > { %v772_v21 = vpop.f32.mrf.mxu0 }
 0x24b   : > { %v773_v22 = vadd.f32 %v772_v21, %v3661_v20 }
 0x24c   : > { %v2765_v23 = vpop.f32.mrf.mxu0 }
 0x24d   : > { %v856_v24 = vsel %vm855_vm2, %v773_v22, -inf }
 0x24e   : > { %857 = vmax.xlane.f32.xlu0 %v856_v24 }
 0x252   : > { %v851_v25 = vpop.f32.mrf.mxu0 }
 0x253   : > { %v852_v26 = vadd.f32 %v851_v25, %v3661_v20 }
 0x254   : > { %v2772_v27 = vpop.f32.mrf.mxu0 }
 0x255   : > { %v859_v28 = vsel %vm855_vm2, %v852_v26, -inf }
 0x256   : > { %860 = vmax.xlane.f32.xlu0 %v859_v28 }
 0x26c   : > { %1115 = vrot.lane.b32.xlu0 %v3611_v3, %s3304_s19 }
 0x270   : > { %1195 = vrot.lane.b32.xlu0 %v3642_v15, %s3304_s19 }
 0x2d7   : > { %v858_v29 = vpop.xlane.xlu0 %857 }
 0x2d8   : > { %v862_v30 = vsub.f32 %v773_v22, %v858_v29 }
 0x2da   : > { %v864_v31 = vmul.f32 1.442695, %v862_v30 }
 0x2dc   : > { %3018 = vpow2.f32 %v864_v31 }
 0x2df   : > { %v861_v32 = vpop.xlane.xlu0 %860 }
 0x2e0   : > { %v863_v33 = vsub.f32 %v852_v26, %v861_v32 }
 0x2e2   : > { %v866_v34 = vmul.f32 1.442695, %v863_v33 }
 0x2e3   : > { %v1116_v46 = vpop.permute.xlu0 %1115 }
 0x2e4   : > { %3020 = vpow2.f32 %v866_v34 }
 0x2e7   : > { %v1196_v57 = vpop.permute.xlu0 %1195 }
 0x2e9   : > { %v3019_v35 = vpop.eup %3018 }
 0x2ea   : > { %v868_v36 = vsel %vm855_vm2, %v3019_v35, 0.0 }
 0x2eb   : > { %869 = vadd.xlane.f32.xlu1 %v868_v36 }
 0x2f1   : > { %v3021_v37 = vpop.eup %3020 }
 0x2f2   : > { %v871_v38 = vsel %vm855_vm2, %v3021_v37, 0.0 }
 0x2f3   : > { %872 = vadd.xlane.f32.xlu1 %v871_v38 }
 0x304   : > { %1113 = vrot.lane.b32.xlu1 %v3621_v9, %s3304_s19 }
 0x308   : > { %1197 = vrot.lane.b32.xlu1 %v3633_v14, %s3304_s19 }
 0x30c   : > { %1111 = vrot.lane.b32.xlu1 %v3626_v11, %s3304_s19 }
 0x310   : > { %1193 = vrot.lane.b32.xlu1 %v3646_v17, %s3304_s19 }
 0x374   : > { %v870_v39 = vpop.xlane.xlu1 %869 }
 0x375   : > { %3022 = vrcp.f32 %v870_v39 }
 0x37c   : > { %v873_v40 = vpop.xlane.xlu1 %872 }
 0x37d   : > { %3024 = vrcp.f32 %v873_v40  ;;  %v1463_v40 = vld [vmem:[#allocation11 + $0x38] sm:$0xff] }
 0x380   : > { %v1114_v43 = vpop.permute.xlu1 %1113 }
 0x382   : > { %v3023_v41 = vpop.eup %3022 }
 0x383   : > { %v876_v42 = vmul.f32 %v3023_v41, %v3019_v35  ;;  %v1462_v41 = vld [vmem:[#allocation11 + $0x30] sm:$0xff] }
 0x384   : > { %v1198_v47 = vpop.permute.xlu1 %1197 }
 0x385   : > { %2778 = vmatmul.mubr.msk.f32.vlgmr.msra.gmra.mxu1 %vm855_vm2, %v876_v42  ;;  %v1461_v42 = vld [vmem:[#allocation11 + $0x28] sm:$0xff] }
 0x386   : > { %2788 = vmatpush3.msra.mxu1 %v1027_v49 }
 0x387   : > { %2789 = vmatprep.subr.mxu1 %v1026_v50 }
 0x388   : > { %v1112_v48 = vpop.permute.xlu1 %1111  ;;  %2790 = vmatpush3.msra.mxu1 %v1026_v50 }
 0x389   : > { %2791 = vmatprep.subr.mxu1 %v1025_v51 }
 0x38a   : > { %v3025_v44 = vpop.eup %3024  ;;  %2792 = vmatpush3.msra.mxu1 %v1025_v51 }
 0x38b   : > { %v877_v45 = vmul.f32 %v3025_v44, %v3021_v37  ;;  %2793 = vmatprep.subr.mxu1 %v1024_v52 }
 0x38c   : > { %2794 = vmatpush3.msra.mxu1 %v1024_v52  ;;  %v1194_v58 = vpop.permute.xlu1 %1193 }
 0x38d   : > { %2785 = vmatmul.mubr.msk.f32.vlgmr.msra.gmra.mxu0 %vm855_vm2, %v877_v45  ;;  %2805 = vmatprep.subr.mxu1 %v3302_v0 }
 0x38e   : > { %2799 = vmatpush3.xpose.msk.msra.mxu0 %vm696_vm1, %v1116_v46  ;;  %2802 = vmatprep.mubr.msk.f32.mxu0 %vm3303_vm0, %v3302_v0 }
 0x38f   : > { %2800 = vmatprep.subr.mxu0 %v3302_v0 }
 0x392   : > { %2801 = vmatpush3.xpose.msk.msra.mxu0 %vm696_vm1, %v1114_v43  ;;  %v1460_v43 = vld [vmem:[#allocation11 + $0x20] sm:$0xff] }
 0x393   : > { %2812 = vmatprep.subr.mxu0 %v3302_v0 }
 0x395   : > { %2803 = vmatmul.mubr.msk.f32.vlgmr.msra.gmra.mxu0 %vm696_vm1, %v1112_v48 }
 0x396   : > { %2816 = vmatprep.mubr.msk.f32.mxu0 %vm3303_vm0, %v3302_v0 }
 0x445   : > { %v947_v53 = vpop.f32.mrf.mxu1 }
 0x446   : > { %2795 = vmatprep.mubr.msk.f32.mxu1 %vm696_vm1, %v947_v53 }
 0x447   : > { %v2779_v54 = vpop.f32.mrf.mxu1 }
 0x44d   : > { %v1020_v55 = vpop.f32.mrf.mxu0 }
 0x44e   : > { %2796 = vmatmul.mubr.msk.f32.vlgmr.msra.gmra.mxu1 %vm696_vm1, %v1020_v55 }
 0x44f   : > { %2806 = vmatpush3.xpose.msk.msra.mxu1 %vm696_vm1, %v1198_v47  ;;  %v2786_v56 = vpop.f32.mrf.mxu0  ;;  %2809 = vmatprep.mubr.msk.f32.mxu1 %vm3303_vm0, %v3302_v0 }
 0x450   : > { %2807 = vmatprep.subr.mxu1 %v3302_v0 }
 0x453   : > { %2808 = vmatpush3.xpose.msk.msra.mxu1 %vm696_vm1, %v1196_v57 }
 0x454   : > { %2826 = vmatprep.subr.mxu1 %v1463_v40 }
 0x455   : > { %v1189_v59 = vpop.f32.mrf.mxu0 }
 0x456   : > { %v1190_v60 = vadd.f32 %v1189_v59, %v3661_v20  ;;  %2810 = vmatmul.mubr.msk.f32.vlgmr.msra.gmra.mxu1 %vm696_vm1, %v1194_v58 }
 0x457   : > { %v2804_v61 = vpop.f32.mrf.mxu0  ;;  %2827 = vmatpush3.msra.mxu1 %v1463_v40 }
 0x458   : > { %v1275_v62 = vsel %vm855_vm2, %v1190_v60, -inf  ;;  %2828 = vmatprep.subr.mxu1 %v1462_v41 }
 0x459   : > { %1276 = vmax.xlane.f32.xlu0 %v1275_v62  ;;  %2829 = vmatpush3.msra.mxu1 %v1462_v41 }
 0x45a   : > { %2830 = vmatprep.subr.mxu1 %v1461_v42 }
 0x45b   : > { %2831 = vmatpush3.msra.mxu1 %v1461_v42 }
 0x45c   : > { %2832 = vmatprep.subr.mxu1 %v1460_v43 }
 0x45d   : > { %2833 = vmatpush3.msra.mxu1 %v1460_v43 }
 0x45e   : > { %2844 = vmatprep.subr.mxu1 %v3302_v0 }
 0x4e2   : > { %v1277_v63 = vpop.xlane.xlu0 %1276 }
 0x4e3   : > { %v1281_v1 = vsub.f32 %v1190_v60, %v1277_v63  ;;  %v2584_v60 = vld [vmem:[%s3908_s8] ss:$0 sm:$0xff] }
 0x4e5   : > { %v1283_v2 = vmul.f32 1.442695, %v1281_v1 }
 0x4e7   : > { %3026 = vpow2.f32 %v1283_v2 }
 0x4f4   : > { %v3027_v4 = vpop.eup %3026 }
 0x4f5   : > { %v1287_v6 = vsel %vm855_vm2, %v3027_v4, 0.0 }
 0x4f6   : > { %1288 = vadd.xlane.f32.xlu0 %v1287_v6 }
 0x50e   : > { %v3704_v7 = vpop.f32.mrf.mxu1 }
 0x50f   : > { %v1110_v61 = vadd.f32 %v3704_v7, %v2584_v60 }
 0x510   : > { %v3706_v8 = vpop.f32.mrf.mxu1 }
 0x511   : > { %v1109_v63 = vadd.f32 %v2584_v60, %v3706_v8 }
 0x516   : > { %v1271_v12 = vpop.f32.mrf.mxu1 }
 0x517   : > { %v1272_v13 = vadd.f32 %v1271_v12, %v3661_v20 }
 0x518   : > { %v2811_v16 = vpop.f32.mrf.mxu1 }
 0x519   : > { %v1278_v21 = vsel %vm855_vm2, %v1272_v13, -inf }
 0x51a   : > { %1279 = vmax.xlane.f32.xlu1 %v1278_v21 }
 0x52b   : > { %1299 = vrot.lane.b32.xlu1 %v3623_v10, %s3304_s19 }
 0x52f   : > { %1382 = vrot.lane.b32.xlu1 %v3649_v18, %s3304_s19 }
 0x533   : > { %1380 = vrot.lane.b32.xlu1 %v3653_v19, %s3304_s19 }
 0x537   : > { %1549 = vrot.lane.b32.xlu1 %v3621_v9, %s3305_s27 }
 0x53b   : > { %1547 = vrot.lane.b32.xlu1 %v3626_v11, %s3305_s27 }
 0x53f   : > { %1629 = vrot.lane.b32.xlu1 %v3646_v17, %s3305_s27 }
 0x57f   : > { %v1289_v27 = vpop.xlane.xlu0 %1288 }
 0x5a3   : > { %v1280_v22 = vpop.xlane.xlu1 %1279 }
 0x5a4   : > { %v1282_v23 = vsub.f32 %v1272_v13, %v1280_v22 }
 0x5a6   : > { %v1285_v24 = vmul.f32 1.442695, %v1282_v23 }
 0x5a7   : > { %v1300_v28 = vpop.permute.xlu1 %1299 }
 0x5a8   : > { %3028 = vpow2.f32 %v1285_v24 }
 0x5a9   : > { %3030 = vrcp.f32 %v1289_v27 }
 0x5ab   : > { %v1383_v31 = vpop.permute.xlu1 %1382 }
 0x5af   : > { %v1381_v34 = vpop.permute.xlu1 %1380 }
 0x5b3   : > { %v1550_v38 = vpop.permute.xlu1 %1549 }
 0x5b5   : > { %v3029_v25 = vpop.eup %3028 }
 0x5b6   : > { %v1290_v26 = vsel %vm855_vm2, %v3029_v25, 0.0  ;;  %v3031_v30 = vpop.eup %3030 }
 0x5b7   : > { %1291 = vadd.xlane.f32.xlu0 %v1290_v26  ;;  %v1295_v33 = vmul.f32 %v3031_v30, %v3027_v4  ;;  %v1548_v39 = vpop.permute.xlu1 %1547 }
 0x5bb   : > { %v1630_v50 = vpop.permute.xlu1 %1629 }
 0x5cd   : > { %1301 = vrot.lane.b32.xlu0 %v3613_v5, %s3304_s19 }
 0x5d1   : > { %1551 = vrot.lane.b32.xlu0 %v3611_v3, %s3305_s27 }
 0x5d5   : > { %1633 = vrot.lane.b32.xlu0 %v3633_v14, %s3305_s27 }
 0x5d9   : > { %1631 = vrot.lane.b32.xlu0 %v3642_v15, %s3305_s27 }
 0x640   : > { %v1292_v29 = vpop.xlane.xlu0 %1291 }
 0x641   : > { %3032 = vrcp.f32 %v1292_v29 }
 0x644   : > { %v1302_v32 = vpop.permute.xlu0 %1301 }
 0x645   : > { %2813 = vmatpush3.msra.mxu0 %v1302_v32  ;;  %v1894_v32 = vld [vmem:[#allocation11 + $0x50] sm:$0xff] }
 0x646   : > { %2814 = vmatprep.subr.mxu0 %v3302_v0 }
 0x647   : > { %2815 = vmatpush3.msra.mxu0 %v1300_v28 }
 0x648   : > { %2817 = vmatmul.mubr.msk.f32.vlgmr.msra.gmra.mxu0 %vm855_vm2, %v1295_v33  ;;  %2819 = vmatprep.subr.mxu0 %v3302_v0  ;;  %v1552_v37 = vpop.permute.xlu0 %1551  ;;  %v1893_v33 = vld [vmem:[#allocation11 + $0x48] sm:$0xff] }
 0x649   : > { %2820 = vmatpush3.msra.mxu0 %v1383_v31  ;;  %2823 = vmatprep.mubr.msk.f32.mxu0 %vm3303_vm0, %v3302_v0  ;;  %v1895_v31 = vld [vmem:[#allocation11 + $0x58] sm:$0xff] }
 0x64a   : > { %2821 = vmatprep.subr.mxu0 %v3302_v0 }
 0x64b   : > { %2822 = vmatpush3.msra.mxu0 %v1381_v34  ;;  %v1892_v34 = vld [vmem:[#allocation11 + $0x40] sm:$0xff] }
 0x64c   : > { %2837 = vmatprep.subr.mxu0 %v3302_v0  ;;  %v1634_v46 = vpop.permute.xlu0 %1633 }
 0x64e   : > { %v3033_v35 = vpop.eup %3032 }
 0x64f   : > { %v1296_v36 = vmul.f32 %v3033_v35, %v3029_v25 }
 0x650   : > { %v1632_v49 = vpop.permute.xlu0 %1631 }
 0x651   : > { %2824 = vmatmul.mubr.msk.f32.vlgmr.msra.gmra.mxu0 %vm855_vm2, %v1296_v36 }
 0x652   : > { %2838 = vmatpush3.xpose.msk.msra.mxu0 %vm696_vm1, %v1552_v37  ;;  %2841 = vmatprep.mubr.msk.f32.mxu0 %vm3303_vm0, %v3302_v0 }
 0x653   : > { %2839 = vmatprep.subr.mxu0 %v3302_v0 }
 0x656   : > { %2840 = vmatpush3.xpose.msk.msra.mxu0 %vm696_vm1, %v1550_v38 }
 0x657   : > { %2851 = vmatprep.subr.mxu0 %v3302_v0 }
 0x659   : > { %2842 = vmatmul.mubr.msk.f32.vlgmr.msra.gmra.mxu0 %vm696_vm1, %v1548_v39 }
 0x65a   : > { %2855 = vmatprep.mubr.msk.f32.mxu0 %vm3303_vm0, %v3302_v0 }
 0x708   : > { %v1374_v44 = vpop.f32.mrf.mxu0 }
 0x709   : > { %2834 = vmatprep.mubr.msk.f32.mxu1 %vm696_vm1, %v1374_v44 }
 0x70a   : > { %v2818_v45 = vpop.f32.mrf.mxu0 }
 0x711   : > { %v1455_v47 = vpop.f32.mrf.mxu0 }
 0x712   : > { %2835 = vmatmul.mubr.msk.f32.vlgmr.msra.gmra.mxu1 %vm696_vm1, %v1455_v47 }
 0x713   : > { %2845 = vmatpush3.xpose.msk.msra.mxu1 %vm696_vm1, %v1634_v46  ;;  %v2825_v48 = vpop.f32.mrf.mxu0  ;;  %2848 = vmatprep.mubr.msk.f32.mxu1 %vm3303_vm0, %v3302_v0 }
 0x714   : > { %2846 = vmatprep.subr.mxu1 %v3302_v0 }
 0x717   : > { %2847 = vmatpush3.xpose.msk.msra.mxu1 %vm696_vm1, %v1632_v49 }
 0x718   : > { %2865 = vmatprep.subr.mxu1 %v1895_v31 }
 0x719   : > { %v1625_v51 = vpop.f32.mrf.mxu0 }
 0x71a   : > { %v1626_v52 = vadd.f32 %v1625_v51, %v3661_v20  ;;  %2849 = vmatmul.mubr.msk.f32.vlgmr.msra.gmra.mxu1 %vm696_vm1, %v1630_v50 }
 0x71b   : > { %v2843_v53 = vpop.f32.mrf.mxu0  ;;  %2866 = vmatpush3.msra.mxu1 %v1895_v31 }
 0x71c   : > { %v1711_v54 = vsel %vm855_vm2, %v1626_v52, -inf  ;;  %2867 = vmatprep.subr.mxu1 %v1894_v32 }
 0x71d   : > { %1712 = vmax.xlane.f32.xlu0 %v1711_v54  ;;  %2868 = vmatpush3.msra.mxu1 %v1894_v32 }
 0x71e   : > { %2869 = vmatprep.subr.mxu1 %v1893_v33 }
 0x71f   : > { %2870 = vmatpush3.msra.mxu1 %v1893_v33 }
 0x720   : > { %2871 = vmatprep.subr.mxu1 %v1892_v34 }
 0x721   : > { %2872 = vmatpush3.msra.mxu1 %v1892_v34 }
 0x722   : > { %2883 = vmatprep.subr.mxu1 %v3302_v0 }
 0x7a6   : > { %v1713_v55 = vpop.xlane.xlu0 %1712 }
 0x7a7   : > { %v1717_v56 = vsub.f32 %v1626_v52, %v1713_v55 }
 0x7a9   : > { %v1719_v57 = vmul.f32 1.442695, %v1717_v56 }
 0x7ab   : > { %3034 = vpow2.f32 %v1719_v57 }
 0x7b8   : > { %v3035_v58 = vpop.eup %3034 }
 0x7b9   : > { %v1723_v59 = vsel %vm855_vm2, %v3035_v58, 0.0 }
 0x7ba   : > { %1724 = vadd.xlane.f32.xlu0 %v1723_v59 }
 0x7d2   : > { %v2836_v62 = vpop.f32.mrf.mxu1 }
 0x7d3   : > { %v3765_v1 = vadd.f32 %v2836_v62, %v1110_v61 }
 0x7d4   : > { %v1536_v2 = vpop.f32.mrf.mxu1 }
 0x7d5   : > { %v3767_v4 = vadd.f32 %v1536_v2, %v1109_v63 }
 0x7da   : > { %v1707_v6 = vpop.f32.mrf.mxu1 }
 0x7db   : > { %v1708_v12 = vadd.f32 %v1707_v6, %v3661_v20 }
 0x7dc   : > { %v2850_v13 = vpop.f32.mrf.mxu1 }
 0x7dd   : > { %v1714_v16 = vsel %vm855_vm2, %v1708_v12, -inf  ;;  %v2327_v13 = vld [vmem:[#allocation11 + $0x78] sm:$0xff] }
 0x7de   : > { %1715 = vmax.xlane.f32.xlu1 %v1714_v16  ;;  %v2326_v16 = vld [vmem:[#allocation11 + $0x70] sm:$0xff] }
 0x7ef   : > { %1733 = vrot.lane.b32.xlu1 %v3623_v10, %s3305_s27 }
 0x7f3   : > { %1814 = vrot.lane.b32.xlu1 %v3649_v18, %s3305_s27 }
 0x7f7   : > { %1812 = vrot.lane.b32.xlu1 %v3653_v19, %s3305_s27 }
 0x7fb   : > { %1981 = vrot.lane.b32.xlu1 %v3621_v9, %s3306_s23 }
 0x7ff   : > { %1979 = vrot.lane.b32.xlu1 %v3626_v11, %s3306_s23 }
 0x803   : > { %2061 = vrot.lane.b32.xlu1 %v3646_v17, %s3306_s23 }
 0x843   : > { %v1725_v9 = vpop.xlane.xlu0 %1724 }
 0x867   : > { %v1716_v7 = vpop.xlane.xlu1 %1715 }
 0x868   : > { %v1718_v8 = vsub.f32 %v1708_v12, %v1716_v7  ;;  %v2325_v7 = vld [vmem:[#allocation11 + $0x68] sm:$0xff] }
 0x86a   : > { %v1721_v21 = vmul.f32 1.442695, %v1718_v8  ;;  %v2324_v8 = vld [vmem:[#allocation11 + $0x60] sm:$0xff] }
 0x86b   : > { %v1734_v11 = vpop.permute.xlu1 %1733 }
 0x86c   : > { %3036 = vpow2.f32 %v1721_v21 }
 0x86d   : > { %3038 = vrcp.f32 %v1725_v9 }
 0x86f   : > { %v1815_v25 = vpop.permute.xlu1 %1814 }
 0x879   : > { %v3037_v22 = vpop.eup %3036 }
 0x87a   : > { %v1726_v23 = vsel %vm855_vm2, %v3037_v22, 0.0  ;;  %v3039_v24 = vpop.eup %3038 }
 0x87b   : > { %1727 = vadd.xlane.f32.xlu0 %v1726_v23  ;;  %v1731_v27 = vmul.f32 %v3039_v24, %v3035_v58 }
 0x891   : > { %1735 = vrot.lane.b32.xlu0 %v3613_v5, %s3305_s27 }
 0x895   : > { %1983 = vrot.lane.b32.xlu0 %v3611_v3, %s3306_s23  ;;  %v1813_v3 = vpop.permute.xlu1 %1812 }
 0x899   : > { %2065 = vrot.lane.b32.xlu0 %v3633_v14, %s3306_s23  ;;  %v1982_v29 = vpop.permute.xlu1 %1981 }
 0x89d   : > { %2063 = vrot.lane.b32.xlu0 %v3642_v15, %s3306_s23  ;;  %v1980_v30 = vpop.permute.xlu1 %1979 }
 0x8a1   : > { %v2062_v41 = vpop.permute.xlu1 %2061 }
 0x904   : > { %v1728_v17 = vpop.xlane.xlu0 %1727 }
 0x905   : > { %3040 = vrcp.f32 %v1728_v17 }
 0x908   : > { %v1736_v26 = vpop.permute.xlu0 %1735 }
 0x909   : > { %2852 = vmatpush3.msra.mxu0 %v1736_v26 }
 0x90a   : > { %2853 = vmatprep.subr.mxu0 %v3302_v0 }
 0x90b   : > { %2854 = vmatpush3.msra.mxu0 %v1734_v11 }
 0x90c   : > { %2856 = vmatmul.mubr.msk.f32.vlgmr.msra.gmra.mxu0 %vm855_vm2, %v1731_v27  ;;  %2858 = vmatprep.subr.mxu0 %v3302_v0  ;;  %v1984_v28 = vpop.permute.xlu0 %1983 }
 0x90d   : > { %2859 = vmatpush3.msra.mxu0 %v1815_v25  ;;  %2862 = vmatprep.mubr.msk.f32.mxu0 %vm3303_vm0, %v3302_v0 }
 0x90e   : > { %2860 = vmatprep.subr.mxu0 %v3302_v0 }
 0x90f   : > { %2861 = vmatpush3.msra.mxu0 %v1813_v3 }
 0x910   : > { %2876 = vmatprep.subr.mxu0 %v3302_v0  ;;  %v2066_v37 = vpop.permute.xlu0 %2065 }
 0x912   : > { %v3041_v14 = vpop.eup %3040 }
 0x913   : > { %v1732_v15 = vmul.f32 %v3041_v14, %v3037_v22 }
 0x914   : > { %v2064_v40 = vpop.permute.xlu0 %2063 }
 0x915   : > { %2863 = vmatmul.mubr.msk.f32.vlgmr.msra.gmra.mxu0 %vm855_vm2, %v1732_v15 }
 0x916   : > { %2877 = vmatpush3.xpose.msk.msra.mxu0 %vm696_vm1, %v1984_v28  ;;  %2880 = vmatprep.mubr.msk.f32.mxu0 %vm3303_vm0, %v3302_v0 }
 0x917   : > { %2878 = vmatprep.subr.mxu0 %v3302_v0 }
 0x91a   : > { %2879 = vmatpush3.xpose.msk.msra.mxu0 %vm696_vm1, %v1982_v29 }
 0x91b   : > { %2890 = vmatprep.subr.mxu0 %v3302_v0 }
 0x91d   : > { %2881 = vmatmul.mubr.msk.f32.vlgmr.msra.gmra.mxu0 %vm696_vm1, %v1980_v30 }
 0x91e   : > { %2894 = vmatprep.mubr.msk.f32.mxu0 %vm3303_vm0, %v3302_v0 }
 0x9cc   : > { %v1808_v35 = vpop.f32.mrf.mxu0 }
 0x9cd   : > { %2873 = vmatprep.mubr.msk.f32.mxu1 %vm696_vm1, %v1808_v35 }
 0x9ce   : > { %v2857_v36 = vpop.f32.mrf.mxu0 }
 0x9d5   : > { %v1887_v38 = vpop.f32.mrf.mxu0 }
 0x9d6   : > { %2874 = vmatmul.mubr.msk.f32.vlgmr.msra.gmra.mxu1 %vm696_vm1, %v1887_v38 }
 0x9d7   : > { %2884 = vmatpush3.xpose.msk.msra.mxu1 %vm696_vm1, %v2066_v37  ;;  %v2864_v39 = vpop.f32.mrf.mxu0  ;;  %2887 = vmatprep.mubr.msk.f32.mxu1 %vm3303_vm0, %v3302_v0 }
 0x9d8   : > { %2885 = vmatprep.subr.mxu1 %v3302_v0 }
 0x9db   : > { %2886 = vmatpush3.xpose.msk.msra.mxu1 %vm696_vm1, %v2064_v40 }
 0x9dc   : > { %2904 = vmatprep.subr.mxu1 %v2327_v13 }
 0x9dd   : > { %v2057_v42 = vpop.f32.mrf.mxu0 }
 0x9de   : > { %v2058_v43 = vadd.f32 %v2057_v42, %v3661_v20  ;;  %2888 = vmatmul.mubr.msk.f32.vlgmr.msra.gmra.mxu1 %vm696_vm1, %v2062_v41 }
 0x9df   : > { %v2882_v44 = vpop.f32.mrf.mxu0  ;;  %2905 = vmatpush3.msra.mxu1 %v2327_v13 }
 0x9e0   : > { %v2143_v45 = vsel %vm855_vm2, %v2058_v43, -inf  ;;  %2906 = vmatprep.subr.mxu1 %v2326_v16 }
 0x9e1   : > { %2144 = vmax.xlane.f32.xlu0 %v2143_v45  ;;  %2907 = vmatpush3.msra.mxu1 %v2326_v16 }
 0x9e2   : > { %2908 = vmatprep.subr.mxu1 %v2325_v7 }
 0x9e3   : > { %2909 = vmatpush3.msra.mxu1 %v2325_v7 }
 0x9e4   : > { %2910 = vmatprep.subr.mxu1 %v2324_v8 }
 0x9e5   : > { %2911 = vmatpush3.msra.mxu1 %v2324_v8 }
 0xa6a   : > { %v2145_v46 = vpop.xlane.xlu0 %2144 }
 0xa6b   : > { %v2149_v47 = vsub.f32 %v2058_v43, %v2145_v46 }
 0xa6d   : > { %v2151_v48 = vmul.f32 1.442695, %v2149_v47 }
 0xa6f   : > { %3042 = vpow2.f32 %v2151_v48 }
 0xa7c   : > { %v3043_v49 = vpop.eup %3042 }
 0xa7d   : > { %v2155_v50 = vsel %vm855_vm2, %v3043_v49, 0.0 }
 0xa7e   : > { %2156 = vadd.xlane.f32.xlu0 %v2155_v50 }
 0xa96   : > { %v2875_v51 = vpop.f32.mrf.mxu1 }
 0xa97   : > { %v3822_v52 = vadd.f32 %v2875_v51, %v3765_v1 }
 0xa98   : > { %v1968_v53 = vpop.f32.mrf.mxu1 }
 0xa99   : > { %v3825_v54 = vadd.f32 %v1968_v53, %v3767_v4 }
 0xa9e   : > { %v2139_v55 = vpop.f32.mrf.mxu1 }
 0xa9f   : > { %v2140_v56 = vadd.f32 %v2139_v55, %v3661_v20 }
 0xaa0   : > { %v2889_v57 = vpop.f32.mrf.mxu1 }
 0xaa1   : > { %v2146_v58 = vsel %vm855_vm2, %v2140_v56, -inf }
 0xaa2   : > { %2147 = vmax.xlane.f32.xlu1 %v2146_v58 }
 0xab3   : > { %2165 = vrot.lane.b32.xlu1 %v3623_v10, %s3306_s23 }
 0xab7   : > { %2246 = vrot.lane.b32.xlu1 %v3649_v18, %s3306_s23 }
 0xabb   : > { %2244 = vrot.lane.b32.xlu1 %v3653_v19, %s3306_s23 }
 0xb07   : > { %v2157_v63 = vpop.xlane.xlu0 %2156 }
 0xb2b   : > { %v2148_v59 = vpop.xlane.xlu1 %2147 }
 0xb2c   : > { %v2150_v60 = vsub.f32 %v2140_v56, %v2148_v59 }
 0xb2e   : > { %v2153_v61 = vmul.f32 1.442695, %v2150_v60 }
 0xb2f   : > { %v2166_v10 = vpop.permute.xlu1 %2165 }
 0xb30   : > { %3044 = vpow2.f32 %v2153_v61 }
 0xb31   : > { %3046 = vrcp.f32 %v2157_v63 }
 0xb33   : > { %v2247_v2 = vpop.permute.xlu1 %2246 }
 0xb3d   : > { %v3045_v62 = vpop.eup %3044 }
 0xb3e   : > { %v2158_v20 = vsel %vm855_vm2, %v3045_v62, 0.0  ;;  %v3047_v18 = vpop.eup %3046 }
 0xb3f   : > { %2159 = vadd.xlane.f32.xlu0 %v2158_v20  ;;  %v2163_v19 = vmul.f32 %v3047_v18, %v3043_v49 }
 0xb55   : > { %2167 = vrot.lane.b32.xlu0 %v3613_v5, %s3306_s23  ;;  %v2245_v5 = vpop.permute.xlu1 %2244 }
 0xbc8   : > { %v2160_v1 = vpop.xlane.xlu0 %2159 }
 0xbc9   : > { %3048 = vrcp.f32 %v2160_v1 }
 0xbcc   : > { %v2168_v4 = vpop.permute.xlu0 %2167 }
 0xbcd   : > { %2891 = vmatpush3.msra.mxu0 %v2168_v4 }
 0xbce   : > { %2892 = vmatprep.subr.mxu0 %v3302_v0 }
 0xbcf   : > { %2893 = vmatpush3.msra.mxu0 %v2166_v10 }
 0xbd0   : > { %2895 = vmatmul.mubr.msk.f32.vlgmr.msra.gmra.mxu0 %vm855_vm2, %v2163_v19  ;;  %2897 = vmatprep.subr.mxu0 %v3302_v0 }
 0xbd1   : > { %2898 = vmatpush3.msra.mxu0 %v2247_v2  ;;  %2901 = vmatprep.mubr.msk.f32.mxu0 %vm3303_vm0, %v3302_v0 }
 0xbd2   : > { %2899 = vmatprep.subr.mxu0 %v3302_v0 }
 0xbd3   : > { %2900 = vmatpush3.msra.mxu0 %v2245_v5 }
 0xbd6   : > { %v3049_v6 = vpop.eup %3048 }
 0xbd7   : > { %v2164_v12 = vmul.f32 %v3049_v6, %v3045_v62 }
 0xbd9   : > { %2902 = vmatmul.mubr.msk.f32.vlgmr.msra.gmra.mxu0 %vm855_vm2, %v2164_v12 }
 0xc90   : > { %v2240_v0 = vpop.f32.mrf.mxu0 }
 0xc91   : > { %2912 = vmatprep.mubr.msk.f32.mxu1 %vm696_vm1, %v2240_v0 }
 0xc92   : > { %v2896_v21 = vpop.f32.mrf.mxu0 }
 0xc99   : > { %v2319_v22 = vpop.f32.mrf.mxu0 }
 0xc9a   : > { %2913 = vmatmul.mubr.msk.f32.vlgmr.msra.gmra.mxu1 %vm696_vm1, %v2319_v22 }
 0xc9b   : > { %v2903_v23 = vpop.f32.mrf.mxu0 }
 0xd5a   : > { %v2914_v9 = vpop.f32.mrf.mxu1 }
 0xd5b   : > { %v2410_v11 = vadd.f32 %v2914_v9, %v3822_v52 }
 0xd5c   : > { %v2400_v17 = vpop.f32.mrf.mxu1 }
 0xd5d   : > { %2412 = vst [vmem:[%s447_s2 + $0x8] sm:$0xff] %v2410_v11  ;;  %v2409_v24 = vadd.f32 %v2400_v17, %v3825_v54 }
 0xd5f   : > { %2411 = vst [vmem:[%s447_s2] sm:$0xff] %v2409_v24 }
 0xd60   : > { %3223 = shalt.err (!%p3220_p12)
}
 0xd61   : > { %s3224_s18 = scalar_lea.hbm %s3856_s17, 256  ;;  %s3228_s19 = scalar_lea.hbm %s3909_s9, 512 }
 0xd62   : > { %p3225_p11 = scmp.ne.s32.totalorder %s3856_s17, %s3224_s18  ;;  %p3229_p3 = scmp.lt.s32.totalorder %s3856_s17, %s3909_s9 }
 0xd63   : > { %p3230_p5 = scmp.lt.s32.totalorder %s3228_s19, %s3224_s18 }
 0xd64   : > { %p3226_p6 = pnand %p3225_p11, %p3464_p9 }
 0xd65   : > { %p3231_p7 = por %p3230_p5, %p3229_p3 }
 0xd66   : > { %p3227_p8 = pneg %p3226_p6 }
 0xd68   : > { %p3232_p13 = pnand %p3231_p7, %p3227_p8 }
 0xd6a   : > { %3235 = shalt.err (!%p3232_p13)
}
 0xd6b   : > { %s3308_s7 = smov 128   ;;  %s3309_s23 = smov 8  }
 0xd6c   : > { %2935 = dma.vmem_to_hbm [thread:$0]  (%p3464_p9), %s3851_s21, 256, %s3856_s17, %s2414_s28, %s3308_s7, %s3308_s7, %s3309_s23  }
 0xd6d PF: > { %s2442_s2 = sand.u32 1, %s3278_s30   ;;  %p3949_p1 = scmp.ne.s32.totalorder %s3925_s16, 0 }
 0xd6e   : > { %p3950_p0 = scmp.ge.s32.totalorder %s3290_s12, 2  ;;  %s2443_s3 = scalar_lea.sflag [#allocation4], %s2442_s2 }
 0xd70   : > { %p2958_p2 = pnand %p3950_p0, %p3949_p1 }
 0xd72   : > { %p2959_p4 = pneg %p2958_p2 }
 0xd74   : > { %3273 = dma.done.wait (%p2959_p4), %s2443_s3, 256  }
 0xd75   : > { %3275 = vsyncadd (%p2959_p4), %s2443_s3, 4294967040  ;;  %s3951_s22 = sld [smem:[#allocation20_spill]]  ;;  %p27_p10 = scmp.ge.s32.totalorder %s3454_s20, 4  }
 0xd76   : > { %s3952_s11 = sld [smem:[#allocation21_spill]]  ;;  %s3953_s30 = smov %s3282_s10 }
 0xd77   : > { %s3955_s12 = smov %s3454_s20  ;;  %29 = sbr.rel (!%p27_p10) target bundleno = 15 (0xf), region = 133 }
 0xd7b   : > { %s3954_s10 = smov %s3951_s22 }
 0xd7c   :  { %2448 = vsyncpa [#allocation3], 1 }
 0xd7d   :  { %2450 = vsyncpa [#allocation3 + $0x1], 1 }
 0xd7e   :  { %2451 = vsyncpa [#allocation6], 1 }
 0xd7f   :  { %2453 = vsyncpa [#allocation6 + $0x1], 1 }
 0xd80   :  { %2454 = vsyncpa [#allocation9], 1 }
 0xd81   :  { %2455 = vsyncpa [#allocation12], 1 }
 0xd82   :  { %2456 = vsyncpa [#allocation4], 1 }
 0xd83   :  { %2458 = vsyncpa [#allocation4 + $0x1], 1 }

</bundles_post_ra>
